<compile_context>
chip_gen: v7x
topology: tpu7x:2x2x1
jax: 0.10.0
libtpu: 0.0.40
codegen_flags: <defaults>
</compile_context>

<pallas_src>
import functools
import numpy as np
import jax
import jax.numpy as jnp
from jax.experimental import pallas as pl
from jax.experimental.pallas import tpu as pltpu


# ---------------------------------------------------------------------------
# Fused kernel: conv-embed (l==0) + encoder layer l + final LN/pools (l==L-1)
# ---------------------------------------------------------------------------
def make_fused_kernel(num_heads, grans, num_layers, ffn_block=1024):
    def kernel(x_ref, convw_ref, pos_ref, lnfg_ref, lnfb_ref,
               ln0g_ref, ln0b_ref, wq_ref, bq_ref, wk_ref, bk_ref,
               wv_ref, bv_ref, wo_ref, bo_ref,
               ln1g_ref, ln1b_ref, w1_ref, b1_ref, w2_ref, b2_ref,
               coarse_ref, fine_ref,
               acc_ref, q_scr, k_scr, v_scr, attn_scr):
        l = pl.program_id(1)
        Bb, T, D = acc_ref.shape
        M = Bb * T
        hd = D // num_heads
        embed_scale = float(np.sqrt(D))

        def layer_norm(v, g, b):
            # two-pass (centered) variance: same reduction count, better f32
            # robustness than E[x^2]-mu^2 under post-residual growth.
            mu = jnp.mean(v, axis=-1, keepdims=True)
            c = v - mu
            var = jnp.mean(c * c, axis=-1, keepdims=True)
            return c * jax.lax.rsqrt(var + 1e-5) * g + b

        # ---- output blocks are resident across the layer axis (index_map
        # ignores l) and only get their final values at l==L-1; zero-init them
        # at l==0 so every grid step leaves them in a defined state. ----
        @pl.when(l == 0)
        def _init_outputs():
            coarse_ref[...] = jnp.zeros_like(coarse_ref)
            fine_ref[...] = jnp.zeros_like(fine_ref)

        # ---- l == 0: Conv1d(k=3, pad=1, no bias) + embed_scale + pos-emb ----
        # Three per-tap matmuls accumulated via shifted ref windows (no im2col
        # lane concat): out[t] = x[t-1]@W0 + x[t]@W1 + x[t+1]@W2 (zero pad).
        @pl.when(l == 0)
        def _embed():
            Cin = x_ref.shape[-1]
            x_b = x_ref[...].reshape(M, Cin).astype(jnp.bfloat16)
            h1 = jnp.dot(x_b, convw_ref[1], preferred_element_type=jnp.float32)
            acc_ref[...] = embed_scale * h1.reshape(Bb, T, D) + pos_ref[...]
            if T > 1:
                h0 = jnp.dot(x_b, convw_ref[0],
                             preferred_element_type=jnp.float32).reshape(Bb, T, D)
                h2 = jnp.dot(x_b, convw_ref[2],
                             preferred_element_type=jnp.float32).reshape(Bb, T, D)
                acc_ref[:, pl.ds(1, T - 1), :] += embed_scale * h0[:, :T - 1, :]
                acc_ref[:, pl.ds(0, T - 1), :] += embed_scale * h2[:, 1:, :]

        # ---- transformer encoder layer l (pre-LN, fairseq style) ----
        x = acc_ref[...]                                         # (Bb, T, D) f32

        # --- self-attention: lane-dense separate projections ---
        xn = layer_norm(x, ln0g_ref[0], ln0b_ref[0])
        xn_b = xn.reshape(M, D).astype(jnp.bfloat16)
        q = jnp.dot(xn_b, wq_ref[0], preferred_element_type=jnp.float32) + bq_ref[0]
        k = jnp.dot(xn_b, wk_ref[0], preferred_element_type=jnp.float32) + bk_ref[0]
        v = jnp.dot(xn_b, wv_ref[0], preferred_element_type=jnp.float32) + bv_ref[0]
        # stage q/k/v in VMEM scratch so per-head access is a windowed ref load
        # (plain strided VMEM load) instead of a live-vreg lane slice / relayout.
        q_scr[...] = q.reshape(Bb, T, D).astype(jnp.bfloat16)
        k_scr[...] = k.reshape(Bb, T, D).astype(jnp.bfloat16)
        v_scr[...] = v.reshape(Bb, T, D).astype(jnp.bfloat16)

        for h_ in range(num_heads):                   # static unroll over heads
            lo = h_ * hd
            qh = q_scr[:, :, lo:lo + hd]              # (Bb, T, hd) bf16
            kh = k_scr[:, :, lo:lo + hd]
            vh = v_scr[:, :, lo:lo + hd]
            s = jnp.einsum('bqd,bkd->bqk', qh, kh,
                           preferred_element_type=jnp.float32)   # (Bb, T, T)
            s = s - jnp.max(s, axis=-1, keepdims=True)
            p = jnp.exp(s)
            p = p * pl.reciprocal(jnp.sum(p, axis=-1, keepdims=True), approx=True)
            oh = jnp.einsum('bqk,bkd->bqd', p.astype(jnp.bfloat16), vh,
                            preferred_element_type=jnp.float32)
            attn_scr[:, :, lo:lo + hd] = oh           # lane-window store (no concat)

        attn = jnp.dot(attn_scr[...].reshape(M, D).astype(jnp.bfloat16), wo_ref[0],
                       preferred_element_type=jnp.float32) + bo_ref[0]
        x = x + attn.reshape(Bb, T, D)                            # residual

        # --- FFN (optionally K-chunked over the 4*D hidden dim) ---
        xn = layer_norm(x, ln1g_ref[0], ln1b_ref[0])
        xn_b = xn.reshape(M, D).astype(jnp.bfloat16)
        d_ff = w1_ref.shape[-1]
        if d_ff > ffn_block and d_ff % ffn_block == 0:
            # caps the live f32 h1 temp at (M, ffn_block) for v7x's 64 MiB VMEM
            ff = None
            for c in range(d_ff // ffn_block):
                w1c = w1_ref[0, :, pl.ds(c * ffn_block, ffn_block)]
                b1c = b1_ref[0, :, pl.ds(c * ffn_block, ffn_block)]
                h1c = jnp.maximum(
                    jnp.dot(xn_b, w1c, preferred_element_type=jnp.float32) + b1c, 0.0)
                w2c = w2_ref[0, pl.ds(c * ffn_block, ffn_block), :]
                part = jnp.dot(h1c.astype(jnp.bfloat16), w2c,
                               preferred_element_type=jnp.float32)
                ff = part if ff is None else ff + part
            ff = ff + b2_ref[0]
        else:
            h1 = jnp.maximum(
                jnp.dot(xn_b, w1_ref[0], preferred_element_type=jnp.float32)
                + b1_ref[0], 0.0)
            ff = jnp.dot(h1.astype(jnp.bfloat16), w2_ref[0],
                         preferred_element_type=jnp.float32) + b2_ref[0]
        x = x + ff.reshape(Bb, T, D)                              # residual
        acc_ref[...] = x
        # TODO(synk): attn/relu/res/embed dropout omitted (inference semantics).

        # ---- l == L-1: final LayerNorm + adaptive max pools ----
        @pl.when(l == num_layers - 1)
        def _pool():
            y = layer_norm(x, lnfg_ref[...], lnfb_ref[...])
            segs = []
            cmax = None
            for i in range(grans):                    # AdaptiveMaxPool1d(G) bounds
                s0 = (i * T) // grans
                e0 = -((-(i + 1) * T) // grans)
                m = jnp.max(y[:, s0:e0, :], axis=1, keepdims=True)
                segs.append(m)
                # coarse = max over the fine-segment maxima (covers all of T),
                # no second full-T reduction.
                cmax = m if cmax is None else jnp.maximum(cmax, m)
            fine_ref[...] = jnp.concatenate(segs, axis=1)         # (Bb, grans, D)
            coarse_ref[...] = cmax                                # (Bb, 1, D)

    return kernel


# ---------------------------------------------------------------------------
# Wrapper: one pallas_call for the whole forward pass
# ---------------------------------------------------------------------------
def audio_video_forward(feas, params, pos, *, num_heads, grans,
                        block_b=None, ffn_block=1024, vmem_limit_bytes=None):
    B, T, Cin = feas.shape
    D = params["wq"].shape[-1]
    L = params["wq"].shape[0]
    d_ff = params["fc1_w"].shape[-1]

    if block_b is None:
        # >= 2 batch blocks so the "parallel" axis feeds both v7x TensorCores.
        block_b = B // 2 if (B >= 2 and B % 2 == 0) else B
    Bb = block_b
    assert B % Bb == 0

    if vmem_limit_bytes is None:
        cap = 128 * 1024 * 1024
        try:
            cap = int(pltpu.get_tpu_info().vmem_capacity_bytes)
        except Exception:
            pass
        # ~96 MiB on v5e/v6e (128 MiB VMEM), ~48 MiB on v7x (64 MiB VMEM)
        vmem_limit_bytes = int(min(100 * 1024 * 1024, (3 * cap) // 4))

    kernel = make_fused_kernel(num_heads, grans, L, ffn_block=ffn_block)

    def batch_spec(shape):            # blocked over batch axis only
        nd = len(shape)
        return pl.BlockSpec((Bb,) + tuple(shape[1:]),
                            lambda i, l, _nd=nd: (i,) + (0,) * (_nd - 1))

    def full_spec(shape):             # whole array, resident across the grid
        nd = len(shape)
        return pl.BlockSpec(tuple(shape), lambda i, l, _nd=nd: (0,) * _nd)

    def layer_spec(shape):            # stacked (L, ...) weights: pick layer l
        nd = len(shape)
        return pl.BlockSpec((1,) + tuple(shape[1:]),
                            lambda i, l, _nd=nd: (l,) + (0,) * (_nd - 1))

    layer_keys = ["ln0_g", "ln0_b", "wq", "bq", "wk", "bk", "wv", "bv",
                  "wo", "bo", "ln1_g", "ln1_b", "fc1_w", "fc1_b", "fc2_w", "fc2_b"]
    layer_ws = [params[k] for k in layer_keys]

    def nbytes(a):
        return int(np.prod(a.shape)) * jnp.dtype(a.dtype).itemsize

    flops = 2 * B * T * 3 * Cin * D                                     # conv
    flops += L * (8 * B * T * D * D + 4 * B * T * T * D + 4 * B * T * D * d_ff)
    cost = pl.CostEstimate(
        flops=int(flops),
        transcendentals=int(L * B * num_heads * T * T),
        bytes_accessed=int(nbytes(feas) + nbytes(pos)
                           + sum(nbytes(params[kk]) for kk in params)
                           + B * D * 4 + B * grans * D * 4))

    coarse, fine = pl.pallas_call(
        kernel,
        out_shape=(jax.ShapeDtypeStruct((B, 1, D), jnp.float32),
                   jax.ShapeDtypeStruct((B, grans, D), jnp.float32)),
        grid=(B // Bb, L),
        in_specs=[batch_spec(feas.shape),
                  full_spec(params["conv_w"].shape),
                  full_spec(pos.shape),
                  full_spec(params["ln_f_g"].shape),
                  full_spec(params["ln_f_b"].shape)]
                 + [layer_spec(w.shape) for w in layer_ws],
        out_specs=(pl.BlockSpec((Bb, 1, D), lambda i, l: (i, 0, 0)),
                   pl.BlockSpec((Bb, grans, D), lambda i, l: (i, 0, 0))),
        scratch_shapes=[pltpu.VMEM((Bb, T, D), jnp.float32),    # layer-resident act
                        pltpu.VMEM((Bb, T, D), jnp.bfloat16),   # q staging
                        pltpu.VMEM((Bb, T, D), jnp.bfloat16),   # k staging
                        pltpu.VMEM((Bb, T, D), jnp.bfloat16),   # v staging
                        pltpu.VMEM((Bb, T, D), jnp.float32)],   # attn head outputs
        compiler_params=pltpu.CompilerParams(
            dimension_semantics=("parallel", "arbitrary"),      # batch || , layers seq
            vmem_limit_bytes=vmem_limit_bytes),
        cost_estimate=cost,
    )(feas, params["conv_w"], pos, params["ln_f_g"], params["ln_f_b"], *layer_ws)

    coarsed = coarse.reshape(B, D)                    # .view(-1, d_l)
    # Kernel keeps D on the 128-lane axis; match PyTorch (B, D, grans) lazily here.
    fine_output = jnp.transpose(fine, (0, 2, 1))
    return coarsed, fine_output


# ---------------------------------------------------------------------------
# Parameter setup (deterministic synthetic init, fairseq conventions)
# ---------------------------------------------------------------------------
def sinusoidal_pos_emb(T, dim, padding_idx=0):
    half = dim // 2
    scale = np.log(10000.0) / (half - 1)
    freqs = np.exp(np.arange(half, dtype=np.float64) * -scale)
    pos = (np.arange(T, dtype=np.float64) + padding_idx + 1)[:, None]
    ang = pos * freqs[None, :]
    out = np.concatenate([np.sin(ang), np.cos(ang)], axis=1)
    if dim % 2 == 1:
        out = np.concatenate([out, np.zeros((T, 1))], axis=1)
    return jnp.asarray(out, jnp.float32)


def init_params(key, modality_dim, d_l, layers, num_heads):
    ks = iter(jax.random.split(key, 32))

    def randw(shape, scale=0.05):
        return (scale * jax.random.normal(next(ks), shape)).astype(jnp.float32)

    hd = d_l // num_heads
    scaling = float(hd) ** -0.5
    d_ff = 4 * d_l

    # fold fairseq q-scaling (hd^-0.5) into Wq / bq offline
    wq = randw((layers, d_l, d_l)) * scaling
    bq = randw((layers, 1, d_l), 0.02) * scaling

    return {
        # conv weight stored per-tap (3, Cin, D); matmul weights bf16
        "conv_w": randw((3, modality_dim, d_l)).astype(jnp.bfloat16),
        "ln_f_g": jnp.ones((1, d_l), jnp.float32),
        "ln_f_b": jnp.zeros((1, d_l), jnp.float32),
        "ln0_g": jnp.ones((layers, 1, d_l), jnp.float32),
        "ln0_b": jnp.zeros((layers, 1, d_l), jnp.float32),
        "wq": wq.astype(jnp.bfloat16), "bq": bq,
        "wk": randw((layers, d_l, d_l)).astype(jnp.bfloat16),
        "bk": randw((layers, 1, d_l), 0.02),
        "wv": randw((layers, d_l, d_l)).astype(jnp.bfloat16),
        "bv": randw((layers, 1, d_l), 0.02),
        "wo": randw((layers, d_l, d_l)).astype(jnp.bfloat16),
        "bo": randw((layers, 1, d_l), 0.02),
        "ln1_g": jnp.ones((layers, 1, d_l), jnp.float32),
        "ln1_b": jnp.zeros((layers, 1, d_l), jnp.float32),
        "fc1_w": randw((layers, d_l, d_ff)).astype(jnp.bfloat16),
        "fc1_b": randw((layers, 1, d_ff), 0.02),
        "fc2_w": randw((layers, d_ff, d_l)).astype(jnp.bfloat16),
        "fc2_b": randw((layers, 1, d_l), 0.02),
    }


if __name__ == "__main__":
    # args-like config (small shapes)
    B, T = 2, 8
    MODALITY_DIM = 16
    D_L = 32
    NUM_HEADS = 4
    LAYERS = 2
    GRANS = 4

    key = jax.random.PRNGKey(0)
    k_in, k_par = jax.random.split(key)
    feas = jax.random.normal(k_in, (B, T, MODALITY_DIM), dtype=jnp.float32)
    params = init_params(k_par, MODALITY_DIM, D_L, LAYERS, NUM_HEADS)
    pos = sinusoidal_pos_emb(T, D_L)

    fwd = jax.jit(functools.partial(audio_video_forward,
                                    num_heads=NUM_HEADS, grans=GRANS))
    coarsed, fine_output = fwd(feas, params, pos)
    coarsed = jax.block_until_ready(coarsed)
    fine_output = jax.block_until_ready(fine_output)

    assert coarsed.shape == (B, D_L)
    assert fine_output.shape == (B, D_L, GRANS)
    assert bool(jnp.all(jnp.isfinite(coarsed))) and bool(jnp.all(jnp.isfinite(fine_output)))
    print("KERNEL_OK")
</pallas_src>

<mosaic_0001>
module attributes {stable_mosaic.version = 11 : i64} {
  func.func @kernel(%arg0: i32, %arg1: i32, %arg2: memref<1x8x16xf32, #tpu.memory_space<vmem>>, %arg3: memref<3x16x32xbf16, #tpu.memory_space<vmem>>, %arg4: memref<8x32xf32, #tpu.memory_space<vmem>>, %arg5: memref<1x32xf32, #tpu.memory_space<vmem>>, %arg6: memref<1x32xf32, #tpu.memory_space<vmem>>, %arg7: memref<1x1x32xf32, #tpu.memory_space<vmem>>, %arg8: memref<1x1x32xf32, #tpu.memory_space<vmem>>, %arg9: memref<1x32x32xbf16, #tpu.memory_space<vmem>>, %arg10: memref<1x1x32xf32, #tpu.memory_space<vmem>>, %arg11: memref<1x32x32xbf16, #tpu.memory_space<vmem>>, %arg12: memref<1x1x32xf32, #tpu.memory_space<vmem>>, %arg13: memref<1x32x32xbf16, #tpu.memory_space<vmem>>, %arg14: memref<1x1x32xf32, #tpu.memory_space<vmem>>, %arg15: memref<1x32x32xbf16, #tpu.memory_space<vmem>>, %arg16: memref<1x1x32xf32, #tpu.memory_space<vmem>>, %arg17: memref<1x1x32xf32, #tpu.memory_space<vmem>>, %arg18: memref<1x1x32xf32, #tpu.memory_space<vmem>>, %arg19: memref<1x32x128xbf16, #tpu.memory_space<vmem>>, %arg20: memref<1x1x128xf32, #tpu.memory_space<vmem>>, %arg21: memref<1x128x32xbf16, #tpu.memory_space<vmem>>, %arg22: memref<1x1x32xf32, #tpu.memory_space<vmem>>, %arg23: memref<1x1x32xf32, #tpu.memory_space<vmem>>, %arg24: memref<1x4x32xf32, #tpu.memory_space<vmem>>, %arg25: memref<1x8x32xf32, #tpu.memory_space<vmem>>, %arg26: memref<1x8x32xbf16, #tpu.memory_space<vmem>>, %arg27: memref<1x8x32xbf16, #tpu.memory_space<vmem>>, %arg28: memref<1x8x32xbf16, #tpu.memory_space<vmem>>, %arg29: memref<1x8x32xf32, #tpu.memory_space<vmem>>) attributes {dimension_semantics = [#tpu.dimension_semantics<parallel>, #tpu.dimension_semantics<arbitrary>], iteration_bounds = array<i64: 2, 2>, scalar_prefetch = 0 : i64, scratch_operands = 5 : i64, tpu.core_type = #tpu.core_type<tc>, window_params = [{transform_indices = @transform_0, window_bounds = array<i64: 1, 8, 16>}, {pipeline_mode = #tpu.pipeline_mode<synchronous>, transform_indices = @transform_1, window_bounds = array<i64: 3, 16, 32>}, {pipeline_mode = #tpu.pipeline_mode<synchronous>, transform_indices = @transform_2, window_bounds = array<i64: 8, 32>}, {pipeline_mode = #tpu.pipeline_mode<synchronous>, transform_indices = @transform_3, window_bounds = array<i64: 1, 32>}, {pipeline_mode = #tpu.pipeline_mode<synchronous>, transform_indices = @transform_4, window_bounds = array<i64: 1, 32>}, {transform_indices = @transform_5, window_bounds = array<i64: 1, 1, 32>}, {transform_indices = @transform_6, window_bounds = array<i64: 1, 1, 32>}, {transform_indices = @transform_7, window_bounds = array<i64: 1, 32, 32>}, {transform_indices = @transform_8, window_bounds = array<i64: 1, 1, 32>}, {transform_indices = @transform_9, window_bounds = array<i64: 1, 32, 32>}, {transform_indices = @transform_10, window_bounds = array<i64: 1, 1, 32>}, {transform_indices = @transform_11, window_bounds = array<i64: 1, 32, 32>}, {transform_indices = @transform_12, window_bounds = array<i64: 1, 1, 32>}, {transform_indices = @transform_13, window_bounds = array<i64: 1, 32, 32>}, {transform_indices = @transform_14, window_bounds = array<i64: 1, 1, 32>}, {transform_indices = @transform_15, window_bounds = array<i64: 1, 1, 32>}, {transform_indices = @transform_16, window_bounds = array<i64: 1, 1, 32>}, {transform_indices = @transform_17, window_bounds = array<i64: 1, 32, 128>}, {transform_indices = @transform_18, window_bounds = array<i64: 1, 1, 128>}, {transform_indices = @transform_19, window_bounds = array<i64: 1, 128, 32>}, {transform_indices = @transform_20, window_bounds = array<i64: 1, 1, 32>}, {transform_indices = @transform_21, window_bounds = array<i64: 1, 1, 32>}, {transform_indices = @transform_22, window_bounds = array<i64: 1, 4, 32>}]} {
    %c0_i32 = arith.constant 0 : i32
    %0 = arith.cmpi eq, %arg1, %c0_i32 : i32
    %1 = arith.extui %0 : i1 to i32
    %c0_i32_0 = arith.constant 0 : i32
    %2 = arith.cmpi ne, %1, %c0_i32_0 : i32
    scf.if %2 {
      %cst_146 = arith.constant 0.000000e+00 : f32
      %196 = vector.broadcast %cst_146 : f32 to vector<1x1x32xf32>
      %c0_147 = arith.constant 0 : index
      %c0_148 = arith.constant 0 : index
      %c0_149 = arith.constant 0 : index
      %197 = vector.load %arg23[%c0_147, %c0_148, %c0_149] : memref<1x1x32xf32, #tpu.memory_space<vmem>>, vector<1x1x32xf32>
      tpu.vector_store %arg23[%c0_147, %c0_148, %c0_149], %196 {strides = array<i32>} : memref<1x1x32xf32, #tpu.memory_space<vmem>>, vector<1x1x32xf32>,
      %cst_150 = arith.constant 0.000000e+00 : f32
      %198 = vector.broadcast %cst_150 : f32 to vector<1x4x32xf32>
      %c0_151 = arith.constant 0 : index
      %c0_152 = arith.constant 0 : index
      %c0_153 = arith.constant 0 : index
      %199 = vector.load %arg24[%c0_151, %c0_152, %c0_153] : memref<1x4x32xf32, #tpu.memory_space<vmem>>, vector<1x4x32xf32>
      tpu.vector_store %arg24[%c0_151, %c0_152, %c0_153], %198 {strides = array<i32>} : memref<1x4x32xf32, #tpu.memory_space<vmem>>, vector<1x4x32xf32>,
    } else {
    }
    %c0_i32_1 = arith.constant 0 : i32
    %3 = arith.cmpi eq, %arg1, %c0_i32_1 : i32
    %4 = arith.extui %3 : i1 to i32
    %c0_i32_2 = arith.constant 0 : i32
    %5 = arith.cmpi ne, %4, %c0_i32_2 : i32
    scf.if %5 {
      %c0_146 = arith.constant 0 : index
      %c0_147 = arith.constant 0 : index
      %c0_148 = arith.constant 0 : index
      %196 = vector.load %arg2[%c0_146, %c0_147, %c0_148] : memref<1x8x16xf32, #tpu.memory_space<vmem>>, vector<1x8x16xf32>
      %197 = vector.shape_cast %196 : vector<1x8x16xf32> to vector<8x16xf32>
      %198 = arith.truncf %197 : vector<8x16xf32> to vector<8x16xbf16>
      %c1 = arith.constant 1 : index
      %c0_149 = arith.constant 0 : index
      %c0_150 = arith.constant 0 : index
      %199 = vector.load %arg3[%c1, %c0_149, %c0_150] : memref<3x16x32xbf16, #tpu.memory_space<vmem>>, vector<1x16x32xbf16>
      %200 = vector.shape_cast %199 : vector<1x16x32xbf16> to vector<16x32xbf16>
      %cst_151 = arith.constant dense<0.000000e+00> : vector<8x32xf32>
      %201 = tpu.matmul %198, %200, %cst_151 {dimension_numbers = #tpu.dot_dimension_numbers<[1], [0], [0], [1], [0, 0, 1, 1], [], []>} : vector<8x16xbf16>, vector<16x32xbf16>, vector<8x32xf32> -> vector<8x32xf32>
      %202 = vector.shape_cast %201 : vector<8x32xf32> to vector<1x8x32xf32>
      %cst_152 = arith.constant 5.65685415 : f32
      %203 = vector.broadcast %cst_152 : f32 to vector<1x8x32xf32>
      %204 = arith.mulf %203, %202 : vector<1x8x32xf32>
      %c0_153 = arith.constant 0 : index
      %c0_154 = arith.constant 0 : index
      %205 = vector.load %arg4[%c0_153, %c0_154] : memref<8x32xf32, #tpu.memory_space<vmem>>, vector<8x32xf32>
      %206 = vector.shape_cast %205 : vector<8x32xf32> to vector<1x8x32xf32>
      %207 = arith.addf %204, %206 : vector<1x8x32xf32>
      %c0_155 = arith.constant 0 : index
      %c0_156 = arith.constant 0 : index
      %c0_157 = arith.constant 0 : index
      %208 = vector.load %arg25[%c0_155, %c0_156, %c0_157] : memref<1x8x32xf32, #tpu.memory_space<vmem>>, vector<1x8x32xf32>
      tpu.vector_store %arg25[%c0_155, %c0_156, %c0_157], %207 {strides = array<i32>} : memref<1x8x32xf32, #tpu.memory_space<vmem>>, vector<1x8x32xf32>,
      %c0_158 = arith.constant 0 : index
      %c0_159 = arith.constant 0 : index
      %c0_160 = arith.constant 0 : index
      %209 = vector.load %arg3[%c0_158, %c0_159, %c0_160] : memref<3x16x32xbf16, #tpu.memory_space<vmem>>, vector<1x16x32xbf16>
      %210 = vector.shape_cast %209 : vector<1x16x32xbf16> to vector<16x32xbf16>
      %cst_161 = arith.constant dense<0.000000e+00> : vector<8x32xf32>
      %211 = tpu.matmul %198, %210, %cst_161 {dimension_numbers = #tpu.dot_dimension_numbers<[1], [0], [0], [1], [0, 0, 1, 1], [], []>} : vector<8x16xbf16>, vector<16x32xbf16>, vector<8x32xf32> -> vector<8x32xf32>
      %212 = vector.shape_cast %211 : vector<8x32xf32> to vector<1x8x32xf32>
      %c2 = arith.constant 2 : index
      %c0_162 = arith.constant 0 : index
      %c0_163 = arith.constant 0 : index
      %213 = vector.load %arg3[%c2, %c0_162, %c0_163] : memref<3x16x32xbf16, #tpu.memory_space<vmem>>, vector<1x16x32xbf16>
      %214 = vector.shape_cast %213 : vector<1x16x32xbf16> to vector<16x32xbf16>
      %cst_164 = arith.constant dense<0.000000e+00> : vector<8x32xf32>
      %215 = tpu.matmul %198, %214, %cst_164 {dimension_numbers = #tpu.dot_dimension_numbers<[1], [0], [0], [1], [0, 0, 1, 1], [], []>} : vector<8x16xbf16>, vector<16x32xbf16>, vector<8x32xf32> -> vector<8x32xf32>
      %216 = vector.shape_cast %215 : vector<8x32xf32> to vector<1x8x32xf32>
      %c0_165 = arith.constant 0 : index
      %c1_166 = arith.constant 1 : index
      %c0_167 = arith.constant 0 : index
      %217 = vector.load %arg25[%c0_165, %c1_166, %c0_167] : memref<1x8x32xf32, #tpu.memory_space<vmem>>, vector<1x7x32xf32>
      %218 = vector.extract_strided_slice %212 {offsets = [0, 0, 0], sizes = [1, 7, 32], strides = [1, 1, 1]} : vector<1x8x32xf32> to vector<1x7x32xf32>
      %cst_168 = arith.constant 5.65685415 : f32
      %219 = vector.broadcast %cst_168 : f32 to vector<1x7x32xf32>
      %220 = arith.mulf %219, %218 : vector<1x7x32xf32>
      %221 = arith.addf %217, %220 : vector<1x7x32xf32>
      %c0_169 = arith.constant 0 : index
      %c1_170 = arith.constant 1 : index
      %c0_171 = arith.constant 0 : index
      %222 = vector.load %arg25[%c0_169, %c1_170, %c0_171] : memref<1x8x32xf32, #tpu.memory_space<vmem>>, vector<1x7x32xf32>
      tpu.vector_store %arg25[%c0_169, %c1_170, %c0_171], %221 {strides = array<i32>} : memref<1x8x32xf32, #tpu.memory_space<vmem>>, vector<1x7x32xf32>,
      %c0_172 = arith.constant 0 : index
      %c0_173 = arith.constant 0 : index
      %c0_174 = arith.constant 0 : index
      %223 = vector.load %arg25[%c0_172, %c0_173, %c0_174] : memref<1x8x32xf32, #tpu.memory_space<vmem>>, vector<1x7x32xf32>
      %224 = vector.extract_strided_slice %216 {offsets = [0, 1, 0], sizes = [1, 7, 32], strides = [1, 1, 1]} : vector<1x8x32xf32> to vector<1x7x32xf32>
      %cst_175 = arith.constant 5.65685415 : f32
      %225 = vector.broadcast %cst_175 : f32 to vector<1x7x32xf32>
      %226 = arith.mulf %225, %224 : vector<1x7x32xf32>
      %227 = arith.addf %223, %226 : vector<1x7x32xf32>
      %c0_176 = arith.constant 0 : index
      %c0_177 = arith.constant 0 : index
      %c0_178 = arith.constant 0 : index
      %228 = vector.load %arg25[%c0_176, %c0_177, %c0_178] : memref<1x8x32xf32, #tpu.memory_space<vmem>>, vector<1x7x32xf32>
      tpu.vector_store %arg25[%c0_176, %c0_177, %c0_178], %227 {strides = array<i32>} : memref<1x8x32xf32, #tpu.memory_space<vmem>>, vector<1x7x32xf32>,
    } else {
    }
    %c0 = arith.constant 0 : index
    %c0_3 = arith.constant 0 : index
    %c0_4 = arith.constant 0 : index
    %6 = vector.load %arg25[%c0, %c0_3, %c0_4] : memref<1x8x32xf32, #tpu.memory_space<vmem>>, vector<1x8x32xf32>
    %c0_5 = arith.constant 0 : index
    %c0_6 = arith.constant 0 : index
    %c0_7 = arith.constant 0 : index
    %7 = vector.load %arg7[%c0_5, %c0_6, %c0_7] : memref<1x1x32xf32, #tpu.memory_space<vmem>>, vector<1x1x32xf32>
    %8 = vector.shape_cast %7 : vector<1x1x32xf32> to vector<1x32xf32>
    %c0_8 = arith.constant 0 : index
    %c0_9 = arith.constant 0 : index
    %c0_10 = arith.constant 0 : index
    %9 = vector.load %arg8[%c0_8, %c0_9, %c0_10] : memref<1x1x32xf32, #tpu.memory_space<vmem>>, vector<1x1x32xf32>
    %10 = vector.shape_cast %9 : vector<1x1x32xf32> to vector<1x32xf32>
    %cst = arith.constant dense<0.000000e+00> : vector<1x8xf32>
    %11 = vector.multi_reduction <add>, %6, %cst [2] : vector<1x8x32xf32> to vector<1x8xf32>
    %12 = vector.shape_cast %11 : vector<1x8xf32> to vector<1x8x1xf32>
    %cst_11 = arith.constant 3.200000e+01 : f32
    %13 = vector.broadcast %cst_11 : f32 to vector<1x8x1xf32>
    %14 = arith.divf %12, %13 : vector<1x8x1xf32>
    %15 = vector.broadcast %14 : vector<1x8x1xf32> to vector<1x8x32xf32>
    %16 = arith.subf %6, %15 : vector<1x8x32xf32>
    %17 = arith.mulf %16, %16 : vector<1x8x32xf32>
    %cst_12 = arith.constant dense<0.000000e+00> : vector<1x8xf32>
    %18 = vector.multi_reduction <add>, %17, %cst_12 [2] : vector<1x8x32xf32> to vector<1x8xf32>
    %19 = vector.shape_cast %18 : vector<1x8xf32> to vector<1x8x1xf32>
    %cst_13 = arith.constant 3.200000e+01 : f32
    %20 = vector.broadcast %cst_13 : f32 to vector<1x8x1xf32>
    %21 = arith.divf %19, %20 : vector<1x8x1xf32>
    %cst_14 = arith.constant 9.99999974E-6 : f32
    %22 = vector.broadcast %cst_14 : f32 to vector<1x8x1xf32>
    %23 = arith.addf %21, %22 : vector<1x8x1xf32>
    %24 = math.rsqrt %23 : vector<1x8x1xf32>
    %25 = vector.broadcast %24 : vector<1x8x1xf32> to vector<1x8x32xf32>
    %26 = arith.mulf %16, %25 : vector<1x8x32xf32>
    %27 = vector.shape_cast %8 : vector<1x32xf32> to vector<1x1x32xf32>
    %28 = vector.broadcast %27 : vector<1x1x32xf32> to vector<1x8x32xf32>
    %29 = arith.mulf %26, %28 : vector<1x8x32xf32>
    %30 = vector.shape_cast %10 : vector<1x32xf32> to vector<1x1x32xf32>
    %31 = vector.broadcast %30 : vector<1x1x32xf32> to vector<1x8x32xf32>
    %32 = arith.addf %29, %31 : vector<1x8x32xf32>
    %33 = vector.shape_cast %32 : vector<1x8x32xf32> to vector<8x32xf32>
    %34 = arith.truncf %33 : vector<8x32xf32> to vector<8x32xbf16>
    %c0_15 = arith.constant 0 : index
    %c0_16 = arith.constant 0 : index
    %c0_17 = arith.constant 0 : index
    %35 = vector.load %arg9[%c0_15, %c0_16, %c0_17] : memref<1x32x32xbf16, #tpu.memory_space<vmem>>, vector<1x32x32xbf16>
    %36 = vector.shape_cast %35 : vector<1x32x32xbf16> to vector<32x32xbf16>
    %cst_18 = arith.constant dense<0.000000e+00> : vector<8x32xf32>
    %37 = tpu.matmul %34, %36, %cst_18 {dimension_numbers = #tpu.dot_dimension_numbers<[1], [0], [0], [1], [0, 0, 1, 1], [], []>} : vector<8x32xbf16>, vector<32x32xbf16>, vector<8x32xf32> -> vector<8x32xf32>
    %c0_19 = arith.constant 0 : index
    %c0_20 = arith.constant 0 : index
    %c0_21 = arith.constant 0 : index
    %38 = vector.load %arg10[%c0_19, %c0_20, %c0_21] : memref<1x1x32xf32, #tpu.memory_space<vmem>>, vector<1x1x32xf32>
    %39 = vector.shape_cast %38 : vector<1x1x32xf32> to vector<1x32xf32>
    %40 = vector.broadcast %39 : vector<1x32xf32> to vector<8x32xf32>
    %41 = arith.addf %37, %40 : vector<8x32xf32>
    %c0_22 = arith.constant 0 : index
    %c0_23 = arith.constant 0 : index
    %c0_24 = arith.constant 0 : index
    %42 = vector.load %arg11[%c0_22, %c0_23, %c0_24] : memref<1x32x32xbf16, #tpu.memory_space<vmem>>, vector<1x32x32xbf16>
    %43 = vector.shape_cast %42 : vector<1x32x32xbf16> to vector<32x32xbf16>
    %cst_25 = arith.constant dense<0.000000e+00> : vector<8x32xf32>
    %44 = tpu.matmul %34, %43, %cst_25 {dimension_numbers = #tpu.dot_dimension_numbers<[1], [0], [0], [1], [0, 0, 1, 1], [], []>} : vector<8x32xbf16>, vector<32x32xbf16>, vector<8x32xf32> -> vector<8x32xf32>
    %c0_26 = arith.constant 0 : index
    %c0_27 = arith.constant 0 : index
    %c0_28 = arith.constant 0 : index
    %45 = vector.load %arg12[%c0_26, %c0_27, %c0_28] : memref<1x1x32xf32, #tpu.memory_space<vmem>>, vector<1x1x32xf32>
    %46 = vector.shape_cast %45 : vector<1x1x32xf32> to vector<1x32xf32>
    %47 = vector.broadcast %46 : vector<1x32xf32> to vector<8x32xf32>
    %48 = arith.addf %44, %47 : vector<8x32xf32>
    %c0_29 = arith.constant 0 : index
    %c0_30 = arith.constant 0 : index
    %c0_31 = arith.constant 0 : index
    %49 = vector.load %arg13[%c0_29, %c0_30, %c0_31] : memref<1x32x32xbf16, #tpu.memory_space<vmem>>, vector<1x32x32xbf16>
    %50 = vector.shape_cast %49 : vector<1x32x32xbf16> to vector<32x32xbf16>
    %cst_32 = arith.constant dense<0.000000e+00> : vector<8x32xf32>
    %51 = tpu.matmul %34, %50, %cst_32 {dimension_numbers = #tpu.dot_dimension_numbers<[1], [0], [0], [1], [0, 0, 1, 1], [], []>} : vector<8x32xbf16>, vector<32x32xbf16>, vector<8x32xf32> -> vector<8x32xf32>
    %c0_33 = arith.constant 0 : index
    %c0_34 = arith.constant 0 : index
    %c0_35 = arith.constant 0 : index
    %52 = vector.load %arg14[%c0_33, %c0_34, %c0_35] : memref<1x1x32xf32, #tpu.memory_space<vmem>>, vector<1x1x32xf32>
    %53 = vector.shape_cast %52 : vector<1x1x32xf32> to vector<1x32xf32>
    %54 = vector.broadcast %53 : vector<1x32xf32> to vector<8x32xf32>
    %55 = arith.addf %51, %54 : vector<8x32xf32>
    %56 = vector.shape_cast %41 : vector<8x32xf32> to vector<1x8x32xf32>
    %57 = arith.truncf %56 : vector<1x8x32xf32> to vector<1x8x32xbf16>
    %c0_36 = arith.constant 0 : index
    %c0_37 = arith.constant 0 : index
    %c0_38 = arith.constant 0 : index
    %58 = vector.load %arg26[%c0_36, %c0_37, %c0_38] : memref<1x8x32xbf16, #tpu.memory_space<vmem>>, vector<1x8x32xbf16>
    tpu.vector_store %arg26[%c0_36, %c0_37, %c0_38], %57 {strides = array<i32>} : memref<1x8x32xbf16, #tpu.memory_space<vmem>>, vector<1x8x32xbf16>,
    %59 = vector.shape_cast %48 : vector<8x32xf32> to vector<1x8x32xf32>
    %60 = arith.truncf %59 : vector<1x8x32xf32> to vector<1x8x32xbf16>
    %c0_39 = arith.constant 0 : index
    %c0_40 = arith.constant 0 : index
    %c0_41 = arith.constant 0 : index
    %61 = vector.load %arg27[%c0_39, %c0_40, %c0_41] : memref<1x8x32xbf16, #tpu.memory_space<vmem>>, vector<1x8x32xbf16>
    tpu.vector_store %arg27[%c0_39, %c0_40, %c0_41], %60 {strides = array<i32>} : memref<1x8x32xbf16, #tpu.memory_space<vmem>>, vector<1x8x32xbf16>,
    %62 = vector.shape_cast %55 : vector<8x32xf32> to vector<1x8x32xf32>
    %63 = arith.truncf %62 : vector<1x8x32xf32> to vector<1x8x32xbf16>
    %c0_42 = arith.constant 0 : index
    %c0_43 = arith.constant 0 : index
    %c0_44 = arith.constant 0 : index
    %64 = vector.load %arg28[%c0_42, %c0_43, %c0_44] : memref<1x8x32xbf16, #tpu.memory_space<vmem>>, vector<1x8x32xbf16>
    tpu.vector_store %arg28[%c0_42, %c0_43, %c0_44], %63 {strides = array<i32>} : memref<1x8x32xbf16, #tpu.memory_space<vmem>>, vector<1x8x32xbf16>,
    %c0_45 = arith.constant 0 : index
    %c0_46 = arith.constant 0 : index
    %c0_47 = arith.constant 0 : index
    %65 = vector.load %arg26[%c0_45, %c0_46, %c0_47] : memref<1x8x32xbf16, #tpu.memory_space<vmem>>, vector<1x8x8xbf16>
    %c0_48 = arith.constant 0 : index
    %c0_49 = arith.constant 0 : index
    %c0_50 = arith.constant 0 : index
    %66 = vector.load %arg27[%c0_48, %c0_49, %c0_50] : memref<1x8x32xbf16, #tpu.memory_space<vmem>>, vector<1x8x8xbf16>
    %c0_51 = arith.constant 0 : index
    %c0_52 = arith.constant 0 : index
    %c0_53 = arith.constant 0 : index
    %67 = vector.load %arg28[%c0_51, %c0_52, %c0_53] : memref<1x8x32xbf16, #tpu.memory_space<vmem>>, vector<1x8x8xbf16>
    "tpu.trace_start"() <{level = 10 : i32, message = "bqd,bkd->bqk"}> : () -> ()
    %cst_54 = arith.constant dense<0.000000e+00> : vector<1x8x8xf32>
    %68 = tpu.matmul %65, %66, %cst_54 {dimension_numbers = #tpu.dot_dimension_numbers<[2], [2], [1], [1], [0, 0, 0, 1, 1, 1], [0], [0]>} : vector<1x8x8xbf16>, vector<1x8x8xbf16>, vector<1x8x8xf32> -> vector<1x8x8xf32>
    "tpu.trace_stop"() : () -> ()
    %cst_55 = arith.constant dense<0xFF800000> : vector<1x8xf32>
    %69 = vector.multi_reduction <maximumf>, %68, %cst_55 [2] : vector<1x8x8xf32> to vector<1x8xf32>
    %70 = vector.shape_cast %69 : vector<1x8xf32> to vector<1x8x1xf32>
    %71 = vector.broadcast %70 : vector<1x8x1xf32> to vector<1x8x8xf32>
    %72 = arith.subf %68, %71 : vector<1x8x8xf32>
    %73 = math.exp %72 : vector<1x8x8xf32>
    %cst_56 = arith.constant dense<0.000000e+00> : vector<1x8xf32>
    %74 = vector.multi_reduction <add>, %73, %cst_56 [2] : vector<1x8x8xf32> to vector<1x8xf32>
    %75 = vector.shape_cast %74 : vector<1x8xf32> to vector<1x8x1xf32>
    %76 = tpu.reciprocal %75 {approx = true} : vector<1x8x1xf32> -> vector<1x8x1xf32>
    %77 = vector.broadcast %76 : vector<1x8x1xf32> to vector<1x8x8xf32>
    %78 = arith.mulf %73, %77 : vector<1x8x8xf32>
    %79 = arith.truncf %78 : vector<1x8x8xf32> to vector<1x8x8xbf16>
    "tpu.trace_start"() <{level = 10 : i32, message = "bqk,bkd->bqd"}> : () -> ()
    %cst_57 = arith.constant dense<0.000000e+00> : vector<1x8x8xf32>
    %80 = tpu.matmul %79, %67, %cst_57 {dimension_numbers = #tpu.dot_dimension_numbers<[2], [1], [1], [2], [0, 0, 0, 1, 1, 2], [0], [0]>} : vector<1x8x8xbf16>, vector<1x8x8xbf16>, vector<1x8x8xf32> -> vector<1x8x8xf32>
    "tpu.trace_stop"() : () -> ()
    %c0_58 = arith.constant 0 : index
    %c0_59 = arith.constant 0 : index
    %c0_60 = arith.constant 0 : index
    %81 = vector.load %arg29[%c0_58, %c0_59, %c0_60] : memref<1x8x32xf32, #tpu.memory_space<vmem>>, vector<1x8x8xf32>
    tpu.vector_store %arg29[%c0_58, %c0_59, %c0_60], %80 {strides = array<i32>} : memref<1x8x32xf32, #tpu.memory_space<vmem>>, vector<1x8x8xf32>,
    %c0_61 = arith.constant 0 : index
    %c0_62 = arith.constant 0 : index
    %c8 = arith.constant 8 : index
    %82 = vector.load %arg26[%c0_61, %c0_62, %c8] : memref<1x8x32xbf16, #tpu.memory_space<vmem>>, vector<1x8x8xbf16>
    %c0_63 = arith.constant 0 : index
    %c0_64 = arith.constant 0 : index
    %c8_65 = arith.constant 8 : index
    %83 = vector.load %arg27[%c0_63, %c0_64, %c8_65] : memref<1x8x32xbf16, #tpu.memory_space<vmem>>, vector<1x8x8xbf16>
    %c0_66 = arith.constant 0 : index
    %c0_67 = arith.constant 0 : index
    %c8_68 = arith.constant 8 : index
    %84 = vector.load %arg28[%c0_66, %c0_67, %c8_68] : memref<1x8x32xbf16, #tpu.memory_space<vmem>>, vector<1x8x8xbf16>
    "tpu.trace_start"() <{level = 10 : i32, message = "bqd,bkd->bqk"}> : () -> ()
    %cst_69 = arith.constant dense<0.000000e+00> : vector<1x8x8xf32>
    %85 = tpu.matmul %82, %83, %cst_69 {dimension_numbers = #tpu.dot_dimension_numbers<[2], [2], [1], [1], [0, 0, 0, 1, 1, 1], [0], [0]>} : vector<1x8x8xbf16>, vector<1x8x8xbf16>, vector<1x8x8xf32> -> vector<1x8x8xf32>
    "tpu.trace_stop"() : () -> ()
    %cst_70 = arith.constant dense<0xFF800000> : vector<1x8xf32>
    %86 = vector.multi_reduction <maximumf>, %85, %cst_70 [2] : vector<1x8x8xf32> to vector<1x8xf32>
    %87 = vector.shape_cast %86 : vector<1x8xf32> to vector<1x8x1xf32>
    %88 = vector.broadcast %87 : vector<1x8x1xf32> to vector<1x8x8xf32>
    %89 = arith.subf %85, %88 : vector<1x8x8xf32>
    %90 = math.exp %89 : vector<1x8x8xf32>
    %cst_71 = arith.constant dense<0.000000e+00> : vector<1x8xf32>
    %91 = vector.multi_reduction <add>, %90, %cst_71 [2] : vector<1x8x8xf32> to vector<1x8xf32>
    %92 = vector.shape_cast %91 : vector<1x8xf32> to vector<1x8x1xf32>
    %93 = tpu.reciprocal %92 {approx = true} : vector<1x8x1xf32> -> vector<1x8x1xf32>
    %94 = vector.broadcast %93 : vector<1x8x1xf32> to vector<1x8x8xf32>
    %95 = arith.mulf %90, %94 : vector<1x8x8xf32>
    %96 = arith.truncf %95 : vector<1x8x8xf32> to vector<1x8x8xbf16>
    "tpu.trace_start"() <{level = 10 : i32, message = "bqk,bkd->bqd"}> : () -> ()
    %cst_72 = arith.constant dense<0.000000e+00> : vector<1x8x8xf32>
    %97 = tpu.matmul %96, %84, %cst_72 {dimension_numbers = #tpu.dot_dimension_numbers<[2], [1], [1], [2], [0, 0, 0, 1, 1, 2], [0], [0]>} : vector<1x8x8xbf16>, vector<1x8x8xbf16>, vector<1x8x8xf32> -> vector<1x8x8xf32>
    "tpu.trace_stop"() : () -> ()
    %c0_73 = arith.constant 0 : index
    %c0_74 = arith.constant 0 : index
    %c8_75 = arith.constant 8 : index
    %98 = vector.load %arg29[%c0_73, %c0_74, %c8_75] : memref<1x8x32xf32, #tpu.memory_space<vmem>>, vector<1x8x8xf32>
    tpu.vector_store %arg29[%c0_73, %c0_74, %c8_75], %97 {strides = array<i32>} : memref<1x8x32xf32, #tpu.memory_space<vmem>>, vector<1x8x8xf32>,
    %c0_76 = arith.constant 0 : index
    %c0_77 = arith.constant 0 : index
    %c16 = arith.constant 16 : index
    %99 = vector.load %arg26[%c0_76, %c0_77, %c16] : memref<1x8x32xbf16, #tpu.memory_space<vmem>>, vector<1x8x8xbf16>
    %c0_78 = arith.constant 0 : index
    %c0_79 = arith.constant 0 : index
    %c16_80 = arith.constant 16 : index
    %100 = vector.load %arg27[%c0_78, %c0_79, %c16_80] : memref<1x8x32xbf16, #tpu.memory_space<vmem>>, vector<1x8x8xbf16>
    %c0_81 = arith.constant 0 : index
    %c0_82 = arith.constant 0 : index
    %c16_83 = arith.constant 16 : index
    %101 = vector.load %arg28[%c0_81, %c0_82, %c16_83] : memref<1x8x32xbf16, #tpu.memory_space<vmem>>, vector<1x8x8xbf16>
    "tpu.trace_start"() <{level = 10 : i32, message = "bqd,bkd->bqk"}> : () -> ()
    %cst_84 = arith.constant dense<0.000000e+00> : vector<1x8x8xf32>
    %102 = tpu.matmul %99, %100, %cst_84 {dimension_numbers = #tpu.dot_dimension_numbers<[2], [2], [1], [1], [0, 0, 0, 1, 1, 1], [0], [0]>} : vector<1x8x8xbf16>, vector<1x8x8xbf16>, vector<1x8x8xf32> -> vector<1x8x8xf32>
    "tpu.trace_stop"() : () -> ()
    %cst_85 = arith.constant dense<0xFF800000> : vector<1x8xf32>
    %103 = vector.multi_reduction <maximumf>, %102, %cst_85 [2] : vector<1x8x8xf32> to vector<1x8xf32>
    %104 = vector.shape_cast %103 : vector<1x8xf32> to vector<1x8x1xf32>
    %105 = vector.broadcast %104 : vector<1x8x1xf32> to vector<1x8x8xf32>
    %106 = arith.subf %102, %105 : vector<1x8x8xf32>
    %107 = math.exp %106 : vector<1x8x8xf32>
    %cst_86 = arith.constant dense<0.000000e+00> : vector<1x8xf32>
    %108 = vector.multi_reduction <add>, %107, %cst_86 [2] : vector<1x8x8xf32> to vector<1x8xf32>
    %109 = vector.shape_cast %108 : vector<1x8xf32> to vector<1x8x1xf32>
    %110 = tpu.reciprocal %109 {approx = true} : vector<1x8x1xf32> -> vector<1x8x1xf32>
    %111 = vector.broadcast %110 : vector<1x8x1xf32> to vector<1x8x8xf32>
    %112 = arith.mulf %107, %111 : vector<1x8x8xf32>
    %113 = arith.truncf %112 : vector<1x8x8xf32> to vector<1x8x8xbf16>
    "tpu.trace_start"() <{level = 10 : i32, message = "bqk,bkd->bqd"}> : () -> ()
    %cst_87 = arith.constant dense<0.000000e+00> : vector<1x8x8xf32>
    %114 = tpu.matmul %113, %101, %cst_87 {dimension_numbers = #tpu.dot_dimension_numbers<[2], [1], [1], [2], [0, 0, 0, 1, 1, 2], [0], [0]>} : vector<1x8x8xbf16>, vector<1x8x8xbf16>, vector<1x8x8xf32> -> vector<1x8x8xf32>
    "tpu.trace_stop"() : () -> ()
    %c0_88 = arith.constant 0 : index
    %c0_89 = arith.constant 0 : index
    %c16_90 = arith.constant 16 : index
    %115 = vector.load %arg29[%c0_88, %c0_89, %c16_90] : memref<1x8x32xf32, #tpu.memory_space<vmem>>, vector<1x8x8xf32>
    tpu.vector_store %arg29[%c0_88, %c0_89, %c16_90], %114 {strides = array<i32>} : memref<1x8x32xf32, #tpu.memory_space<vmem>>, vector<1x8x8xf32>,
    %c0_91 = arith.constant 0 : index
    %c0_92 = arith.constant 0 : index
    %c24 = arith.constant 24 : index
    %116 = vector.load %arg26[%c0_91, %c0_92, %c24] : memref<1x8x32xbf16, #tpu.memory_space<vmem>>, vector<1x8x8xbf16>
    %c0_93 = arith.constant 0 : index
    %c0_94 = arith.constant 0 : index
    %c24_95 = arith.constant 24 : index
    %117 = vector.load %arg27[%c0_93, %c0_94, %c24_95] : memref<1x8x32xbf16, #tpu.memory_space<vmem>>, vector<1x8x8xbf16>
    %c0_96 = arith.constant 0 : index
    %c0_97 = arith.constant 0 : index
    %c24_98 = arith.constant 24 : index
    %118 = vector.load %arg28[%c0_96, %c0_97, %c24_98] : memref<1x8x32xbf16, #tpu.memory_space<vmem>>, vector<1x8x8xbf16>
    "tpu.trace_start"() <{level = 10 : i32, message = "bqd,bkd->bqk"}> : () -> ()
    %cst_99 = arith.constant dense<0.000000e+00> : vector<1x8x8xf32>
    %119 = tpu.matmul %116, %117, %cst_99 {dimension_numbers = #tpu.dot_dimension_numbers<[2], [2], [1], [1], [0, 0, 0, 1, 1, 1], [0], [0]>} : vector<1x8x8xbf16>, vector<1x8x8xbf16>, vector<1x8x8xf32> -> vector<1x8x8xf32>
    "tpu.trace_stop"() : () -> ()
    %cst_100 = arith.constant dense<0xFF800000> : vector<1x8xf32>
    %120 = vector.multi_reduction <maximumf>, %119, %cst_100 [2] : vector<1x8x8xf32> to vector<1x8xf32>
    %121 = vector.shape_cast %120 : vector<1x8xf32> to vector<1x8x1xf32>
    %122 = vector.broadcast %121 : vector<1x8x1xf32> to vector<1x8x8xf32>
    %123 = arith.subf %119, %122 : vector<1x8x8xf32>
    %124 = math.exp %123 : vector<1x8x8xf32>
    %cst_101 = arith.constant dense<0.000000e+00> : vector<1x8xf32>
    %125 = vector.multi_reduction <add>, %124, %cst_101 [2] : vector<1x8x8xf32> to vector<1x8xf32>
    %126 = vector.shape_cast %125 : vector<1x8xf32> to vector<1x8x1xf32>
    %127 = tpu.reciprocal %126 {approx = true} : vector<1x8x1xf32> -> vector<1x8x1xf32>
    %128 = vector.broadcast %127 : vector<1x8x1xf32> to vector<1x8x8xf32>
    %129 = arith.mulf %124, %128 : vector<1x8x8xf32>
    %130 = arith.truncf %129 : vector<1x8x8xf32> to vector<1x8x8xbf16>
    "tpu.trace_start"() <{level = 10 : i32, message = "bqk,bkd->bqd"}> : () -> ()
    %cst_102 = arith.constant dense<0.000000e+00> : vector<1x8x8xf32>
    %131 = tpu.matmul %130, %118, %cst_102 {dimension_numbers = #tpu.dot_dimension_numbers<[2], [1], [1], [2], [0, 0, 0, 1, 1, 2], [0], [0]>} : vector<1x8x8xbf16>, vector<1x8x8xbf16>, vector<1x8x8xf32> -> vector<1x8x8xf32>
    "tpu.trace_stop"() : () -> ()
    %c0_103 = arith.constant 0 : index
    %c0_104 = arith.constant 0 : index
    %c24_105 = arith.constant 24 : index
    %132 = vector.load %arg29[%c0_103, %c0_104, %c24_105] : memref<1x8x32xf32, #tpu.memory_space<vmem>>, vector<1x8x8xf32>
    tpu.vector_store %arg29[%c0_103, %c0_104, %c24_105], %131 {strides = array<i32>} : memref<1x8x32xf32, #tpu.memory_space<vmem>>, vector<1x8x8xf32>,
    %c0_106 = arith.constant 0 : index
    %c0_107 = arith.constant 0 : index
    %c0_108 = arith.constant 0 : index
    %133 = vector.load %arg29[%c0_106, %c0_107, %c0_108] : memref<1x8x32xf32, #tpu.memory_space<vmem>>, vector<1x8x32xf32>
    %134 = vector.shape_cast %133 : vector<1x8x32xf32> to vector<8x32xf32>
    %135 = arith.truncf %134 : vector<8x32xf32> to vector<8x32xbf16>
    %c0_109 = arith.constant 0 : index
    %c0_110 = arith.constant 0 : index
    %c0_111 = arith.constant 0 : index
    %136 = vector.load %arg15[%c0_109, %c0_110, %c0_111] : memref<1x32x32xbf16, #tpu.memory_space<vmem>>, vector<1x32x32xbf16>
    %137 = vector.shape_cast %136 : vector<1x32x32xbf16> to vector<32x32xbf16>
    %cst_112 = arith.constant dense<0.000000e+00> : vector<8x32xf32>
    %138 = tpu.matmul %135, %137, %cst_112 {dimension_numbers = #tpu.dot_dimension_numbers<[1], [0], [0], [1], [0, 0, 1, 1], [], []>} : vector<8x32xbf16>, vector<32x32xbf16>, vector<8x32xf32> -> vector<8x32xf32>
    %c0_113 = arith.constant 0 : index
    %c0_114 = arith.constant 0 : index
    %c0_115 = arith.constant 0 : index
    %139 = vector.load %arg16[%c0_113, %c0_114, %c0_115] : memref<1x1x32xf32, #tpu.memory_space<vmem>>, vector<1x1x32xf32>
    %140 = vector.shape_cast %139 : vector<1x1x32xf32> to vector<1x32xf32>
    %141 = vector.broadcast %140 : vector<1x32xf32> to vector<8x32xf32>
    %142 = arith.addf %138, %141 : vector<8x32xf32>
    %143 = vector.shape_cast %142 : vector<8x32xf32> to vector<1x8x32xf32>
    %144 = arith.addf %6, %143 : vector<1x8x32xf32>
    %c0_116 = arith.constant 0 : index
    %c0_117 = arith.constant 0 : index
    %c0_118 = arith.constant 0 : index
    %145 = vector.load %arg17[%c0_116, %c0_117, %c0_118] : memref<1x1x32xf32, #tpu.memory_space<vmem>>, vector<1x1x32xf32>
    %146 = vector.shape_cast %145 : vector<1x1x32xf32> to vector<1x32xf32>
    %c0_119 = arith.constant 0 : index
    %c0_120 = arith.constant 0 : index
    %c0_121 = arith.constant 0 : index
    %147 = vector.load %arg18[%c0_119, %c0_120, %c0_121] : memref<1x1x32xf32, #tpu.memory_space<vmem>>, vector<1x1x32xf32>
    %148 = vector.shape_cast %147 : vector<1x1x32xf32> to vector<1x32xf32>
    %cst_122 = arith.constant dense<0.000000e+00> : vector<1x8xf32>
    %149 = vector.multi_reduction <add>, %144, %cst_122 [2] : vector<1x8x32xf32> to vector<1x8xf32>
    %150 = vector.shape_cast %149 : vector<1x8xf32> to vector<1x8x1xf32>
    %cst_123 = arith.constant 3.200000e+01 : f32
    %151 = vector.broadcast %cst_123 : f32 to vector<1x8x1xf32>
    %152 = arith.divf %150, %151 : vector<1x8x1xf32>
    %153 = vector.broadcast %152 : vector<1x8x1xf32> to vector<1x8x32xf32>
    %154 = arith.subf %144, %153 : vector<1x8x32xf32>
    %155 = arith.mulf %154, %154 : vector<1x8x32xf32>
    %cst_124 = arith.constant dense<0.000000e+00> : vector<1x8xf32>
    %156 = vector.multi_reduction <add>, %155, %cst_124 [2] : vector<1x8x32xf32> to vector<1x8xf32>
    %157 = vector.shape_cast %156 : vector<1x8xf32> to vector<1x8x1xf32>
    %cst_125 = arith.constant 3.200000e+01 : f32
    %158 = vector.broadcast %cst_125 : f32 to vector<1x8x1xf32>
    %159 = arith.divf %157, %158 : vector<1x8x1xf32>
    %cst_126 = arith.constant 9.99999974E-6 : f32
    %160 = vector.broadcast %cst_126 : f32 to vector<1x8x1xf32>
    %161 = arith.addf %159, %160 : vector<1x8x1xf32>
    %162 = math.rsqrt %161 : vector<1x8x1xf32>
    %163 = vector.broadcast %162 : vector<1x8x1xf32> to vector<1x8x32xf32>
    %164 = arith.mulf %154, %163 : vector<1x8x32xf32>
    %165 = vector.shape_cast %146 : vector<1x32xf32> to vector<1x1x32xf32>
    %166 = vector.broadcast %165 : vector<1x1x32xf32> to vector<1x8x32xf32>
    %167 = arith.mulf %164, %166 : vector<1x8x32xf32>
    %168 = vector.shape_cast %148 : vector<1x32xf32> to vector<1x1x32xf32>
    %169 = vector.broadcast %168 : vector<1x1x32xf32> to vector<1x8x32xf32>
    %170 = arith.addf %167, %169 : vector<1x8x32xf32>
    %171 = vector.shape_cast %170 : vector<1x8x32xf32> to vector<8x32xf32>
    %172 = arith.truncf %171 : vector<8x32xf32> to vector<8x32xbf16>
    %c0_127 = arith.constant 0 : index
    %c0_128 = arith.constant 0 : index
    %c0_129 = arith.constant 0 : index
    %173 = vector.load %arg19[%c0_127, %c0_128, %c0_129] : memref<1x32x128xbf16, #tpu.memory_space<vmem>>, vector<1x32x128xbf16>
    %174 = vector.shape_cast %173 : vector<1x32x128xbf16> to vector<32x128xbf16>
    %cst_130 = arith.constant dense<0.000000e+00> : vector<8x128xf32>
    %175 = tpu.matmul %172, %174, %cst_130 {dimension_numbers = #tpu.dot_dimension_numbers<[1], [0], [0], [1], [0, 0, 1, 1], [], []>} : vector<8x32xbf16>, vector<32x128xbf16>, vector<8x128xf32> -> vector<8x128xf32>
    %c0_131 = arith.constant 0 : index
    %c0_132 = arith.constant 0 : index
    %c0_133 = arith.constant 0 : index
    %176 = vector.load %arg20[%c0_131, %c0_132, %c0_133] : memref<1x1x128xf32, #tpu.memory_space<vmem>>, vector<1x1x128xf32>
    %177 = vector.shape_cast %176 : vector<1x1x128xf32> to vector<1x128xf32>
    %178 = vector.broadcast %177 : vector<1x128xf32> to vector<8x128xf32>
    %179 = arith.addf %175, %178 : vector<8x128xf32>
    %cst_134 = arith.constant 0.000000e+00 : f32
    %180 = vector.broadcast %cst_134 : f32 to vector<8x128xf32>
    %181 = arith.maximumf %179, %180 : vector<8x128xf32>
    %182 = arith.truncf %181 : vector<8x128xf32> to vector<8x128xbf16>
    %c0_135 = arith.constant 0 : index
    %c0_136 = arith.constant 0 : index
    %c0_137 = arith.constant 0 : index
    %183 = vector.load %arg21[%c0_135, %c0_136, %c0_137] : memref<1x128x32xbf16, #tpu.memory_space<vmem>>, vector<1x128x32xbf16>
    %184 = vector.shape_cast %183 : vector<1x128x32xbf16> to vector<128x32xbf16>
    %cst_138 = arith.constant dense<0.000000e+00> : vector<8x32xf32>
    %185 = tpu.matmul %182, %184, %cst_138 {dimension_numbers = #tpu.dot_dimension_numbers<[1], [0], [0], [1], [0, 0, 1, 1], [], []>} : vector<8x128xbf16>, vector<128x32xbf16>, vector<8x32xf32> -> vector<8x32xf32>
    %c0_139 = arith.constant 0 : index
    %c0_140 = arith.constant 0 : index
    %c0_141 = arith.constant 0 : index
    %186 = vector.load %arg22[%c0_139, %c0_140, %c0_141] : memref<1x1x32xf32, #tpu.memory_space<vmem>>, vector<1x1x32xf32>
    %187 = vector.shape_cast %186 : vector<1x1x32xf32> to vector<1x32xf32>
    %188 = vector.broadcast %187 : vector<1x32xf32> to vector<8x32xf32>
    %189 = arith.addf %185, %188 : vector<8x32xf32>
    %190 = vector.shape_cast %189 : vector<8x32xf32> to vector<1x8x32xf32>
    %191 = arith.addf %144, %190 : vector<1x8x32xf32>
    %c0_142 = arith.constant 0 : index
    %c0_143 = arith.constant 0 : index
    %c0_144 = arith.constant 0 : index
    %192 = vector.load %arg25[%c0_142, %c0_143, %c0_144] : memref<1x8x32xf32, #tpu.memory_space<vmem>>, vector<1x8x32xf32>
    tpu.vector_store %arg25[%c0_142, %c0_143, %c0_144], %191 {strides = array<i32>} : memref<1x8x32xf32, #tpu.memory_space<vmem>>, vector<1x8x32xf32>,
    %c1_i32 = arith.constant 1 : i32
    %193 = arith.cmpi eq, %arg1, %c1_i32 : i32
    %194 = arith.extui %193 : i1 to i32
    %c0_i32_145 = arith.constant 0 : i32
    %195 = arith.cmpi ne, %194, %c0_i32_145 : i32
    scf.if %195 {
      %c0_146 = arith.constant 0 : index
      %c0_147 = arith.constant 0 : index
      %196 = vector.load %arg5[%c0_146, %c0_147] : memref<1x32xf32, #tpu.memory_space<vmem>>, vector<1x32xf32>
      %c0_148 = arith.constant 0 : index
      %c0_149 = arith.constant 0 : index
      %197 = vector.load %arg6[%c0_148, %c0_149] : memref<1x32xf32, #tpu.memory_space<vmem>>, vector<1x32xf32>
      %cst_150 = arith.constant dense<0.000000e+00> : vector<1x8xf32>
      %198 = vector.multi_reduction <add>, %191, %cst_150 [2] : vector<1x8x32xf32> to vector<1x8xf32>
      %199 = vector.shape_cast %198 : vector<1x8xf32> to vector<1x8x1xf32>
      %cst_151 = arith.constant 3.200000e+01 : f32
      %200 = vector.broadcast %cst_151 : f32 to vector<1x8x1xf32>
      %201 = arith.divf %199, %200 : vector<1x8x1xf32>
      %202 = vector.broadcast %201 : vector<1x8x1xf32> to vector<1x8x32xf32>
      %203 = arith.subf %191, %202 : vector<1x8x32xf32>
      %204 = arith.mulf %203, %203 : vector<1x8x32xf32>
      %cst_152 = arith.constant dense<0.000000e+00> : vector<1x8xf32>
      %205 = vector.multi_reduction <add>, %204, %cst_152 [2] : vector<1x8x32xf32> to vector<1x8xf32>
      %206 = vector.shape_cast %205 : vector<1x8xf32> to vector<1x8x1xf32>
      %cst_153 = arith.constant 3.200000e+01 : f32
      %207 = vector.broadcast %cst_153 : f32 to vector<1x8x1xf32>
      %208 = arith.divf %206, %207 : vector<1x8x1xf32>
      %cst_154 = arith.constant 9.99999974E-6 : f32
      %209 = vector.broadcast %cst_154 : f32 to vector<1x8x1xf32>
      %210 = arith.addf %208, %209 : vector<1x8x1xf32>
      %211 = math.rsqrt %210 : vector<1x8x1xf32>
      %212 = vector.broadcast %211 : vector<1x8x1xf32> to vector<1x8x32xf32>
      %213 = arith.mulf %203, %212 : vector<1x8x32xf32>
      %214 = vector.shape_cast %196 : vector<1x32xf32> to vector<1x1x32xf32>
      %215 = vector.broadcast %214 : vector<1x1x32xf32> to vector<1x8x32xf32>
      %216 = arith.mulf %213, %215 : vector<1x8x32xf32>
      %217 = vector.shape_cast %197 : vector<1x32xf32> to vector<1x1x32xf32>
      %218 = vector.broadcast %217 : vector<1x1x32xf32> to vector<1x8x32xf32>
      %219 = arith.addf %216, %218 : vector<1x8x32xf32>
      %220 = vector.extract_strided_slice %219 {offsets = [0, 0, 0], sizes = [1, 2, 32], strides = [1, 1, 1]} : vector<1x8x32xf32> to vector<1x2x32xf32>
      %cst_155 = arith.constant dense<0xFF800000> : vector<1x32xf32>
      %221 = vector.multi_reduction <maximumf>, %220, %cst_155 [1] : vector<1x2x32xf32> to vector<1x32xf32>
      %222 = vector.shape_cast %221 : vector<1x32xf32> to vector<1x1x32xf32>
      %223 = vector.extract_strided_slice %219 {offsets = [0, 2, 0], sizes = [1, 2, 32], strides = [1, 1, 1]} : vector<1x8x32xf32> to vector<1x2x32xf32>
      %cst_156 = arith.constant dense<0xFF800000> : vector<1x32xf32>
      %224 = vector.multi_reduction <maximumf>, %223, %cst_156 [1] : vector<1x2x32xf32> to vector<1x32xf32>
      %225 = vector.shape_cast %224 : vector<1x32xf32> to vector<1x1x32xf32>
      %226 = arith.maximumf %222, %225 : vector<1x1x32xf32>
      %227 = vector.extract_strided_slice %219 {offsets = [0, 4, 0], sizes = [1, 2, 32], strides = [1, 1, 1]} : vector<1x8x32xf32> to vector<1x2x32xf32>
      %cst_157 = arith.constant dense<0xFF800000> : vector<1x32xf32>
      %228 = vector.multi_reduction <maximumf>, %227, %cst_157 [1] : vector<1x2x32xf32> to vector<1x32xf32>
      %229 = vector.shape_cast %228 : vector<1x32xf32> to vector<1x1x32xf32>
      %230 = arith.maximumf %226, %229 : vector<1x1x32xf32>
      %231 = vector.extract_strided_slice %219 {offsets = [0, 6, 0], sizes = [1, 2, 32], strides = [1, 1, 1]} : vector<1x8x32xf32> to vector<1x2x32xf32>
      %cst_158 = arith.constant dense<0xFF800000> : vector<1x32xf32>
      %232 = vector.multi_reduction <maximumf>, %231, %cst_158 [1] : vector<1x2x32xf32> to vector<1x32xf32>
      %233 = vector.shape_cast %232 : vector<1x32xf32> to vector<1x1x32xf32>
      %234 = arith.maximumf %230, %233 : vector<1x1x32xf32>
      %235 = tpu.concatenate %222, %225, %229, %233 in 1 : vector<1x1x32xf32>, vector<1x1x32xf32>, vector<1x1x32xf32>, vector<1x1x32xf32> -> vector<1x4x32xf32>
      %c0_159 = arith.constant 0 : index
      %c0_160 = arith.constant 0 : index
      %c0_161 = arith.constant 0 : index
      %236 = vector.load %arg24[%c0_159, %c0_160, %c0_161] : memref<1x4x32xf32, #tpu.memory_space<vmem>>, vector<1x4x32xf32>
      tpu.vector_store %arg24[%c0_159, %c0_160, %c0_161], %235 {strides = array<i32>} : memref<1x4x32xf32, #tpu.memory_space<vmem>>, vector<1x4x32xf32>,
      %c0_162 = arith.constant 0 : index
      %c0_163 = arith.constant 0 : index
      %c0_164 = arith.constant 0 : index
      %237 = vector.load %arg23[%c0_162, %c0_163, %c0_164] : memref<1x1x32xf32, #tpu.memory_space<vmem>>, vector<1x1x32xf32>
      tpu.vector_store %arg23[%c0_162, %c0_163, %c0_164], %234 {strides = array<i32>} : memref<1x1x32xf32, #tpu.memory_space<vmem>>, vector<1x1x32xf32>,
    } else {
    }
    return
  }
  func.func @transform_0(%arg0: i32, %arg1: i32) -> (i32, i32, i32) {
    %c0_i32 = arith.constant 0 : i32
    %c0_i32_0 = arith.constant 0 : i32
    %c0_i32_1 = arith.constant 0 : i32
    return %arg0, %c0_i32, %c0_i32_0 : i32, i32, i32
  }
  func.func @transform_1(%arg0: i32, %arg1: i32) -> (i32, i32, i32) {
    %c0_i32 = arith.constant 0 : i32
    %c0_i32_0 = arith.constant 0 : i32
    %c0_i32_1 = arith.constant 0 : i32
    %c0_i32_2 = arith.constant 0 : i32
    return %c0_i32, %c0_i32_0, %c0_i32_1 : i32, i32, i32
  }
  func.func @transform_2(%arg0: i32, %arg1: i32) -> (i32, i32) {
    %c0_i32 = arith.constant 0 : i32
    %c0_i32_0 = arith.constant 0 : i32
    %c0_i32_1 = arith.constant 0 : i32
    return %c0_i32, %c0_i32_0 : i32, i32
  }
  func.func @transform_3(%arg0: i32, %arg1: i32) -> (i32, i32) {
    %c0_i32 = arith.constant 0 : i32
    %c0_i32_0 = arith.constant 0 : i32
    %c0_i32_1 = arith.constant 0 : i32
    return %c0_i32, %c0_i32_0 : i32, i32
  }
  func.func @transform_4(%arg0: i32, %arg1: i32) -> (i32, i32) {
    %c0_i32 = arith.constant 0 : i32
    %c0_i32_0 = arith.constant 0 : i32
    %c0_i32_1 = arith.constant 0 : i32
    return %c0_i32, %c0_i32_0 : i32, i32
  }
  func.func @transform_5(%arg0: i32, %arg1: i32) -> (i32, i32, i32) {
    %c0_i32 = arith.constant 0 : i32
    %c0_i32_0 = arith.constant 0 : i32
    %c0_i32_1 = arith.constant 0 : i32
    return %arg1, %c0_i32, %c0_i32_0 : i32, i32, i32
  }
  func.func @transform_6(%arg0: i32, %arg1: i32) -> (i32, i32, i32) {
    %c0_i32 = arith.constant 0 : i32
    %c0_i32_0 = arith.constant 0 : i32
    %c0_i32_1 = arith.constant 0 : i32
    return %arg1, %c0_i32, %c0_i32_0 : i32, i32, i32
  }
  func.func @transform_7(%arg0: i32, %arg1: i32) -> (i32, i32, i32) {
    %c0_i32 = arith.constant 0 : i32
    %c0_i32_0 = arith.constant 0 : i32
    %c0_i32_1 = arith.constant 0 : i32
    return %arg1, %c0_i32, %c0_i32_0 : i32, i32, i32
  }
  func.func @transform_8(%arg0: i32, %arg1: i32) -> (i32, i32, i32) {
    %c0_i32 = arith.constant 0 : i32
    %c0_i32_0 = arith.constant 0 : i32
    %c0_i32_1 = arith.constant 0 : i32
    return %arg1, %c0_i32, %c0_i32_0 : i32, i32, i32
  }
  func.func @transform_9(%arg0: i32, %arg1: i32) -> (i32, i32, i32) {
    %c0_i32 = arith.constant 0 : i32
    %c0_i32_0 = arith.constant 0 : i32
    %c0_i32_1 = arith.constant 0 : i32
    return %arg1, %c0_i32, %c0_i32_0 : i32, i32, i32
  }
  func.func @transform_10(%arg0: i32, %arg1: i32) -> (i32, i32, i32) {
    %c0_i32 = arith.constant 0 : i32
    %c0_i32_0 = arith.constant 0 : i32
    %c0_i32_1 = arith.constant 0 : i32
    return %arg1, %c0_i32, %c0_i32_0 : i32, i32, i32
  }
  func.func @transform_11(%arg0: i32, %arg1: i32) -> (i32, i32, i32) {
    %c0_i32 = arith.constant 0 : i32
    %c0_i32_0 = arith.constant 0 : i32
    %c0_i32_1 = arith.constant 0 : i32
    return %arg1, %c0_i32, %c0_i32_0 : i32, i32, i32
  }
  func.func @transform_12(%arg0: i32, %arg1: i32) -> (i32, i32, i32) {
    %c0_i32 = arith.constant 0 : i32
    %c0_i32_0 = arith.constant 0 : i32
    %c0_i32_1 = arith.constant 0 : i32
    return %arg1, %c0_i32, %c0_i32_0 : i32, i32, i32
  }
  func.func @transform_13(%arg0: i32, %arg1: i32) -> (i32, i32, i32) {
    %c0_i32 = arith.constant 0 : i32
    %c0_i32_0 = arith.constant 0 : i32
    %c0_i32_1 = arith.constant 0 : i32
    return %arg1, %c0_i32, %c0_i32_0 : i32, i32, i32
  }
  func.func @transform_14(%arg0: i32, %arg1: i32) -> (i32, i32, i32) {
    %c0_i32 = arith.constant 0 : i32
    %c0_i32_0 = arith.constant 0 : i32
    %c0_i32_1 = arith.constant 0 : i32
    return %arg1, %c0_i32, %c0_i32_0 : i32, i32, i32
  }
  func.func @transform_15(%arg0: i32, %arg1: i32) -> (i32, i32, i32) {
    %c0_i32 = arith.constant 0 : i32
    %c0_i32_0 = arith.constant 0 : i32
    %c0_i32_1 = arith.constant 0 : i32
    return %arg1, %c0_i32, %c0_i32_0 : i32, i32, i32
  }
  func.func @transform_16(%arg0: i32, %arg1: i32) -> (i32, i32, i32) {
    %c0_i32 = arith.constant 0 : i32
    %c0_i32_0 = arith.constant 0 : i32
    %c0_i32_1 = arith.constant 0 : i32
    return %arg1, %c0_i32, %c0_i32_0 : i32, i32, i32
  }
  func.func @transform_17(%arg0: i32, %arg1: i32) -> (i32, i32, i32) {
    %c0_i32 = arith.constant 0 : i32
    %c0_i32_0 = arith.constant 0 : i32
    %c0_i32_1 = arith.constant 0 : i32
    return %arg1, %c0_i32, %c0_i32_0 : i32, i32, i32
  }
  func.func @transform_18(%arg0: i32, %arg1: i32) -> (i32, i32, i32) {
    %c0_i32 = arith.constant 0 : i32
    %c0_i32_0 = arith.constant 0 : i32
    %c0_i32_1 = arith.constant 0 : i32
    return %arg1, %c0_i32, %c0_i32_0 : i32, i32, i32
  }
  func.func @transform_19(%arg0: i32, %arg1: i32) -> (i32, i32, i32) {
    %c0_i32 = arith.constant 0 : i32
    %c0_i32_0 = arith.constant 0 : i32
    %c0_i32_1 = arith.constant 0 : i32
    return %arg1, %c0_i32, %c0_i32_0 : i32, i32, i32
  }
  func.func @transform_20(%arg0: i32, %arg1: i32) -> (i32, i32, i32) {
    %c0_i32 = arith.constant 0 : i32
    %c0_i32_0 = arith.constant 0 : i32
    %c0_i32_1 = arith.constant 0 : i32
    return %arg1, %c0_i32, %c0_i32_0 : i32, i32, i32
  }
  func.func @transform_21(%arg0: i32, %arg1: i32) -> (i32, i32, i32) {
    %c0_i32 = arith.constant 0 : i32
    %c0_i32_0 = arith.constant 0 : i32
    %c0_i32_1 = arith.constant 0 : i32
    return %arg0, %c0_i32, %c0_i32_0 : i32, i32, i32
  }
  func.func @transform_22(%arg0: i32, %arg1: i32) -> (i32, i32, i32) {
    %c0_i32 = arith.constant 0 : i32
    %c0_i32_0 = arith.constant 0 : i32
    %c0_i32_1 = arith.constant 0 : i32
    return %arg0, %c0_i32, %c0_i32_0 : i32, i32, i32
  }
}

</mosaic_0001>

<bundles_post_ra>
// kernel: audio_video_forward.1
= control target key start
LH: loop header
LB: loop body
LE: loop exit
PB: predicated region body
PF: predicated region fallthrough
CT: control target
= control target key end

     0   :  { %s5660_s0 = inlined_call_operand.hbm [shape: f32[2,8,16], index: 0, kind: input, shape index: {}]   ;;  %s5661_s1 = inlined_call_operand.hbm [shape: bf16[3,16,32], index: 1, kind: input, shape index: {}]   ;;  %s5662_s2 = inlined_call_operand.hbm [shape: f32[8,32], index: 2, kind: input, shape index: {}]   ;;  %s5663_s3 = inlined_call_operand.hbm [shape: f32[1,32], index: 3, kind: input, shape index: {}]   ;;  %s5664_s4 = inlined_call_operand.hbm [shape: f32[1,32], index: 4, kind: input, shape index: {}]   ;;  %s5665_s5 = inlined_call_operand.hbm [shape: f32[2,1,32], index: 5, kind: input, shape index: {}]   ;;  %s5666_s6 = inlined_call_operand.hbm [shape: f32[2,1,32], index: 6, kind: input, shape index: {}]   ;;  %s5667_s7 = inlined_call_operand.hbm [shape: bf16[2,32,32], index: 7, kind: input, shape index: {}]   ;;  %s5668_s8 = inlined_call_operand.hbm [shape: f32[2,1,32], index: 8, kind: input, shape index: {}]   ;;  %s5669_s9 = inlined_call_operand.hbm [shape: bf16[2,32,32], index: 9, kind: input, shape index: {}]   ;;  %s5670_s10 = inlined_call_operand.hbm [shape: f32[2,1,32], index: 10, kind: input, shape index: {}]   ;;  %s5671_s11 = inlined_call_operand.hbm [shape: bf16[2,32,32], index: 11, kind: input, shape index: {}]   ;;  %s5672_s12 = inlined_call_operand.hbm [shape: f32[2,1,32], index: 12, kind: input, shape index: {}]   ;;  %s5673_s13 = inlined_call_operand.hbm [shape: bf16[2,32,32], index: 13, kind: input, shape index: {}]   ;;  %s5674_s14 = inlined_call_operand.hbm [shape: f32[2,1,32], index: 14, kind: input, shape index: {}]   ;;  %s5675_s15 = inlined_call_operand.hbm [shape: f32[2,1,32], index: 15, kind: input, shape index: {}]   ;;  %s5676_s16 = inlined_call_operand.hbm [shape: f32[2,1,32], index: 16, kind: input, shape index: {}]   ;;  %s5677_s17 = inlined_call_operand.hbm [shape: bf16[2,32,128], index: 17, kind: input, shape index: {}]   ;;  %s5678_s18 = inlined_call_operand.hbm [shape: f32[2,1,128], index: 18, kind: input, shape index: {}]   ;;  %s5679_s19 = inlined_call_operand.hbm [shape: bf16[2,128,32], index: 19, kind: input, shape index: {}]   ;;  %s5680_s20 = inlined_call_operand.hbm [shape: f32[2,1,32], index: 20, kind: input, shape index: {}]   ;;  %s5681_s21 = inlined_call_operand.hbm [shape: f32[2,1,32], index: 21, kind: output, shape index: {0}]   ;;  %s5682_s22 = inlined_call_operand.hbm [shape: f32[2,4,32], index: 22, kind: output, shape index: {1}]  }
   0x1   :  { %5745 = sst [smem:[#allocation71_spill]] %s5660_s0 }
   0x2   :  { %5746 = sst [smem:[#allocation72_spill]] %s5661_s1 }
   0x3   :  { %5747 = sst [smem:[#allocation73_spill]] %s5662_s2 }
   0x4   :  { %5748 = sst [smem:[#allocation74_spill]] %s5663_s3 }
   0x5   :  { %5749 = sst [smem:[#allocation75_spill]] %s5664_s4 }
   0x6   :  { %5750 = sst [smem:[#allocation76_spill]] %s5665_s5 }
   0x7   :  { %5751 = sst [smem:[#allocation77_spill]] %s5666_s6 }
   0x8   :  { %5752 = sst [smem:[#allocation78_spill]] %s5667_s7 }
   0x9   :  { %5753 = sst [smem:[#allocation79_spill]] %s5668_s8 }
   0xa   :  { %5754 = sst [smem:[#allocation80_spill]] %s5669_s9 }
   0xb   :  { %5755 = sst [smem:[#allocation81_spill]] %s5670_s10 }
   0xc   :  { %5756 = sst [smem:[#allocation82_spill]] %s5671_s11 }
   0xd   :  { %5757 = sst [smem:[#allocation83_spill]] %s5672_s12 }
   0xe   :  { %5758 = sst [smem:[#allocation84_spill]] %s5673_s13 }
   0xf   :  { %5759 = sst [smem:[#allocation85_spill]] %s5674_s14 }
  0x10   :  { %5760 = sst [smem:[#allocation86_spill]] %s5676_s16 }
  0x11   :  { %5761 = sst [smem:[#allocation87_spill]] %s5678_s18 }
  0x12   :  { %5762 = sst [smem:[#allocation88_spill]] %s5680_s20 }
  0x13   :  { %5763 = sst [smem:[#allocation89_spill]] %s5681_s21 }
  0x14   :  { %5764 = sst [smem:[#allocation90_spill]] %s5682_s22 }
  0x15   :  { %28 = vsyncpa [#allocation8], 0 }
  0x16   :  { %30 = vsyncpa [#allocation8 + $0x1], 0 }
  0x17   :  { %31 = vsyncpa [#allocation11], 0 }
  0x18   :  { %32 = vsyncpa [#allocation14], 0 }
  0x19   :  { %33 = vsyncpa [#allocation17], 0 }
  0x1a   :  { %35 = vsyncpa [#allocation17 + $0x1], 0 }
  0x1b   :  { %36 = vsyncpa [#allocation20], 0 }
  0x1c   :  { %38 = vsyncpa [#allocation20 + $0x1], 0 }
  0x1d   :  { %39 = vsyncpa [#allocation23], 0 }
  0x1e   :  { %41 = vsyncpa [#allocation23 + $0x1], 0 }
  0x1f   :  { %42 = vsyncpa [#allocation26], 0 }
  0x20   :  { %44 = vsyncpa [#allocation26 + $0x1], 0 }
  0x21   :  { %45 = vsyncpa [#allocation29], 0 }
  0x22   :  { %47 = vsyncpa [#allocation29 + $0x1], 0 }
  0x23   :  { %48 = vsyncpa [#allocation32], 0 }
  0x24   :  { %50 = vsyncpa [#allocation32 + $0x1], 0 }
  0x25   :  { %51 = vsyncpa [#allocation35], 0 }
  0x26   :  { %53 = vsyncpa [#allocation35 + $0x1], 0 }
  0x27   :  { %54 = vsyncpa [#allocation38], 0 }
  0x28   :  { %56 = vsyncpa [#allocation38 + $0x1], 0 }
  0x29   :  { %57 = vsyncpa [#allocation9], 0 }
  0x2a   :  { %59 = vsyncpa [#allocation9 + $0x1], 0 }
  0x2b   :  { %60 = vsyncpa [#allocation42], 0 }
  0x2c   :  { %62 = vsyncpa [#allocation42 + $0x1], 0  ;;  %s4553_s3 = smov 0   ;;  %s4555_s28 = smov 0  }
  0x2d   :  { %s4557_s29 = smov 0   ;;  %s4559_s30 = smov 0  }
  0x2e   :  { %s4561_s4 = smov 0   ;;  %s4563_s0 = smov 0  }
  0x2f   :  { %s4565_s23 = smov 0   ;;  %s4567_s1 = smov 0  }
  0x30   :  { %s4569_s5 = smov 0   ;;  %s4571_s24 = smov 0  }
  0x31   :  { %s4573_s6 = smov 0  }
  0x32 LB: > { %5765 = sst [smem:[#allocation56_spill]] %s4363_s28  ;;  %s4609_s25 = sadd.s32 4294967295, %s4399_s6   ;;  %s4399_s6 = sphi %s4573_s6, %s68_s6   ;;  %s4395_s24 = sphi %s4571_s24, %s5876_s24   ;;  %s4391_s5 = sphi %s4569_s5, %s5875_s5   ;;  %s4387_s1 = sphi %s4567_s1, %s5874_s1   ;;  %s4383_s23 = sphi %s4565_s23, %s5873_s23   ;;  %s4379_s0 = sphi %s4563_s0, %s5872_s0   ;;  %s4375_s4 = sphi %s4561_s4, %s5871_s4   ;;  %s4371_s30 = sphi %s4559_s30, %s5865_s30   ;;  %s4367_s29 = sphi %s4557_s29, %s5870_s29   ;;  %s4363_s28 = sphi %s4555_s28, %s5869_s28   ;;  %s4359_s3 = sphi %s4553_s3, %s5863_s3  }
  0x33   : > { %5766 = sst [smem:[#allocation57_spill]] %s4371_s30  ;;  %s3083_s26 = sadd.s32 4294967294, %s4399_s6  }
  0x34   : > { %5767 = sst [smem:[#allocation58_spill]] %s4375_s4  ;;  %s77_s2 = sadd.s32 1, %s4391_s5 }
  0x35   : > { %5768 = sst [smem:[#allocation59_spill]] %s4383_s23  ;;  %s80_s27 = sadd.s32 1, %s4395_s24 }
  0x36   : > { %5769 = sst [smem:[#allocation60_spill]] %s4387_s1  ;;  %p78_p0 = scmp.ge.s32.totalorder %s77_s2, 2 }
  0x37   : > { %5770 = sst [smem:[#allocation61_spill]] %s4609_s25  ;;  %s87_s22 = sadd.s32 1, %s4379_s0 }
  0x38   : > { %p5700_p1 = scmp.ne.s32.totalorder %s4379_s0, %s4375_s4  ;;  %p95_p2 = scmp.eq.s32.totalorder %s4399_s6, 0 }
  0x39   : > { %s5878_s2 = smov (%p78_p0, %s77_s2), 0  ;;  %s5880_s27 = smov (!%p78_p0, %s80_s27), %s4395_s24 }
  0x3a   : > { %5771 = sst [smem:[#allocation62_spill]] %s5878_s2  ;;  %p4626_p3 = por %p95_p2, %p5700_p1 }
  0x3b   : > { %p5699_p4 = scmp.ne.s32.totalorder %s4375_s4, %s4371_s30  ;;  %p82_p5 = scmp.ge.s32.totalorder %s5880_s27, 2 }
  0x3c   : > { %s5772_s21 = scalar_select %p4626_p3, 1, 0 }
  0x3d   : > { %p5715_p6 = scmp.eq.s32.totalorder %s4609_s25, 0  ;;  %s194_s1 = ssub.s32 %s4391_s5, %s5878_s2 }
  0x3e   : > { %s197_s23 = sadd.s32 1, %s4367_s29  ;;  %s5882_s27 = smov (%p82_p5, %s5880_s27), 0 }
  0x3f   : > { %5773 = sst [smem:[#allocation63_spill]] %s5882_s27  ;;  %p4643_p7 = por %p5715_p6, %p5699_p4 }
  0x40   : > { %p195_p8 = scmp.eq.s32.totalorder %s194_s1, 0  ;;  %s84_s18 = ssub.s32 %s4395_s24, %s5882_s27 }
  0x41   : > { %s5774_s20 = scalar_select %p4643_p7, 1, 0 }
  0x42   : > { %p204_p9 = scmp.ne.s32.totalorder %s4367_s29, %s4363_s28  ;;  %p85_p10 = scmp.eq.s32.totalorder %s84_s18, 0 }
  0x43   : > { %5775 = sst [smem:[#allocation64_spill]] %s5774_s20  ;;  %p210_p11 = scmp.ne.s32.totalorder %s4363_s28, %s4359_s3 }
  0x44   : > { %s4654_s2 = scalar_select %p195_p8, %s4367_s29, %s197_s23  }
  0x45   : > { %s4657_s16 = scalar_select %p85_p10, %s4379_s0, %s87_s22  }
  0x46   : > { %5776 = sst [smem:[#allocation65_spill]] %s4654_s2  ;;  %p4661_p12 = por %p204_p9, %p95_p2 }
  0x47   : > { %5777 = sst [smem:[#allocation66_spill]] %s4657_s16  ;;  %p4667_p13 = por %p210_p11, %p5715_p6 }
  0x48   : > { %s5778_s14 = scalar_select %p4661_p12, 1, 0 }
  0x49   : > { %s5779_s12 = scalar_select %p4667_p13, 1, 0 }
  0x4a   : > { %p624_p0 = scmp.eq.s32.totalorder %s4609_s25, 3  ;;  %p630_p5 = scmp.eq.s32.totalorder %s3083_s26, 3 }
  0x4b   : > { %5780 = sst [smem:[#allocation67_spill]] %s5779_s12  ;;  %p3084_p4 = scmp.ge.s32.totalorder %s4399_s6, 1 }
  0x4c   : > { %p663_p1 = scmp.lt.s32.totalorder %s4399_s6, 5  ;;  %p5781_p7 = scmp.ne.s32.totalorder %s4379_s0, %s4375_s4 }
  0x4d   : > { %p5784_p8 = scmp.ne.s32.totalorder %s4375_s4, %s4371_s30  ;;  %s4401_s23 = smov [#allocation10]  }
  0x4e   : > { %p4677_p3 = por %p624_p0, %p5781_p7  ;;  %p4688_p2 = pnand %p3084_p4, %p663_p1 }
  0x4f   : > { %p4684_p10 = por %p630_p5, %p5784_p8  ;;  %s675_s1 = sshll.u32 %s4401_s23, 4  ;;  %s676_s1 = int_to_ptr.vmem [resolvable:$true] %s675_s1 }
  0x50   : > { %s5782_s18 = scalar_select %p4677_p3, 1, 0 }
  0x51   : > { %s5785_s22 = scalar_select %p4684_p10, 1, 0 }
  0x52   : > { %5783 = sst [smem:[#allocation68_spill]] %s5782_s18  ;;  %p3430_p9 = pneg %p4688_p2 }
  0x53   : > { %5786 = sst [smem:[#allocation69_spill]] %s5785_s22  ;;  %s4402_s27 = smov [#allocation13]  }
  0x54   : > { %s5787_s3 = scalar_select %p4688_p2, 1, 0 }
  0x55   : > { %p4696_p7 = pnand %p3430_p9, %p5715_p6  ;;  %s700_s16 = sshll.u32 %s4402_s27, 4  ;;  %s4700_s16 = int_to_ptr.vmem [resolvable:$true] %s700_s16 }
  0x56   : > { %5788 = sst [smem:[#allocation70_spill]] %s5787_s3  ;;  %s5790_s30 = sld [smem:[#allocation72_spill]] }
  0x57   : > { %p4710_p4 = pneg %p4696_p7 }
  0x5c   : > { %s5791_s18 = smov %s5790_s30  ;;  %s3617_s12 = scalar_lea.hbm %s5790_s30, 384 }
  0x5d   : > { %p3618_p1 = scmp.ne.s32.totalorder %s5791_s18, %s3617_s12  ;;  %p3624_p5 = scmp.lt.u32.totalorder %s3617_s12, %s5791_s18 }
  0x5f   : > { %p3620_p11 = pnand %p4710_p4, %p3618_p1 }
  0x61   : > { %p3621_p0 = pneg %p3620_p11 }
  0x63   : > { %p3626_p8 = pnand %p3624_p5, %p3621_p0 }
  0x65   : > { %3629 = shalt.err (!%p3626_p8)
}
  0x66   : > { %s3630_s30 = scalar_lea.vmem %s676_s1, 384  ;;  %p3638_p3 = scmp.lt.s32.totalorder %s676_s1, %s676_s1 }
  0x67   : > { %p3631_p9 = scmp.ne.s32.totalorder %s676_s1, %s3630_s30  ;;  %p3639_p13 = scmp.lt.s32.totalorder %s3630_s30, %s3630_s30 }
  0x69   : > { %p3633_p6 = pnand %p3631_p9, %p4710_p4  ;;  %p3640_p2 = por %p3639_p13, %p3638_p3 }
  0x6b   : > { %p3634_p10 = pneg %p3633_p6 }
  0x6d   : > { %p3641_p12 = pnand %p3640_p2, %p3634_p10 }
  0x6f   : > { %3644 = shalt.err (!%p3641_p12)
}
  0x70   : > { %s4403_s20 = smov 64   ;;  %s4404_s28 = smov 4  }
  0x71   : > { %3433 = dma.hbm_to_vmem [thread:$0]  (!%p4696_p7), %s5791_s18, 384, %s676_s1, [#allocation11], %s4403_s20, %s4403_s20, %s4404_s28  }
  0x72   : > { %s5793_s27 = sld [smem:[#allocation74_spill]] }
  0x78   : > { %s3645_s4 = scalar_lea.hbm %s5793_s27, 16 }
  0x79   : > { %p3646_p6 = scmp.ne.s32.totalorder %s5793_s27, %s3645_s4  ;;  %p3652_p13 = scmp.lt.u32.totalorder %s3645_s4, %s5793_s27 }
  0x7b   : > { %p3648_p3 = pnand %p3646_p6, %p4710_p4 }
  0x7d   : > { %p3649_p12 = pneg %p3648_p3 }
  0x7f   : > { %p3654_p10 = pnand %p3652_p13, %p3649_p12 }
  0x81   : > { %3657 = shalt.err (!%p3654_p10)
}
  0x82   : > { %s3658_s1 = scalar_lea.vmem %s4700_s16, 16  ;;  %s3665_s10 = scalar_lea.vmem %s4700_s16, 32 }
  0x83   : > { %p3659_p2 = scmp.ne.s32.totalorder %s4700_s16, %s3658_s1  ;;  %p3666_p0 = scmp.lt.s32.totalorder %s4700_s16, %s4700_s16 }
  0x84   : > { %p3667_p5 = scmp.lt.s32.totalorder %s3665_s10, %s3658_s1 }
  0x85   : > { %p3661_p1 = pnand %p3659_p2, %p4710_p4 }
  0x86   : > { %p3668_p8 = por %p3667_p5, %p3666_p0 }
  0x87   : > { %p3662_p11 = pneg %p3661_p1 }
  0x89   : > { %p3669_p9 = pnand %p3668_p8, %p3662_p11 }
  0x8b   : > { %3672 = shalt.err (!%p3669_p9)
}
  0x8c   : > { %3439 = dma.hbm_to_vmem [thread:$0]  (!%p4696_p7), %s5793_s27, 16, %s4700_s16, [#allocation14]  }
  0x8d   : > { %s4405_s3 = smov [#allocation12]   ;;  %s4406_s28 = smov [#allocation15]  }
  0x8e   : > { %s689_s20 = sshll.u32 %s4405_s3, 4  ;;  %s711_s25 = sshll.u32 %s4406_s28, 4  ;;  %s690_s20 = int_to_ptr.vmem [resolvable:$true] %s689_s20  ;;  %s712_s25 = int_to_ptr.vmem [resolvable:$true] %s711_s25 }
  0x8f   : > { %s5794_s22 = sld [smem:[#allocation73_spill]] }
  0x95   : > { %s3673_s30 = scalar_lea.hbm %s5794_s22, 128 }
  0x96   : > { %p3674_p6 = scmp.ne.s32.totalorder %s5794_s22, %s3673_s30  ;;  %p3680_p13 = scmp.lt.u32.totalorder %s3673_s30, %s5794_s22 }
  0x98   : > { %p3676_p3 = pnand %p3674_p6, %p4710_p4 }
  0x9a   : > { %p3677_p12 = pneg %p3676_p3 }
  0x9c   : > { %p3682_p10 = pnand %p3680_p13, %p3677_p12 }
  0x9e   : > { %3685 = shalt.err (!%p3682_p10)
}
  0x9f   : > { %s3686_s16 = scalar_lea.vmem %s690_s20, 128  ;;  %p3694_p0 = scmp.lt.s32.totalorder %s690_s20, %s690_s20 }
  0xa0   : > { %p3687_p2 = scmp.ne.s32.totalorder %s690_s20, %s3686_s16  ;;  %p3695_p5 = scmp.lt.s32.totalorder %s3686_s16, %s3686_s16 }
  0xa2   : > { %p3689_p1 = pnand %p3687_p2, %p4710_p4  ;;  %p3696_p8 = por %p3695_p5, %p3694_p0 }
  0xa4   : > { %p3690_p11 = pneg %p3689_p1 }
  0xa6   : > { %p3697_p9 = pnand %p3696_p8, %p3690_p11 }
  0xa8   : > { %3700 = shalt.err (!%p3697_p9)
}
  0xa9   : > { %3436 = dma.hbm_to_vmem [thread:$0]  (!%p4696_p7), %s5794_s22, 128, %s690_s20, [#allocation11]  }
  0xaa   : > { %s5795_s12 = sld [smem:[#allocation75_spill]] }
  0xb0   : > { %s3701_s2 = scalar_lea.hbm %s5795_s12, 16 }
  0xb1   : > { %p3702_p6 = scmp.ne.s32.totalorder %s5795_s12, %s3701_s2  ;;  %p3708_p13 = scmp.lt.u32.totalorder %s3701_s2, %s5795_s12 }
  0xb3   : > { %p3704_p3 = pnand %p3702_p6, %p4710_p4 }
  0xb5   : > { %p3705_p12 = pneg %p3704_p3 }
  0xb7   : > { %p3710_p10 = pnand %p3708_p13, %p3705_p12 }
  0xb9   : > { %3713 = shalt.err (!%p3710_p10)
}
  0xba   : > { %s3714_s16 = scalar_lea.vmem %s712_s25, 16  ;;  %s3721_s20 = scalar_lea.vmem %s712_s25, 32 }
  0xbb   : > { %p3715_p2 = scmp.ne.s32.totalorder %s712_s25, %s3714_s16  ;;  %p3722_p0 = scmp.lt.s32.totalorder %s712_s25, %s712_s25 }
  0xbc   : > { %p3723_p5 = scmp.lt.s32.totalorder %s3721_s20, %s3714_s16 }
  0xbd   : > { %p3717_p1 = pnand %p3715_p2, %p4710_p4 }
  0xbe   : > { %p3724_p8 = por %p3723_p5, %p3722_p0 }
  0xbf   : > { %p3718_p11 = pneg %p3717_p1 }
  0xc1   : > { %p3725_p9 = pnand %p3724_p8, %p3718_p11 }
  0xc3   : > { %3728 = shalt.err (!%p3725_p9)
}
  0xc4   : > { %3442 = dma.hbm_to_vmem [thread:$0]  (!%p4696_p7), %s5795_s12, 16, %s712_s25, [#allocation14]  }
  0xc5   : > { %p3089_p6 = scmp.ge.s32.totalorder %s4399_s6, 4 }
  0xc6   : > { %s4788_s23 = sand.u32 (!%p3089_p6), 1, %s4399_s6   ;;  %s4791_s18 = sand.u32 (!%p3089_p6), 1, %s4367_s29  }
  0xc7   : > { %718 = sbr.rel (%p3089_p6) target bundleno = 664 (0x298), region = 32  ;;  %s4794_s28 = sshll.u32 (!%p3089_p6), %s4391_s5, 4 }
  0xc8   : > { %s743_s26 = scalar_lea.vmem (!%p3089_p6), [#allocation16], %s4791_s18  ;;  %s5796_s1 = sld [smem:[#allocation76_spill]] (!%p3089_p6) }
  0xc9   : > { %s750_s2 = sshll.u32 (!%p3089_p6), %s743_s26, 4  ;;  %s5727_s16 = scalar_lea.sflag (!%p3089_p6), [#allocation17], %s4788_s23  ;;  %s751_s2 = int_to_ptr.vmem [resolvable:$true] %s750_s2 }
  0xca   : > { %p5798_p4 = scmp.ne.s32.totalorder (!%p3089_p6), %s5778_s14, 0 }
  0xce   : > { %s5797_s10 = smov %s5796_s1  ;;  %s4801_s8 = scalar_lea.hbm %s5796_s1, %s4794_s28 }
  0xcf   : > { %s3729_s20 = scalar_lea.hbm %s4801_s8, 16  ;;  %s3733_s26 = scalar_lea.hbm %s5797_s10, 32 }
  0xd0   : > { %p3730_p7 = scmp.ne.s32.totalorder %s4801_s8, %s3729_s20  ;;  %p3734_p13 = scmp.lt.u32.totalorder %s4801_s8, %s5797_s10 }
  0xd1   : > { %p3735_p10 = scmp.lt.u32.totalorder %s3733_s26, %s3729_s20  ;;  %p3737_p1 = scmp.lt.u32.totalorder %s3729_s20, %s4801_s8 }
  0xd2   : > { %p3731_p3 = pnand %p3730_p7, %p5798_p4 }
  0xd3   : > { %p3736_p2 = por %p3735_p10, %p3734_p13 }
  0xd4   : > { %p3732_p12 = pneg %p3731_p3 }
  0xd5   : > { %p3738_p11 = por %p3737_p1, %p3736_p2 }
  0xd7   : > { %p3739_p0 = pnand %p3738_p11, %p3732_p12 }
  0xd9   : > { %3742 = shalt.err (!%p3739_p0)
}
  0xda   : > { %s3743_s30 = scalar_lea.vmem %s751_s2, 16  ;;  %s4407_s25 = smov [#allocation16]  }
  0xdb   : > { %p3744_p5 = scmp.ne.s32.totalorder %s751_s2, %s3743_s30  ;;  %s3747_s1 = sshll.u32 %s4407_s25, 4  ;;  %s3748_s1 = int_to_ptr.vmem [resolvable:$false] %s3747_s1 }
  0xdc   : > { %s3749_s4 = scalar_lea.vmem %s3748_s1, 32  ;;  %p3750_p6 = scmp.lt.s32.totalorder %s751_s2, %s3748_s1 }
  0xdd   : > { %p3745_p8 = pnand %p3744_p5, %p5798_p4  ;;  %p3751_p7 = scmp.lt.s32.totalorder %s3749_s4, %s3743_s30 }
  0xdf   : > { %p3746_p9 = pneg %p3745_p8  ;;  %p3752_p3 = por %p3751_p7, %p3750_p6 }
  0xe1   : > { %p3753_p10 = pnand %p3752_p3, %p3746_p9 }
  0xe3   : > { %3756 = shalt.err (!%p3753_p10)
}
  0xe4   : > { %3385 = dma.hbm_to_vmem [thread:$0]  (%p5798_p4), %s4801_s8, 16, %s751_s2, %s5727_s16  }
  0xe5   : > { %s4824_s22 = sshll.u32 %s4791_s18, 4  ;;  %s4827_s12 = sshll.u32 %s4391_s5, 8 }
  0xe6   : > { %s5799_s7 = sld [smem:[#allocation78_spill]]  ;;  %s778_s30 = scalar_lea.vmem [#allocation19], %s4824_s22 }
  0xe7   : > { %s785_s25 = sshll.u32 %s778_s30, 4  ;;  %s5729_s2 = scalar_lea.sflag [#allocation20], %s4788_s23  ;;  %s4836_s25 = int_to_ptr.vmem [resolvable:$true] %s785_s25 }
  0xec   : > { %s4833_s26 = scalar_lea.hbm %s5799_s7, %s4827_s12  ;;  %s3761_s20 = scalar_lea.hbm %s5799_s7, 512 }
  0xed   : > { %s3757_s8 = scalar_lea.hbm %s4833_s26, 256  ;;  %p3762_p1 = scmp.lt.u32.totalorder %s4833_s26, %s5799_s7 }
  0xee   : > { %p3758_p12 = scmp.ne.s32.totalorder %s4833_s26, %s3757_s8  ;;  %p3763_p11 = scmp.lt.u32.totalorder %s3761_s20, %s3757_s8 }
  0xef   : > { %p3765_p5 = scmp.lt.u32.totalorder %s3757_s8, %s4833_s26 }
  0xf0   : > { %p3759_p13 = pnand %p3758_p12, %p5798_p4  ;;  %p3764_p0 = por %p3763_p11, %p3762_p1 }
  0xf2   : > { %p3760_p2 = pneg %p3759_p13  ;;  %p3766_p8 = por %p3765_p5, %p3764_p0 }
  0xf4   : > { %p3767_p9 = pnand %p3766_p8, %p3760_p2 }
  0xf6   : > { %3770 = shalt.err (!%p3767_p9)
}
  0xf7   : > { %s3771_s30 = scalar_lea.vmem %s4836_s25, 256  ;;  %s4408_s1 = smov [#allocation19]  }
  0xf8   : > { %p3772_p6 = scmp.ne.s32.totalorder %s4836_s25, %s3771_s30  ;;  %s3775_s4 = sshll.u32 %s4408_s1, 4  ;;  %s3776_s4 = int_to_ptr.vmem [resolvable:$false] %s3775_s4 }
  0xf9   : > { %s3777_s16 = scalar_lea.vmem %s3776_s4, 512  ;;  %p3778_p10 = scmp.lt.s32.totalorder %s4836_s25, %s3776_s4 }
  0xfa   : > { %p3773_p7 = pnand %p3772_p6, %p5798_p4  ;;  %p3779_p12 = scmp.lt.s32.totalorder %s3777_s16, %s3771_s30 }
  0xfc   : > { %p3774_p3 = pneg %p3773_p7  ;;  %p3780_p13 = por %p3779_p12, %p3778_p10 }
  0xfe   : > { %p3781_p1 = pnand %p3780_p13, %p3774_p3 }
 0x100   : > { %3784 = shalt.err (!%p3781_p1)
}
 0x101   : > { %s5733_s8 = smov 64   ;;  %s4410_s20 = smov 4  }
 0x102   : > { %3387 = dma.hbm_to_vmem [thread:$0]  (%p5798_p4), %s4833_s26, 256, %s4836_s25, %s5729_s2, %s5733_s8, %s5733_s8, %s4410_s20  }
 0x103   : > { %s5800_s9 = sld [smem:[#allocation80_spill]]  ;;  %s816_s4 = scalar_lea.vmem [#allocation22], %s4824_s22 }
 0x104   : > { %s823_s16 = sshll.u32 %s816_s4, 4  ;;  %s5730_s7 = scalar_lea.sflag [#allocation23], %s4788_s23  ;;  %s4872_s16 = int_to_ptr.vmem [resolvable:$true] %s823_s16 }
 0x109   : > { %s4869_s1 = scalar_lea.hbm %s5800_s9, %s4827_s12  ;;  %s3789_s3 = scalar_lea.hbm %s5800_s9, 512 }
 0x10a   : > { %s3785_s10 = scalar_lea.hbm %s4869_s1, 256  ;;  %p3790_p5 = scmp.lt.u32.totalorder %s4869_s1, %s5800_s9 }
 0x10b   : > { %p3786_p2 = scmp.ne.s32.totalorder %s4869_s1, %s3785_s10  ;;  %p3791_p8 = scmp.lt.u32.totalorder %s3789_s3, %s3785_s10 }
 0x10c   : > { %p3793_p6 = scmp.lt.u32.totalorder %s3785_s10, %s4869_s1 }
 0x10d   : > { %p3787_p11 = pnand %p3786_p2, %p5798_p4  ;;  %p3792_p9 = por %p3791_p8, %p3790_p5 }
 0x10f   : > { %p3788_p0 = pneg %p3787_p11  ;;  %p3794_p7 = por %p3793_p6, %p3792_p9 }
 0x111   : > { %p3795_p3 = pnand %p3794_p7, %p3788_p0 }
 0x113   : > { %3798 = shalt.err (!%p3795_p3)
}
 0x114   : > { %s3799_s4 = scalar_lea.vmem %s4872_s16, 256  ;;  %s4411_s26 = smov [#allocation22]  }
 0x115   : > { %p3800_p10 = scmp.ne.s32.totalorder %s4872_s16, %s3799_s4  ;;  %s3803_s25 = sshll.u32 %s4411_s26, 4  ;;  %s3804_s25 = int_to_ptr.vmem [resolvable:$false] %s3803_s25 }
 0x116   : > { %s3805_s2 = scalar_lea.vmem %s3804_s25, 512  ;;  %p3806_p1 = scmp.lt.s32.totalorder %s4872_s16, %s3804_s25 }
 0x117   : > { %p3801_p12 = pnand %p3800_p10, %p5798_p4  ;;  %p3807_p2 = scmp.lt.s32.totalorder %s3805_s2, %s3799_s4 }
 0x119   : > { %p3802_p13 = pneg %p3801_p12  ;;  %p3808_p11 = por %p3807_p2, %p3806_p1 }
 0x11b   : > { %p3809_p5 = pnand %p3808_p11, %p3802_p13 }
 0x11d   : > { %3812 = shalt.err (!%p3809_p5)
}
 0x11e   : > { %3389 = dma.hbm_to_vmem [thread:$0]  (%p5798_p4), %s4869_s1, 256, %s4872_s16, %s5730_s7, %s5733_s8, %s5733_s8, %s4410_s20  }
 0x11f   : > { %s5801_s11 = sld [smem:[#allocation82_spill]]  ;;  %s854_s4 = scalar_lea.vmem [#allocation25], %s4824_s22 }
 0x120   : > { %s861_s26 = sshll.u32 %s854_s4, 4  ;;  %s5731_s25 = scalar_lea.sflag [#allocation26], %s4788_s23  ;;  %s4908_s26 = int_to_ptr.vmem [resolvable:$true] %s861_s26 }
 0x125   : > { %s4905_s30 = scalar_lea.hbm %s5801_s11, %s4827_s12  ;;  %s3817_s10 = scalar_lea.hbm %s5801_s11, 512 }
 0x126   : > { %s3813_s2 = scalar_lea.hbm %s4905_s30, 256  ;;  %p3818_p6 = scmp.lt.u32.totalorder %s4905_s30, %s5801_s11 }
 0x127   : > { %p3814_p0 = scmp.ne.s32.totalorder %s4905_s30, %s3813_s2  ;;  %p3819_p7 = scmp.lt.u32.totalorder %s3817_s10, %s3813_s2 }
 0x128   : > { %p3821_p10 = scmp.lt.u32.totalorder %s3813_s2, %s4905_s30 }
 0x129   : > { %p3815_p8 = pnand %p3814_p0, %p5798_p4  ;;  %p3820_p3 = por %p3819_p7, %p3818_p6 }
 0x12b   : > { %p3816_p9 = pneg %p3815_p8  ;;  %p3822_p12 = por %p3821_p10, %p3820_p3 }
 0x12d   : > { %p3823_p13 = pnand %p3822_p12, %p3816_p9 }
 0x12f   : > { %3826 = shalt.err (!%p3823_p13)
}
 0x130   : > { %s3827_s4 = scalar_lea.vmem %s4908_s26, 256  ;;  %s4412_s1 = smov [#allocation25]  }
 0x131   : > { %p3828_p1 = scmp.ne.s32.totalorder %s4908_s26, %s3827_s4  ;;  %s3831_s16 = sshll.u32 %s4412_s1, 4  ;;  %s3832_s16 = int_to_ptr.vmem [resolvable:$false] %s3831_s16 }
 0x132   : > { %s3833_s7 = scalar_lea.vmem %s3832_s16, 512  ;;  %p3834_p5 = scmp.lt.s32.totalorder %s4908_s26, %s3832_s16 }
 0x133   : > { %p3829_p2 = pnand %p3828_p1, %p5798_p4  ;;  %p3835_p0 = scmp.lt.s32.totalorder %s3833_s7, %s3827_s4 }
 0x135   : > { %p3830_p11 = pneg %p3829_p2  ;;  %p3836_p8 = por %p3835_p0, %p3834_p5 }
 0x137   : > { %p3837_p6 = pnand %p3836_p8, %p3830_p11 }
 0x139   : > { %3840 = shalt.err (!%p3837_p6)
}
 0x13a   : > { %3391 = dma.hbm_to_vmem [thread:$0]  (%p5798_p4), %s4905_s30, 256, %s4908_s26, %s5731_s25, %s5733_s8, %s5733_s8, %s4410_s20  }
 0x13b   : > { %s5802_s13 = sld [smem:[#allocation84_spill]]  ;;  %s892_s4 = scalar_lea.vmem [#allocation28], %s4824_s22 }
 0x13c   : > { %s899_s1 = sshll.u32 %s892_s4, 4  ;;  %s5732_s16 = scalar_lea.sflag [#allocation29], %s4788_s23  ;;  %s4944_s1 = int_to_ptr.vmem [resolvable:$true] %s899_s1 }
 0x141   : > { %s4941_s3 = scalar_lea.hbm %s5802_s13, %s4827_s12  ;;  %s3845_s2 = scalar_lea.hbm %s5802_s13, 512 }
 0x142   : > { %s3841_s7 = scalar_lea.hbm %s4941_s3, 256  ;;  %p3846_p10 = scmp.lt.u32.totalorder %s4941_s3, %s5802_s13 }
 0x143   : > { %p3842_p9 = scmp.ne.s32.totalorder %s4941_s3, %s3841_s7  ;;  %p3847_p12 = scmp.lt.u32.totalorder %s3845_s2, %s3841_s7 }
 0x144   : > { %p3849_p1 = scmp.lt.u32.totalorder %s3841_s7, %s4941_s3 }
 0x145   : > { %p3843_p7 = pnand %p3842_p9, %p5798_p4  ;;  %p3848_p13 = por %p3847_p12, %p3846_p10 }
 0x147   : > { %p3844_p3 = pneg %p3843_p7  ;;  %p3850_p2 = por %p3849_p1, %p3848_p13 }
 0x149   : > { %p3851_p11 = pnand %p3850_p2, %p3844_p3 }
 0x14b   : > { %3854 = shalt.err (!%p3851_p11)
}
 0x14c   : > { %s3855_s4 = scalar_lea.vmem %s4944_s1, 256  ;;  %s4413_s30 = smov [#allocation28]  }
 0x14d   : > { %p3856_p5 = scmp.ne.s32.totalorder %s4944_s1, %s3855_s4  ;;  %s3859_s26 = sshll.u32 %s4413_s30, 4  ;;  %s3860_s26 = int_to_ptr.vmem [resolvable:$false] %s3859_s26 }
 0x14e   : > { %s3861_s25 = scalar_lea.vmem %s3860_s26, 512  ;;  %p3862_p6 = scmp.lt.s32.totalorder %s4944_s1, %s3860_s26 }
 0x14f   : > { %p3857_p0 = pnand %p3856_p5, %p5798_p4  ;;  %p3863_p9 = scmp.lt.s32.totalorder %s3861_s25, %s3855_s4 }
 0x151   : > { %p3858_p8 = pneg %p3857_p0  ;;  %p3864_p7 = por %p3863_p9, %p3862_p6 }
 0x153   : > { %p3865_p10 = pnand %p3864_p7, %p3858_p8 }
 0x155   : > { %3868 = shalt.err (!%p3865_p10)
}
 0x156   : > { %3393 = dma.hbm_to_vmem [thread:$0]  (%p5798_p4), %s4941_s3, 256, %s4944_s1, %s5732_s16, %s5733_s8, %s5733_s8, %s4410_s20  }
 0x157   : > { %s4977_s10 = scalar_lea.hbm %s5675_s15, %s4794_s28  ;;  %s929_s4 = scalar_lea.vmem [#allocation31], %s4791_s18 }
 0x158   : > { %s936_s30 = sshll.u32 %s929_s4, 4  ;;  %s5735_s26 = scalar_lea.sflag [#allocation32], %s4788_s23  ;;  %s937_s30 = int_to_ptr.vmem [resolvable:$true] %s936_s30 }
 0x159   : > { %s3869_s25 = scalar_lea.hbm %s4977_s10, 16  ;;  %s3873_s1 = scalar_lea.hbm %s5675_s15, 32 }
 0x15a   : > { %p3870_p3 = scmp.ne.s32.totalorder %s4977_s10, %s3869_s25  ;;  %p3874_p1 = scmp.lt.u32.totalorder %s4977_s10, %s5675_s15 }
 0x15b   : > { %p3875_p2 = scmp.lt.u32.totalorder %s3873_s1, %s3869_s25  ;;  %p3877_p5 = scmp.lt.u32.totalorder %s3869_s25, %s4977_s10 }
 0x15c   : > { %p3871_p12 = pnand %p3870_p3, %p5798_p4 }
 0x15d   : > { %p3876_p11 = por %p3875_p2, %p3874_p1 }
 0x15e   : > { %p3872_p13 = pneg %p3871_p12 }
 0x15f   : > { %p3878_p0 = por %p3877_p5, %p3876_p11 }
 0x161   : > { %p3879_p8 = pnand %p3878_p0, %p3872_p13 }
 0x163   : > { %3882 = shalt.err (!%p3879_p8)
}
 0x164   : > { %s3883_s4 = scalar_lea.vmem %s937_s30, 16  ;;  %s4414_s16 = smov [#allocation31]  }
 0x165   : > { %p3884_p6 = scmp.ne.s32.totalorder %s937_s30, %s3883_s4  ;;  %s3887_s8 = sshll.u32 %s4414_s16, 4  ;;  %s3888_s8 = int_to_ptr.vmem [resolvable:$false] %s3887_s8 }
 0x166   : > { %s3889_s9 = scalar_lea.vmem %s3888_s8, 32  ;;  %p3890_p10 = scmp.lt.s32.totalorder %s937_s30, %s3888_s8 }
 0x167   : > { %p3885_p9 = pnand %p3884_p6, %p5798_p4  ;;  %p3891_p3 = scmp.lt.s32.totalorder %s3889_s9, %s3883_s4 }
 0x169   : > { %p3886_p7 = pneg %p3885_p9  ;;  %p3892_p12 = por %p3891_p3, %p3890_p10 }
 0x16b   : > { %p3893_p1 = pnand %p3892_p12, %p3886_p7 }
 0x16d   : > { %3896 = shalt.err (!%p3893_p1)
}
 0x16e   : > { %3395 = dma.hbm_to_vmem [thread:$0]  (%p5798_p4), %s4977_s10, 16, %s937_s30, %s5735_s26  }
 0x16f   : > { %s5004_s3 = scalar_lea.hbm %s5677_s17, %s4827_s12  ;;  %s964_s8 = scalar_lea.vmem [#allocation34], %s4824_s22 }
 0x170   : > { %s971_s1 = sshll.u32 %s964_s8, 4  ;;  %s3116_s7 = sshll.u32 %s4791_s18, 6  ;;  %s5007_s1 = int_to_ptr.vmem [resolvable:$true] %s971_s1 }
 0x171   : > { %s5736_s2 = scalar_lea.sflag [#allocation35], %s4788_s23  ;;  %s3897_s4 = scalar_lea.hbm %s5004_s3, 256 }
 0x172   : > { %p3898_p13 = scmp.ne.s32.totalorder %s5004_s3, %s3897_s4  ;;  %s3901_s12 = scalar_lea.hbm %s5677_s17, 512 }
 0x173   : > { %p3902_p5 = scmp.lt.u32.totalorder %s5004_s3, %s5677_s17  ;;  %p3903_p0 = scmp.lt.u32.totalorder %s3901_s12, %s3897_s4 }
 0x174   : > { %p3899_p2 = pnand %p3898_p13, %p5798_p4  ;;  %p3905_p6 = scmp.lt.u32.totalorder %s3897_s4, %s5004_s3 }
 0x175   : > { %p3904_p8 = por %p3903_p0, %p3902_p5 }
 0x176   : > { %p3900_p11 = pneg %p3899_p2 }
 0x177   : > { %p3906_p9 = por %p3905_p6, %p3904_p8 }
 0x179   : > { %p3907_p7 = pnand %p3906_p9, %p3900_p11 }
 0x17b   : > { %3910 = shalt.err (!%p3907_p7)
}
 0x17c   : > { %s3911_s22 = scalar_lea.vmem %s5007_s1, 256  ;;  %s4415_s16 = smov [#allocation34]  }
 0x17d   : > { %p3912_p10 = scmp.ne.s32.totalorder %s5007_s1, %s3911_s22  ;;  %s3915_s8 = sshll.u32 %s4415_s16, 4  ;;  %s3916_s8 = int_to_ptr.vmem [resolvable:$false] %s3915_s8 }
 0x17e   : > { %s3917_s10 = scalar_lea.vmem %s3916_s8, 512  ;;  %p3918_p1 = scmp.lt.s32.totalorder %s5007_s1, %s3916_s8 }
 0x17f   : > { %p3913_p3 = pnand %p3912_p10, %p5798_p4  ;;  %p3919_p13 = scmp.lt.s32.totalorder %s3917_s10, %s3911_s22 }
 0x181   : > { %p3914_p12 = pneg %p3913_p3  ;;  %p3920_p2 = por %p3919_p13, %p3918_p1 }
 0x183   : > { %p3921_p5 = pnand %p3920_p2, %p3914_p12 }
 0x185   : > { %3924 = shalt.err (!%p3921_p5)
}
 0x186   : > { %s5803_s4 = smov 64   ;;  %s3203_s30 = sshll.u32 %s4391_s5, 10 }
 0x187   : > { %3397 = dma.hbm_to_vmem [thread:$0]  (%p5798_p4), %s5004_s3, 256, %s5007_s1, %s5736_s2, %s5803_s4, %s5803_s4, %s4410_s20  }
 0x188   : > { %s5041_s25 = scalar_lea.hbm %s5679_s19, %s3203_s30  ;;  %s1002_s22 = scalar_lea.vmem [#allocation37], %s3116_s7 }
 0x189   : > { %s1009_s16 = sshll.u32 %s1002_s22, 4  ;;  %s722_s8 = sand.u32 1, %s4379_s0   ;;  %s5045_s16 = int_to_ptr.vmem [resolvable:$true] %s1009_s16 }
 0x18a   : > { %s5738_s10 = scalar_lea.sflag [#allocation38], %s4788_s23  ;;  %s3925_s26 = scalar_lea.hbm %s5041_s25, 1024 }
 0x18b   : > { %p3926_p11 = scmp.ne.s32.totalorder %s5041_s25, %s3925_s26  ;;  %s3929_s30 = scalar_lea.hbm %s5679_s19, 2048 }
 0x18c   : > { %p3930_p6 = scmp.lt.u32.totalorder %s5041_s25, %s5679_s19  ;;  %p3931_p9 = scmp.lt.u32.totalorder %s3929_s30, %s3925_s26 }
 0x18d   : > { %p3927_p0 = pnand %p3926_p11, %p5798_p4  ;;  %p3933_p10 = scmp.lt.u32.totalorder %s3925_s26, %s5041_s25 }
 0x18e   : > { %p3932_p7 = por %p3931_p9, %p3930_p6 }
 0x18f   : > { %p3928_p8 = pneg %p3927_p0 }
 0x190   : > { %p3934_p3 = por %p3933_p10, %p3932_p7 }
 0x192   : > { %p3935_p12 = pnand %p3934_p3, %p3928_p8 }
 0x194   : > { %3938 = shalt.err (!%p3935_p12)
}
 0x195   : > { %s3939_s7 = scalar_lea.vmem %s5045_s16, 1024  ;;  %s4416_s22 = smov [#allocation37]  }
 0x196   : > { %p3940_p1 = scmp.ne.s32.totalorder %s5045_s16, %s3939_s7  ;;  %s3943_s3 = sshll.u32 %s4416_s22, 4  ;;  %s3944_s3 = int_to_ptr.vmem [resolvable:$false] %s3943_s3 }
 0x197   : > { %s3945_s1 = scalar_lea.vmem %s3944_s3, 2048  ;;  %p3946_p5 = scmp.lt.s32.totalorder %s5045_s16, %s3944_s3 }
 0x198   : > { %p3941_p13 = pnand %p3940_p1, %p5798_p4  ;;  %p3947_p11 = scmp.lt.s32.totalorder %s3945_s1, %s3939_s7 }
 0x19a   : > { %p3942_p2 = pneg %p3941_p13  ;;  %p3948_p0 = por %p3947_p11, %p3946_p5 }
 0x19c   : > { %p3949_p6 = pnand %p3948_p0, %p3942_p2 }
 0x19e   : > { %3952 = shalt.err (!%p3949_p6)
}
 0x19f   : > { %3399 = dma.hbm_to_vmem [thread:$0]  (%p5798_p4), %s5041_s25, 1024, %s5045_s16, %s5738_s10, %s5803_s4, %s5803_s4, %s4410_s20  }
 0x1a0   : > { %s3090_s26 = sshll.u32 %s722_s8, 3  ;;  %s3091_s30 = sshll.u32 %s4395_s24, 7 }
 0x1a1   : > { %s5804_s7 = sld [smem:[#allocation71_spill]]  ;;  %s726_s3 = scalar_lea.vmem [#allocation7], %s3090_s26 }
 0x1a2   : > { %s733_s1 = sshll.u32 %s726_s3, 4  ;;  %s723_s2 = scalar_lea.sflag [#allocation8], %s722_s8  ;;  %s734_s1 = int_to_ptr.vmem [resolvable:$true] %s733_s1 }
 0x1a3   : > { %p5805_p9 = scmp.ne.s32.totalorder %s5772_s21, 0 }
 0x1a7   : > { %s5081_s22 = scalar_lea.hbm %s5804_s7, %s3091_s30  ;;  %s3957_s25 = scalar_lea.hbm %s5804_s7, 256 }
 0x1a8   : > { %s3953_s11 = scalar_lea.hbm %s5081_s22, 128  ;;  %p3958_p3 = scmp.lt.u32.totalorder %s5081_s22, %s5804_s7 }
 0x1a9   : > { %p3954_p8 = scmp.ne.s32.totalorder %s5081_s22, %s3953_s11  ;;  %p3959_p12 = scmp.lt.u32.totalorder %s3957_s25, %s3953_s11 }
 0x1aa   : > { %p3961_p13 = scmp.lt.u32.totalorder %s3953_s11, %s5081_s22 }
 0x1ab   : > { %p3955_p7 = pnand %p3954_p8, %p5805_p9  ;;  %p3960_p1 = por %p3959_p12, %p3958_p3 }
 0x1ad   : > { %p3956_p10 = pneg %p3955_p7  ;;  %p3962_p2 = por %p3961_p13, %p3960_p1 }
 0x1af   : > { %p3963_p5 = pnand %p3962_p2, %p3956_p10 }
 0x1b1   : > { %3966 = shalt.err (!%p3963_p5)
}
 0x1b2   : > { %s3967_s8 = scalar_lea.vmem %s734_s1, 128  ;;  %s4417_s26 = smov [#allocation7]  }
 0x1b3   : > { %p3968_p11 = scmp.ne.s32.totalorder %s734_s1, %s3967_s8  ;;  %s3971_s12 = sshll.u32 %s4417_s26, 4  ;;  %s3972_s12 = int_to_ptr.vmem [resolvable:$false] %s3971_s12 }
 0x1b4   : > { %s3973_s9 = scalar_lea.vmem %s3972_s12, 256  ;;  %p3974_p8 = scmp.lt.s32.totalorder %s734_s1, %s3972_s12 }
 0x1b5   : > { %p3969_p0 = pnand %p3968_p11, %p5805_p9  ;;  %p3975_p7 = scmp.lt.s32.totalorder %s3973_s9, %s3967_s8 }
 0x1b7   : > { %p3970_p6 = pneg %p3969_p0  ;;  %p3976_p4 = por %p3975_p7, %p3974_p8 }
 0x1b9   : > { %p3977_p3 = pnand %p3976_p4, %p3970_p6 }
 0x1bb   : > { %3980 = shalt.err (!%p3977_p3)
}
 0x1bc   : > { %3384 = dma.hbm_to_vmem [thread:$0]  (%p5805_p9), %s5081_s22, 128, %s734_s1, %s723_s2  }
 0x1bd   : > { %s5806_s20 = sld [smem:[#allocation77_spill]]  ;;  %s760_s25 = scalar_lea.vmem [#allocation18], %s4791_s18 }
 0x1be   : > { %s767_s16 = sshll.u32 %s760_s25, 4  ;;  %p5807_p10 = scmp.ne.s32.totalorder %s5778_s14, 0  ;;  %s768_s16 = int_to_ptr.vmem [resolvable:$true] %s767_s16 }
 0x1c3   : > { %s5106_s4 = scalar_lea.hbm %s5806_s20, %s4794_s28  ;;  %s3985_s2 = scalar_lea.hbm %s5806_s20, 32 }
 0x1c4   : > { %s3981_s30 = scalar_lea.hbm %s5106_s4, 16  ;;  %p3986_p9 = scmp.lt.u32.totalorder %s5106_s4, %s5806_s20 }
 0x1c5   : > { %p3982_p4 = scmp.ne.s32.totalorder %s5106_s4, %s3981_s30  ;;  %p3987_p13 = scmp.lt.u32.totalorder %s3985_s2, %s3981_s30 }
 0x1c6   : > { %p3989_p5 = scmp.lt.u32.totalorder %s3981_s30, %s5106_s4 }
 0x1c7   : > { %p3983_p12 = pnand %p3982_p4, %p5807_p10  ;;  %p3988_p2 = por %p3987_p13, %p3986_p9 }
 0x1c9   : > { %p3984_p1 = pneg %p3983_p12  ;;  %p3990_p11 = por %p3989_p5, %p3988_p2 }
 0x1cb   : > { %p3991_p0 = pnand %p3990_p11, %p3984_p1 }
 0x1cd   : > { %3994 = shalt.err (!%p3991_p0)
}
 0x1ce   : > { %s3995_s26 = scalar_lea.vmem %s768_s16, 16  ;;  %s4418_s12 = smov [#allocation18]  }
 0x1cf   : > { %p3996_p6 = scmp.ne.s32.totalorder %s768_s16, %s3995_s26  ;;  %s3999_s9 = sshll.u32 %s4418_s12, 4  ;;  %s4000_s9 = int_to_ptr.vmem [resolvable:$false] %s3999_s9 }
 0x1d0   : > { %s4001_s11 = scalar_lea.vmem %s4000_s9, 32  ;;  %p4002_p3 = scmp.lt.s32.totalorder %s768_s16, %s4000_s9 }
 0x1d1   : > { %p3997_p8 = pnand %p3996_p6, %p5807_p10  ;;  %p4003_p4 = scmp.lt.s32.totalorder %s4001_s11, %s3995_s26 }
 0x1d3   : > { %p3998_p7 = pneg %p3997_p8  ;;  %p4004_p12 = por %p4003_p4, %p4002_p3 }
 0x1d5   : > { %p4005_p9 = pnand %p4004_p12, %p3998_p7 }
 0x1d7   : > { %4008 = shalt.err (!%p4005_p9)
}
 0x1d8   : > { %s5808_s3 = scalar_lea.sflag [#allocation17], %s4788_s23  ;;  %s5809_s21 = sld [smem:[#allocation79_spill]] }
 0x1d9   : > { %3386 = dma.hbm_to_vmem [thread:$0]  (%p5807_p10), %s5106_s4, 16, %s768_s16, %s5808_s3  }
 0x1da   : > { %s798_s2 = scalar_lea.vmem [#allocation21], %s4791_s18 }
 0x1db   : > { %s805_s22 = sshll.u32 %s798_s2, 4  ;;  %s806_s22 = int_to_ptr.vmem [resolvable:$true] %s805_s22 }
 0x1de   : > { %s5132_s8 = scalar_lea.hbm %s5809_s21, %s4794_s28  ;;  %s4013_s4 = scalar_lea.hbm %s5809_s21, 32 }
 0x1df   : > { %s4009_s1 = scalar_lea.hbm %s5132_s8, 16  ;;  %p4014_p5 = scmp.lt.u32.totalorder %s5132_s8, %s5809_s21 }
 0x1e0   : > { %p4010_p1 = scmp.ne.s32.totalorder %s5132_s8, %s4009_s1  ;;  %p4015_p11 = scmp.lt.u32.totalorder %s4013_s4, %s4009_s1 }
 0x1e1   : > { %p4017_p6 = scmp.lt.u32.totalorder %s4009_s1, %s5132_s8 }
 0x1e2   : > { %p4011_p13 = pnand %p4010_p1, %p5807_p10  ;;  %p4016_p0 = por %p4015_p11, %p4014_p5 }
 0x1e4   : > { %p4012_p2 = pneg %p4011_p13  ;;  %p4018_p8 = por %p4017_p6, %p4016_p0 }
 0x1e6   : > { %p4019_p7 = pnand %p4018_p8, %p4012_p2 }
 0x1e8   : > { %4022 = shalt.err (!%p4019_p7)
}
 0x1e9   : > { %s4023_s11 = scalar_lea.vmem %s806_s22, 16  ;;  %s4419_s3 = smov [#allocation21]  }
 0x1ea   : > { %p4024_p3 = scmp.ne.s32.totalorder %s806_s22, %s4023_s11  ;;  %s4027_s25 = sshll.u32 %s4419_s3, 4  ;;  %s4028_s25 = int_to_ptr.vmem [resolvable:$false] %s4027_s25 }
 0x1eb   : > { %s4029_s30 = scalar_lea.vmem %s4028_s25, 32  ;;  %p4030_p9 = scmp.lt.s32.totalorder %s806_s22, %s4028_s25 }
 0x1ec   : > { %p4025_p4 = pnand %p4024_p3, %p5807_p10  ;;  %p4031_p1 = scmp.lt.s32.totalorder %s4029_s30, %s4023_s11 }
 0x1ee   : > { %p4026_p12 = pneg %p4025_p4  ;;  %p4032_p13 = por %p4031_p1, %p4030_p9 }
 0x1f0   : > { %p4033_p5 = pnand %p4032_p13, %p4026_p12 }
 0x1f2   : > { %4036 = shalt.err (!%p4033_p5)
}
 0x1f3   : > { %s5810_s2 = scalar_lea.sflag [#allocation20], %s4788_s23  ;;  %s5811_s12 = sld [smem:[#allocation81_spill]] }
 0x1f4   : > { %3388 = dma.hbm_to_vmem [thread:$0]  (%p5807_p10), %s5132_s8, 16, %s806_s22, %s5810_s2  }
 0x1f5   : > { %s836_s16 = scalar_lea.vmem [#allocation24], %s4791_s18 }
 0x1f6   : > { %s843_s9 = sshll.u32 %s836_s16, 4  ;;  %s844_s9 = int_to_ptr.vmem [resolvable:$true] %s843_s9 }
 0x1f9   : > { %s5158_s4 = scalar_lea.hbm %s5811_s12, %s4794_s28  ;;  %s4041_s8 = scalar_lea.hbm %s5811_s12, 32 }
 0x1fa   : > { %s4037_s11 = scalar_lea.hbm %s5158_s4, 16  ;;  %p4042_p6 = scmp.lt.u32.totalorder %s5158_s4, %s5811_s12 }
 0x1fb   : > { %p4038_p2 = scmp.ne.s32.totalorder %s5158_s4, %s4037_s11  ;;  %p4043_p8 = scmp.lt.u32.totalorder %s4041_s8, %s4037_s11 }
 0x1fc   : > { %p4045_p3 = scmp.lt.u32.totalorder %s4037_s11, %s5158_s4 }
 0x1fd   : > { %p4039_p11 = pnand %p4038_p2, %p5807_p10  ;;  %p4044_p7 = por %p4043_p8, %p4042_p6 }
 0x1ff   : > { %p4040_p0 = pneg %p4039_p11  ;;  %p4046_p4 = por %p4045_p3, %p4044_p7 }
 0x201   : > { %p4047_p12 = pnand %p4046_p4, %p4040_p0 }
 0x203   : > { %4050 = shalt.err (!%p4047_p12)
}
 0x204   : > { %s4051_s2 = scalar_lea.vmem %s844_s9, 16  ;;  %s4420_s1 = smov [#allocation24]  }
 0x205   : > { %p4052_p9 = scmp.ne.s32.totalorder %s844_s9, %s4051_s2  ;;  %s4055_s26 = sshll.u32 %s4420_s1, 4  ;;  %s4056_s26 = int_to_ptr.vmem [resolvable:$false] %s4055_s26 }
 0x206   : > { %s4057_s16 = scalar_lea.vmem %s4056_s26, 32  ;;  %p4058_p5 = scmp.lt.s32.totalorder %s844_s9, %s4056_s26 }
 0x207   : > { %p4053_p1 = pnand %p4052_p9, %p5807_p10  ;;  %p4059_p2 = scmp.lt.s32.totalorder %s4057_s16, %s4051_s2 }
 0x209   : > { %p4054_p13 = pneg %p4053_p1  ;;  %p4060_p11 = por %p4059_p2, %p4058_p5 }
 0x20b   : > { %p4061_p6 = pnand %p4060_p11, %p4054_p13 }
 0x20d   : > { %4064 = shalt.err (!%p4061_p6)
}
 0x20e   : > { %s5812_s11 = scalar_lea.sflag [#allocation23], %s4788_s23  ;;  %s5813_s8 = sld [smem:[#allocation83_spill]] }
 0x20f   : > { %3390 = dma.hbm_to_vmem [thread:$0]  (%p5807_p10), %s5158_s4, 16, %s844_s9, %s5812_s11  }
 0x210   : > { %s874_s30 = scalar_lea.vmem [#allocation27], %s4791_s18 }
 0x211   : > { %s881_s2 = sshll.u32 %s874_s30, 4  ;;  %s882_s2 = int_to_ptr.vmem [resolvable:$true] %s881_s2 }
 0x214   : > { %s5184_s22 = scalar_lea.hbm %s5813_s8, %s4794_s28  ;;  %s4069_s4 = scalar_lea.hbm %s5813_s8, 32 }
 0x215   : > { %s4065_s1 = scalar_lea.hbm %s5184_s22, 16  ;;  %p4070_p3 = scmp.lt.u32.totalorder %s5184_s22, %s5813_s8 }
 0x216   : > { %p4066_p0 = scmp.ne.s32.totalorder %s5184_s22, %s4065_s1  ;;  %p4071_p4 = scmp.lt.u32.totalorder %s4069_s4, %s4065_s1 }
 0x217   : > { %p4073_p9 = scmp.lt.u32.totalorder %s4065_s1, %s5184_s22 }
 0x218   : > { %p4067_p8 = pnand %p4066_p0, %p5807_p10  ;;  %p4072_p12 = por %p4071_p4, %p4070_p3 }
 0x21a   : > { %p4068_p7 = pneg %p4067_p8  ;;  %p4074_p1 = por %p4073_p9, %p4072_p12 }
 0x21c   : > { %p4075_p13 = pnand %p4074_p1, %p4068_p7 }
 0x21e   : > { %4078 = shalt.err (!%p4075_p13)
}
 0x21f   : > { %s4079_s3 = scalar_lea.vmem %s882_s2, 16  ;;  %s4421_s25 = smov [#allocation27]  }
 0x220   : > { %p4080_p5 = scmp.ne.s32.totalorder %s882_s2, %s4079_s3  ;;  %s4083_s30 = sshll.u32 %s4421_s25, 4  ;;  %s4084_s30 = int_to_ptr.vmem [resolvable:$false] %s4083_s30 }
 0x221   : > { %s4085_s26 = scalar_lea.vmem %s4084_s30, 32  ;;  %p4086_p6 = scmp.lt.s32.totalorder %s882_s2, %s4084_s30 }
 0x222   : > { %p4081_p2 = pnand %p4080_p5, %p5807_p10  ;;  %p4087_p0 = scmp.lt.s32.totalorder %s4085_s26, %s4079_s3 }
 0x224   : > { %p4082_p11 = pneg %p4081_p2  ;;  %p4088_p8 = por %p4087_p0, %p4086_p6 }
 0x226   : > { %p4089_p3 = pnand %p4088_p8, %p4082_p11 }
 0x228   : > { %4092 = shalt.err (!%p4089_p3)
}
 0x229   : > { %s5814_s1 = scalar_lea.sflag [#allocation26], %s4788_s23  ;;  %s5815_s9 = sld [smem:[#allocation85_spill]] }
 0x22a   : > { %3392 = dma.hbm_to_vmem [thread:$0]  (%p5807_p10), %s5184_s22, 16, %s882_s2, %s5814_s1  }
 0x22b   : > { %s912_s3 = scalar_lea.vmem [#allocation30], %s4791_s18 }
 0x22c   : > { %s919_s25 = sshll.u32 %s912_s3, 4  ;;  %s920_s25 = int_to_ptr.vmem [resolvable:$true] %s919_s25 }
 0x22f   : > { %s5210_s11 = scalar_lea.hbm %s5815_s9, %s4794_s28  ;;  %s4097_s22 = scalar_lea.hbm %s5815_s9, 32 }
 0x230   : > { %s4093_s30 = scalar_lea.hbm %s5210_s11, 16  ;;  %p4098_p9 = scmp.lt.u32.totalorder %s5210_s11, %s5815_s9 }
 0x231   : > { %p4094_p7 = scmp.ne.s32.totalorder %s5210_s11, %s4093_s30  ;;  %p4099_p1 = scmp.lt.u32.totalorder %s4097_s22, %s4093_s30 }
 0x232   : > { %p4101_p5 = scmp.lt.u32.totalorder %s4093_s30, %s5210_s11 }
 0x233   : > { %p4095_p4 = pnand %p4094_p7, %p5807_p10  ;;  %p4100_p13 = por %p4099_p1, %p4098_p9 }
 0x235   : > { %p4096_p12 = pneg %p4095_p4  ;;  %p4102_p2 = por %p4101_p5, %p4100_p13 }
 0x237   : > { %p4103_p11 = pnand %p4102_p2, %p4096_p12 }
 0x239   : > { %4106 = shalt.err (!%p4103_p11)
}
 0x23a   : > { %s4107_s16 = scalar_lea.vmem %s920_s25, 16  ;;  %s4422_s4 = smov [#allocation30]  }
 0x23b   : > { %p4108_p6 = scmp.ne.s32.totalorder %s920_s25, %s4107_s16  ;;  %s4111_s3 = sshll.u32 %s4422_s4, 4  ;;  %s4112_s3 = int_to_ptr.vmem [resolvable:$false] %s4111_s3 }
 0x23c   : > { %s4113_s10 = scalar_lea.vmem %s4112_s3, 32  ;;  %p4114_p3 = scmp.lt.s32.totalorder %s920_s25, %s4112_s3 }
 0x23d   : > { %p4109_p0 = pnand %p4108_p6, %p5807_p10  ;;  %p4115_p7 = scmp.lt.s32.totalorder %s4113_s10, %s4107_s16 }
 0x23f   : > { %p4110_p8 = pneg %p4109_p0  ;;  %p4116_p4 = por %p4115_p7, %p4114_p3 }
 0x241   : > { %p4117_p1 = pnand %p4116_p4, %p4110_p8 }
 0x243   : > { %4120 = shalt.err (!%p4117_p1)
}
 0x244   : > { %s5816_s30 = scalar_lea.sflag [#allocation29], %s4788_s23  ;;  %s5817_s2 = sld [smem:[#allocation86_spill]] }
 0x245   : > { %3394 = dma.hbm_to_vmem [thread:$0]  (%p5807_p10), %s5210_s11, 16, %s920_s25, %s5816_s30  }
 0x246   : > { %s946_s16 = scalar_lea.vmem [#allocation33], %s4791_s18 }
 0x247   : > { %s953_s4 = sshll.u32 %s946_s16, 4  ;;  %s954_s4 = int_to_ptr.vmem [resolvable:$true] %s953_s4 }
 0x24a   : > { %s5236_s1 = scalar_lea.hbm %s5817_s2, %s4794_s28  ;;  %s4125_s11 = scalar_lea.hbm %s5817_s2, 32 }
 0x24b   : > { %s4121_s3 = scalar_lea.hbm %s5236_s1, 16  ;;  %p4126_p5 = scmp.lt.u32.totalorder %s5236_s1, %s5817_s2 }
 0x24c   : > { %p4122_p12 = scmp.ne.s32.totalorder %s5236_s1, %s4121_s3  ;;  %p4127_p2 = scmp.lt.u32.totalorder %s4125_s11, %s4121_s3 }
 0x24d   : > { %p4129_p6 = scmp.lt.u32.totalorder %s4121_s3, %s5236_s1 }
 0x24e   : > { %p4123_p9 = pnand %p4122_p12, %p5807_p10  ;;  %p4128_p11 = por %p4127_p2, %p4126_p5 }
 0x250   : > { %p4124_p13 = pneg %p4123_p9  ;;  %p4130_p0 = por %p4129_p6, %p4128_p11 }
 0x252   : > { %p4131_p8 = pnand %p4130_p0, %p4124_p13 }
 0x254   : > { %4134 = shalt.err (!%p4131_p8)
}
 0x255   : > { %s4135_s26 = scalar_lea.vmem %s954_s4, 16  ;;  %s4423_s22 = smov [#allocation33]  }
 0x256   : > { %p4136_p3 = scmp.ne.s32.totalorder %s954_s4, %s4135_s26  ;;  %s4139_s16 = sshll.u32 %s4423_s22, 4  ;;  %s4140_s16 = int_to_ptr.vmem [resolvable:$false] %s4139_s16 }
 0x257   : > { %s4141_s7 = scalar_lea.vmem %s4140_s16, 32  ;;  %p4142_p1 = scmp.lt.s32.totalorder %s954_s4, %s4140_s16 }
 0x258   : > { %p4137_p7 = pnand %p4136_p3, %p5807_p10  ;;  %p4143_p12 = scmp.lt.s32.totalorder %s4141_s7, %s4135_s26 }
 0x25a   : > { %p4138_p4 = pneg %p4137_p7  ;;  %p4144_p9 = por %p4143_p12, %p4142_p1 }
 0x25c   : > { %p4145_p2 = pnand %p4144_p9, %p4138_p4 }
 0x25e   : > { %4148 = shalt.err (!%p4145_p2)
}
 0x25f   : > { %s5818_s3 = scalar_lea.sflag [#allocation32], %s4788_s23  ;;  %s5819_s25 = sld [smem:[#allocation87_spill]] }
 0x260   : > { %3396 = dma.hbm_to_vmem [thread:$0]  (%p5807_p10), %s5236_s1, 16, %s954_s4, %s5818_s3  }
 0x261   : > { %s984_s26 = scalar_lea.vmem [#allocation36], %s4791_s18 }
 0x262   : > { %s991_s22 = sshll.u32 %s984_s26, 4  ;;  %s992_s22 = int_to_ptr.vmem [resolvable:$true] %s991_s22 }
 0x265   : > { %s5262_s30 = scalar_lea.hbm %s5819_s25, %s4794_s28  ;;  %s4153_s1 = scalar_lea.hbm %s5819_s25, 32 }
 0x266   : > { %s4149_s16 = scalar_lea.hbm %s5262_s30, 16  ;;  %p4154_p6 = scmp.lt.u32.totalorder %s5262_s30, %s5819_s25 }
 0x267   : > { %p4150_p13 = scmp.ne.s32.totalorder %s5262_s30, %s4149_s16  ;;  %p4155_p0 = scmp.lt.u32.totalorder %s4153_s1, %s4149_s16 }
 0x268   : > { %p4157_p3 = scmp.lt.u32.totalorder %s4149_s16, %s5262_s30 }
 0x269   : > { %p4151_p5 = pnand %p4150_p13, %p5807_p10  ;;  %p4156_p8 = por %p4155_p0, %p4154_p6 }
 0x26b   : > { %p4152_p11 = pneg %p4151_p5  ;;  %p4158_p7 = por %p4157_p3, %p4156_p8 }
 0x26d   : > { %p4159_p4 = pnand %p4158_p7, %p4152_p11 }
 0x26f   : > { %4162 = shalt.err (!%p4159_p4)
}
 0x270   : > { %s4163_s10 = scalar_lea.vmem %s992_s22, 16  ;;  %s4424_s11 = smov [#allocation36]  }
 0x271   : > { %p4164_p1 = scmp.ne.s32.totalorder %s992_s22, %s4163_s10  ;;  %s4167_s26 = sshll.u32 %s4424_s11, 4  ;;  %s4168_s26 = int_to_ptr.vmem [resolvable:$false] %s4167_s26 }
 0x272   : > { %s4169_s2 = scalar_lea.vmem %s4168_s26, 32  ;;  %p4170_p2 = scmp.lt.s32.totalorder %s992_s22, %s4168_s26 }
 0x273   : > { %p4165_p12 = pnand %p4164_p1, %p5807_p10  ;;  %p4171_p13 = scmp.lt.s32.totalorder %s4169_s2, %s4163_s10 }
 0x275   : > { %p4166_p9 = pneg %p4165_p12  ;;  %p4172_p5 = por %p4171_p13, %p4170_p2 }
 0x277   : > { %p4173_p0 = pnand %p4172_p5, %p4166_p9 }
 0x279   : > { %4176 = shalt.err (!%p4173_p0)
}
 0x27a   : > { %s5820_s16 = scalar_lea.sflag [#allocation35], %s4788_s23  ;;  %s5821_s4 = sld [smem:[#allocation88_spill]] }
 0x27b   : > { %3398 = dma.hbm_to_vmem [thread:$0]  (%p5807_p10), %s5262_s30, 16, %s992_s22, %s5820_s16  }
 0x27c   : > { %s1022_s10 = scalar_lea.vmem [#allocation39], %s4791_s18 }
 0x27d   : > { %s1029_s11 = sshll.u32 %s1022_s10, 4  ;;  %s1030_s11 = int_to_ptr.vmem [resolvable:$true] %s1029_s11 }
 0x280   : > { %s5822_s8 = smov %s5821_s4  ;;  %s5288_s3 = scalar_lea.hbm %s5821_s4, %s4794_s28 }
 0x281   : > { %s4177_s26 = scalar_lea.hbm %s5288_s3, 16  ;;  %s4181_s30 = scalar_lea.hbm %s5822_s8, 32 }
 0x282   : > { %p4178_p11 = scmp.ne.s32.totalorder %s5288_s3, %s4177_s26  ;;  %p4182_p3 = scmp.lt.u32.totalorder %s5288_s3, %s5822_s8 }
 0x283   : > { %p4183_p7 = scmp.lt.u32.totalorder %s4181_s30, %s4177_s26  ;;  %p4185_p1 = scmp.lt.u32.totalorder %s4177_s26, %s5288_s3 }
 0x284   : > { %p4179_p6 = pnand %p4178_p11, %p5807_p10 }
 0x285   : > { %p4184_p4 = por %p4183_p7, %p4182_p3 }
 0x286   : > { %p4180_p8 = pneg %p4179_p6 }
 0x287   : > { %p4186_p12 = por %p4185_p1, %p4184_p4 }
 0x289   : > { %p4187_p9 = pnand %p4186_p12, %p4180_p8 }
 0x28b   : > { %4190 = shalt.err (!%p4187_p9)
}
 0x28c   : > { %s4191_s18 = scalar_lea.vmem %s1030_s11, 16  ;;  %s4425_s28 = smov [#allocation39]  }
 0x28d   : > { %p4192_p2 = scmp.ne.s32.totalorder %s1030_s11, %s4191_s18  ;;  %s4195_s7 = sshll.u32 %s4425_s28, 4  ;;  %s4196_s7 = int_to_ptr.vmem [resolvable:$false] %s4195_s7 }
 0x28e   : > { %s4197_s9 = scalar_lea.vmem %s4196_s7, 32  ;;  %p4198_p0 = scmp.lt.s32.totalorder %s1030_s11, %s4196_s7 }
 0x28f   : > { %p4193_p13 = pnand %p4192_p2, %p5807_p10  ;;  %p4199_p11 = scmp.lt.s32.totalorder %s4197_s9, %s4191_s18 }
 0x291   : > { %p4194_p5 = pneg %p4193_p13  ;;  %p4200_p6 = por %p4199_p11, %p4198_p0 }
 0x293   : > { %p4201_p3 = pnand %p4200_p6, %p4194_p5 }
 0x295   : > { %4204 = shalt.err (!%p4201_p3)
}
 0x296   : > { %s5823_s1 = scalar_lea.sflag [#allocation38], %s4788_s23 }
 0x297   : > { %3400 = dma.hbm_to_vmem [thread:$0]  (%p5807_p10), %s5288_s3, 16, %s1030_s11, %s5823_s1  }
 0x298 PF: > { %s5824_s4 = sld [smem:[#allocation70_spill]] }
 0x29e   : > { %p5825_p8 = scmp.ne.s32.totalorder %s5824_s4, 0 }
 0x29f   : > { %s5826_s10 = sld [smem:[#allocation58_spill]] (!%p5825_p8)  ;;  %s5827_s26 = sld [smem:[#allocation64_spill]] (!%p5825_p8) }
 0x2a0   : > { %1038 = sbr.rel (%p5825_p8) target bundleno = 3917 (0xf4d), region = 104 }
 0x2a5   : > { %s5313_s2 = sand.u32 (!%p5825_p8), 1, %s5826_s10   ;;  %p5828_p7 = scmp.ne.s32.totalorder (!%p5825_p8), %s5827_s26, 0 }
 0x2a6   : > { %s3121_s30 = sshll.u32 (!%p5825_p8), %s5313_s2, 3  ;;  %s1041_s22 = scalar_lea.sflag (!%p5825_p8), [#allocation8], %s5313_s2 }
 0x2a7   : > { %s5317_s16 = scalar_lea.vmem [#allocation7], %s3121_s30 }
 0x2a8   : > { %4306 = dma.done.wait (%p5828_p7), %s1041_s22, 128  }
 0x2a9   : > { %4308 = vsyncadd (%p5828_p7), %s1041_s22, 4294967168  ;;  %s5829_s14 = sld [smem:[#allocation61_spill]] }
 0x2af   : > { %p5830_p10 = scmp.eq.s32.totalorder %s5829_s14, 0 }
 0x2b1   : > { %4310 = dma.done.wait (%p5830_p10), [#allocation11], 512   ;;  %p5831_p4 = pmov %p5830_p10 }
 0x2b3   : > { %4312 = vsyncadd (%p5831_p4), [#allocation11], 4294966784  ;;  %p5832_p1 = pmov %p5831_p4 }
 0x2b5   : > { %4314 = dma.done.wait (%p5832_p1), [#allocation14], 32   ;;  %p5833_p12 = pmov %p5832_p1 }
 0x2b6   : > { %s5834_s23 = sld [smem:[#allocation56_spill]]  ;;  %s5835_s3 = sld [smem:[#allocation67_spill]] }
 0x2b7   : > { %4316 = vsyncadd (%p5833_p12), [#allocation14], 4294967264  ;;  %s5332_s11 = sand.u32 1, %s5829_s14  }
 0x2b8   : > { %s1066_s28 = scalar_lea.sflag [#allocation17], %s5332_s11 }
 0x2bc   : > { %s5335_s18 = sand.u32 1, %s5834_s23   ;;  %p5836_p9 = scmp.ne.s32.totalorder %s5835_s3, 0 }
 0x2be   : > { %4318 = dma.done.wait (%p5836_p9), %s1066_s28, 32  }
 0x2bf   : > { %4320 = vsyncadd (%p5836_p9), %s1066_s28, 4294967264  ;;  %s5344_s9 = sshll.u32 %s5335_s18, 4  ;;  %s1082_s4 = scalar_lea.sflag [#allocation20], %s5332_s11 }
 0x2c0   : > { %s1085_s10 = scalar_lea.vmem [#allocation19], %s5344_s9 }
 0x2c1   : > { %4322 = dma.done.wait (%p5836_p9), %s1082_s4, 272  }
 0x2c2   : > { %4324 = vsyncadd (%p5836_p9), %s1082_s4, 4294967024  ;;  %s1099_s30 = scalar_lea.sflag [#allocation23], %s5332_s11 }
 0x2c3   : > { %4326 = dma.done.wait (%p5836_p9), %s1099_s30, 272  }
 0x2c4   : > { %4328 = vsyncadd (%p5836_p9), %s1099_s30, 4294967024  ;;  %s1116_s23 = scalar_lea.sflag [#allocation26], %s5332_s11 }
 0x2c5   : > { %4330 = dma.done.wait (%p5836_p9), %s1116_s23, 272  }
 0x2c6   : > { %4332 = vsyncadd (%p5836_p9), %s1116_s23, 4294967024  ;;  %s1133_s26 = scalar_lea.sflag [#allocation29], %s5332_s11 }
 0x2c7   : > { %4334 = dma.done.wait (%p5836_p9), %s1133_s26, 272  }
 0x2c8   : > { %4336 = vsyncadd (%p5836_p9), %s1133_s26, 4294967024  ;;  %s1150_s14 = scalar_lea.sflag [#allocation32], %s5332_s11 }
 0x2c9   : > { %4338 = dma.done.wait (%p5836_p9), %s1150_s14, 32  }
 0x2ca   : > { %4340 = vsyncadd (%p5836_p9), %s1150_s14, 4294967264  ;;  %s1166_s22 = scalar_lea.sflag [#allocation35], %s5332_s11 }
 0x2cb   : > { %4342 = dma.done.wait (%p5836_p9), %s1166_s22, 272  }
 0x2cc   : > { %4344 = vsyncadd (%p5836_p9), %s1166_s22, 4294967024  ;;  %s3131_s26 = sshll.u32 %s5335_s18, 6  ;;  %s1177_s28 = scalar_lea.vmem [#allocation36], %s5335_s18 }
 0x2cd   : > { %s1183_s30 = scalar_lea.sflag [#allocation38], %s5332_s11  ;;  %s5391_s14 = scalar_lea.vmem [#allocation37], %s3131_s26 }
 0x2ce   : > { %4346 = dma.done.wait (%p5836_p9), %s1183_s30, 1040  }
 0x2cf   : > { %4348 = vsyncadd (%p5836_p9), %s1183_s30, 4294966256  ;;  %s3132_s23 = sshll.u32 %s5313_s2, 2  ;;  %s1194_s4 = scalar_lea.vmem [#allocation39], %s5335_s18 }
 0x2d0   : > { %s5400_s22 = scalar_lea.vmem [#allocation40], %s5313_s2  ;;  %s5402_s1 = scalar_lea.vmem [#allocation41], %s3132_s23 }
 0x2d1   : > { %s5837_s7 = sld [smem:[#allocation59_spill]] }
 0x2d7   : > { %p3133_p2 = scmp.ne.s32.totalorder %s5837_s7, 0 }
 0x2d8   : > { %vm1334_vm0 = vcmask (!%p3133_p2), 253952   ;;  %vm1336_vm1 = vcmask (!%p3133_p2), 257024   ;;  %v3565_v0 = vld [vmem:[#allocation10 + $0x8] sm:$0xff] (!%p3133_p2)   ;;  %v4426_v1 = vmov (!%p3133_p2), 0.0   ;;  %v1338_v2 = vld [vmem:[%s5317_s16] sm:$0xff] (!%p3133_p2)  ;;  %vm1349_vm2 = vcmask (!%p3133_p2), 130048  }
 0x2d9   : > { %1333 = sbr.rel (%p3133_p2) target bundleno = 970 (0x3ca), region = 192  ;;  %1335 = vst.msk [vmem:[%s5400_s22] sm:$0x1] (!%p3133_p2), %vm1334_vm0, %v4426_v1  ;;  %3250 = vmatprep.subr.bf16.mxu0 (!%p3133_p2), %v4426_v1  ;;  %3256 = vmatprep.subr.bf16.mxu1 (!%p3133_p2), %v4426_v1  ;;  %v3566_v3 = vld [vmem:[#allocation10] sm:$0xff] (!%p3133_p2)   ;;  %vm4427_vm3 = vmmov (!%p3133_p2), 0   ;;  %v1339_v4 = vpack.c.bf16 (!%p3133_p2), %v1338_v2, %v1338_v2  ;;  %v3567_v5 = vld [vmem:[#allocation10 + $0x10] sm:$0xff] (!%p3133_p2)  }
 0x2da   : > { %1337 = vst.msk [vmem:[%s5402_s1] sm:$0xf] (!%p3133_p2), %vm1336_vm1, %v4426_v1  ;;  %3251 = vmatpush3.bf16.msra.mxu0 (!%p3133_p2), %v3565_v0  ;;  %3252 = vmatprep.mubr.msk.bf16.mxu0 (!%p3133_p2), %vm4427_vm3, %v4426_v1  ;;  %v1394_v7 = vld [vmem:[#allocation12] sm:$0xff] (!%p3133_p2)  ;;  %vm1396_vm4 = vcmask (!%p3133_p2), 261120   ;;  %vm1498_vm5 = vcmask (!%p3133_p2), 260096  }
 0x2db   : > { %3257 = vmatpush3.bf16.msra.mxu1 (!%p3133_p2), %v3566_v3  ;;  %3258 = vmatprep.mubr.msk.bf16.mxu1 (!%p3133_p2), %vm4427_vm3, %v4426_v1 }
 0x2dc   : > { %3262 = vmatprep.subr.bf16.mxu0 (!%p3133_p2), %v4426_v1 }
 0x2dd   : > { %3253 = vmatmul.mubr.msk.bf16.vlgmr.msra.gmra.mrb[0].mxu0 (!%p3133_p2), %vm1349_vm2, %v1339_v4 }
 0x2de   : > { %3259 = vmatmul.mubr.msk.bf16.vlgmr.msra.gmra.mrb[0].mxu1 (!%p3133_p2), %vm1349_vm2, %v1339_v4  ;;  %3263 = vmatpush3.bf16.msra.mxu0 (!%p3133_p2), %v3567_v5 }
 0x2df   : > { %3264 = vmatprep.mubr.msk.bf16.mxu0 (!%p3133_p2), %vm4427_vm3, %v4426_v1 }
 0x2e5   : > { %3265 = vmatmul.mubr.msk.bf16.vlgmr.msra.gmra.mrb[4].mxu0 %vm1349_vm2, %v1339_v4 }
 0x3b0   : > { %v1387_v6 = vpop.f32.mrb[0].mxu0 }
 0x3b1   : > { %v1393_v8 = vmul.f32 5.656854, %v1387_v6  ;;  %v3254_v9 = vpop.f32.mrb[1].mxu0  ;;  %v1440_v10 = vpop.f32.mrb[0].mxu1 }
 0x3b2   : > { %v1390_v11 = vpop.f32.mrb[2].mxu0  ;;  %v3260_v12 = vpop.f32.mrb[1].mxu1  ;;  %v1496_v18 = vmul.f32 5.656854, %v1440_v10 }
 0x3b3   : > { %v1395_v13 = vadd.f32 %v1394_v7, %v1393_v8  ;;  %v3255_v14 = vpop.f32.mrb[3].mxu0  ;;  %v1443_v15 = vpop.f32.mrb[2].mxu1 }
 0x3b4   : > { %v3261_v16 = vpop.f32.mrb[3].mxu1 }
 0x3b5   : > { %1397 = vst.msk [vmem:[#allocation2] sm:$0xff] %vm1396_vm4, %v1395_v13 }
 0x3b8   : > { %v1489_v17 = vpop.f32.mrb[4].mxu0 }
 0x3b9   : > { %v3266_v19 = vpop.f32.mrb[5].mxu0  ;;  %v1501_v24 = vmul.f32 5.656854, %v1489_v17 }
 0x3ba   : > { %v1492_v20 = vpop.f32.mrb[6].mxu0 }
 0x3bb   : > { %v3267_v21 = vpop.f32.mrb[7].mxu0  ;;  %v1503_v25 = vrot.slane %v1501_v24, 1 }
 0x3bc   : > { %v1495_v22 = vld [vmem:[#allocation2 + $0x1] sm:$0x7f] }
 0x3bd   : > { %v1497_v23 = vadd.f32 %v1496_v18, %v1495_v22 }
 0x3bf   : > { %1499 = vst.msk [vmem:[#allocation2 + $0x1] sm:$0x7f] %vm1498_vm5, %v1497_v23 }
 0x3c6   : > { %v1500_v26 = vld [vmem:[#allocation2] sm:$0x7f] }
 0x3c7   : > { %v1505_v27 = vadd.f32 %v1503_v25, %v1500_v26 }
 0x3c9   : > { %1506 = vst.msk [vmem:[#allocation2] sm:$0x7f] %vm1498_vm5, %v1505_v27 }
 0x3ca PF: > { %vm1510_vm6 = vcmask 261120   ;;  %v3568_v35 = vld [vmem:[%s1085_s10] sm:$0xff]   ;;  %v4428_v36 = vmov 0.0   ;;  %vm4429_vm7 = vmmov 0   ;;  %v3569_v37 = vld [vmem:[%s1085_s10 + $0x8] sm:$0xff]   ;;  %s5838_s16 = scalar_lea.vmem [#allocation16], %s5335_s18 }
 0x3cb   : > { %3268 = vmatprep.subr.bf16.mxu0 %v4428_v36  ;;  %3272 = vmatprep.mubr.msk.bf16.mxu0 %vm4429_vm7, %v4428_v36  ;;  %v3140_v42 = vld [vmem:[%s5838_s16] ss:$0 sm:$0xff]  ;;  %s5839_s3 = scalar_lea.vmem [#allocation18], %s5335_s18  ;;  %s5840_s11 = scalar_lea.vmem [#allocation22], %s5344_s9  ;;  %vm1733_vm8 = vcmask 257024   ;;  %vm1742_vm9 = vcmask 64512  }
 0x3cc   : > { %3269 = vmatpush3.bf16.msra.mxu0 %v3568_v35  ;;  %3292 = vmatprep.subr.bf16.mxu1 %v4428_v36  ;;  %v3141_v44 = vld [vmem:[%s5839_s3] ss:$0 sm:$0xff]  ;;  %v3570_v47 = vld [vmem:[%s5840_s11] sm:$0xff]   ;;  %s5841_s7 = smov %s5840_s11  ;;  %s5842_s10 = scalar_lea.vmem [#allocation25], %s5344_s9  ;;  %vm1804_vm10 = vcmask 1043456   ;;  %vm1975_vm11 = vcmask 130112  }
 0x3cd   : > { %3270 = vmatprep.subr.bf16.mxu0 %v4428_v36  ;;  %3294 = vmatprep.mubr.msk.bf16.mxu1 %vm4429_vm7, %v4428_v36  ;;  %v3571_v49 = vld [vmem:[%s5841_s7 + $0x8] sm:$0xff]   ;;  %s5843_s30 = smov %s5842_s10  ;;  %s5844_s23 = scalar_lea.vmem [#allocation21], %s5335_s18  ;;  %vm2103_vm12 = vcmask 195712   ;;  %vm2231_vm13 = vcmask 261312  }
 0x3ce   : > { %v3572_v50 = vld [vmem:[%s5842_s10] sm:$0xff]   ;;  %v3142_v52 = vld [vmem:[%s5844_s23] ss:$0 sm:$0xff]  ;;  %s5845_s26 = scalar_lea.vmem [#allocation24], %s5335_s18  ;;  %s5846_s16 = scalar_lea.vmem [#allocation27], %s5335_s18 }
 0x3cf   : > { %v3573_v51 = vld [vmem:[%s5843_s30 + $0x8] sm:$0xff]   ;;  %v3146_v59 = vld [vmem:[%s5845_s26] ss:$0 sm:$0xff]  ;;  %s4430_s3 = smov 112   ;;  %s4431_s11 = smov 120  }
 0x3d0   : > { %v5408_v28 = vld [vmem:[#allocation2] sm:$0xff]  ;;  %3271 = vmatpush3.bf16.msra.mxu0 %v3569_v37  ;;  %s4432_s7 = smov 104   ;;  %s4433_s10 = smov 8  }
 0x3d1   : > { %v1511_v29 = vsel %vm1510_vm6, %v5408_v28, 0.0  ;;  %3276 = vmatprep.subr.bf16.mxu0 %v4428_v36  ;;  %v3150_v2 = vld [vmem:[%s5846_s16] ss:$0 sm:$0xff]  ;;  %s4434_s30 = smov 16   ;;  %s5847_s23 = scalar_lea.vmem [#allocation28], %s5344_s9 }
 0x3d2   : > { %1512 = vadd.xlane.f32.xlu0 %v1511_v29  ;;  %s5848_s26 = smov %s5847_s23  ;;  %s4435_s16 = smov 24  }
 0x45f   : > { %v1513_v30 = vpop.xlane.xlu0 %1512 }
 0x460   : > { %v1515_v31 = vmul.f32 0.03125, %v1513_v30 }
 0x462   : > { %v1516_v32 = vsub.f32 %v5408_v28, %v1515_v31 }
 0x464   : > { %v1517_v33 = vmul.f32 %v1516_v32, %v1516_v32 }
 0x466   : > { %v1518_v34 = vsel %vm1510_vm6, %v1517_v33, 0.0 }
 0x467   : > { %1519 = vadd.xlane.f32.xlu0 %v1518_v34 }
 0x4f4   : > { %v1520_v38 = vpop.xlane.xlu0 %1519 }
 0x4f5   : > { %v1521_v39 = vmul.f32 0.03125, %v1520_v38 }
 0x4f7   : > { %v1522_v40 = vadd.f32 1e-05, %v1521_v39 }
 0x4f9   : > { %3595 = vrsqrt.f32 %v1522_v40 }
 0x503   : > { %v3596_v41 = vpop.eup %3595 }
 0x504   : > { %v1524_v43 = vmul.f32 %v3596_v41, %v1516_v32 }
 0x506   : > { %v1531_v45 = vmul.f32 %v3140_v42, %v1524_v43 }
 0x508   : > { %v1538_v46 = vadd.f32 %v3141_v44, %v1531_v45 }
 0x50a   : > { %v1539_v48 = vpack.c.bf16 %v1538_v46, %v1538_v46 }
 0x50c   : > { %3273 = vmatmul.mubr.msk.bf16.vlgmr.msra.gmra.mrb[0].mxu0 %vm1510_vm6, %v1539_v48 }
 0x50d   : > { %3277 = vmatpush3.bf16.msra.mxu0 %v3570_v47  ;;  %3280 = vmatprep.mubr.msk.bf16.mxu0 %vm4429_vm7, %v4428_v36 }
 0x50e   : > { %3278 = vmatprep.subr.bf16.mxu0 %v4428_v36 }
 0x511   : > { %3279 = vmatpush3.bf16.msra.mxu0 %v3571_v49 }
 0x512   : > { %3284 = vmatprep.subr.bf16.mxu0 %v4428_v36 }
 0x514   : > { %3281 = vmatmul.mubr.msk.bf16.vlgmr.msra.gmra.mrb[4].mxu0 %vm1510_vm6, %v1539_v48 }
 0x515   : > { %3285 = vmatpush3.bf16.msra.mxu0 %v3572_v50  ;;  %3288 = vmatprep.mubr.msk.bf16.mxu0 %vm4429_vm7, %v4428_v36 }
 0x516   : > { %3286 = vmatprep.subr.bf16.mxu0 %v4428_v36 }
 0x519   : > { %3287 = vmatpush3.bf16.msra.mxu0 %v3573_v51 }
 0x51a   : > { %3298 = vmatprep.subr.bf16.mxu0 %v4428_v36 }
 0x51c   : > { %3289 = vmatmul.mubr.msk.bf16.vlgmr.msra.gmra.mrb[8].mxu0 %vm1510_vm6, %v1539_v48 }
 0x51d   : > { %3300 = vmatprep.mubr.msk.bf16.mxu0 %vm4429_vm7, %v4428_v36 }
 0x5df   : > { %v1600_v53 = vpop.f32.mrb[0].mxu0 }
 0x5e0   : > { %v1601_v54 = vadd.f32 %v3142_v52, %v1600_v53  ;;  %v3274_v55 = vpop.f32.mrb[1].mxu0 }
 0x5e1   : > { %v1603_v56 = vpop.f32.mrb[2].mxu0 }
 0x5e2   : > { %v1732_v57 = vpack.c.bf16 %v1601_v54, %v1601_v54  ;;  %v3275_v58 = vpop.f32.mrb[3].mxu0 }
 0x5e4   : > { %1734 = vst.msk [vmem:[#allocation3] sm:$0xf] %vm1733_vm8, %v1732_v57 }
 0x5e7   : > { %v1663_v60 = vpop.f32.mrb[4].mxu0 }
 0x5e8   : > { %v1664_v61 = vadd.f32 %v3146_v59, %v1663_v60  ;;  %v3282_v62 = vpop.f32.mrb[5].mxu0 }
 0x5e9   : > { %v1666_v63 = vpop.f32.mrb[6].mxu0 }
 0x5ea   : > { %v1735_v0 = vpack.c.bf16 %v1664_v61, %v1664_v61  ;;  %v3283_v1 = vpop.f32.mrb[7].mxu0 }
 0x5eb   : > { %v3576_v13 = vld [vmem:[#allocation3] ss:$0 sps:$4 sm:$0xff]  }
 0x5ec   : > { %1736 = vst.msk [vmem:[#allocation4] sm:$0xf] %vm1733_vm8, %v1735_v0  ;;  %v1739_v14 = vld [vmem:[#allocation3] sm:$0xf] }
 0x5ed   : > { %v3577_v17 = vld [vmem:[#allocation3] ss:$0 sps:$4 sm:$0xff]  }
 0x5ee   : > { %v3579_v19 = vld [vmem:[#allocation3] ss:$0 sps:$4 sm:$0xff]  }
 0x5ef   : > { %v1726_v3 = vpop.f32.mrb[8].mxu0 }
 0x5f0   : > { %v1727_v4 = vadd.f32 %v3150_v2, %v1726_v3  ;;  %v3290_v5 = vpop.f32.mrb[9].mxu0 }
 0x5f1   : > { %v1729_v6 = vpop.f32.mrb[10].mxu0 }
 0x5f2   : > { %v1737_v7 = vpack.c.bf16 %v1727_v4, %v1727_v4  ;;  %v3291_v8 = vpop.f32.mrb[11].mxu0 }
 0x5f3   : > { %v1740_v9 = vld [vmem:[#allocation4] sm:$0xf] }
 0x5f4   : > { %v3574_v10 = vld [vmem:[#allocation4] ss:$0 sps:$4 sm:$0xff]   ;;  %1738 = vst.msk [vmem:[#allocation5] sm:$0xf] %vm1733_vm8, %v1737_v7  ;;  %v1747_v11 = vsel %vm1742_vm9, %v1740_v9, 0 }
 0x5f5   : > { %v3575_v12 = vld [vmem:[#allocation4] ss:$0 sps:$4 sm:$0xff]   ;;  %3293 = vmatpush3.bf16.xpose.msra.mxu1 %v1747_v11  ;;  %1988 = vrot.lane.b32.xlu0 %v3574_v10, %s4430_s3 }
 0x5f6   : > { %1860 = vrot.lane.b32.xlu1 %v3575_v12, %s4431_s11  ;;  %3304 = vmatprep.subr.bf16.mxu1 %v4428_v36  ;;  %v3578_v18 = vld [vmem:[#allocation4] ss:$0 sps:$4 sm:$0xff]  }
 0x5fa   : > { %1855 = vrot.lane.b32.xlu1 %v3576_v13, %s4431_s11 }
 0x5fb   : > { %v1741_v15 = vld [vmem:[#allocation5] sm:$0xf] }
 0x5fc   : > { %3295 = vmatmul.mubr.msk.bf16.vlgmr.msra.gmra.mrb[0].mxu1 %vm1742_vm9, %v1739_v14  ;;  %v1806_v16 = vsel %vm1804_vm10, %v1741_v15, 0  ;;  %v3580_v2 = vld [vmem:[#allocation5] ss:$0 sps:$4 sm:$0xff]  }
 0x5fd   : > { %3299 = vmatpush3.bf16.msra.mxu0 %v1806_v16  ;;  %3306 = vmatprep.mubr.msk.bf16.mxu1 %vm4429_vm7, %v4428_v36  ;;  %v3581_v5 = vld [vmem:[#allocation5] ss:$0 sps:$4 sm:$0xff]  }
 0x5fe   : > { %1983 = vrot.lane.b32.xlu1 %v3577_v17, %s4430_s3  ;;  %3310 = vmatprep.subr.bf16.mxu0 %v4428_v36  ;;  %v3582_v13 = vld [vmem:[#allocation5] ss:$0 sps:$4 sm:$0xff]  }
 0x602   : > { %2116 = vrot.lane.b32.xlu1 %v3578_v18, %s4432_s7 }
 0x606   : > { %2111 = vrot.lane.b32.xlu1 %v3579_v19, %s4432_s7 }
 0x667   : > { %v1989_v23 = vpop.permute.xlu0 %1988 }
 0x668   : > { %v1861_v20 = vpop.permute.xlu1 %1860  ;;  %v1994_v25 = vsel %vm1742_vm9, %v1989_v23, 0 }
 0x669   : > { %v1866_v21 = vsel %vm1742_vm9, %v1861_v20, 0 }
 0x66a   : > { %3305 = vmatpush3.bf16.xpose.msra.mxu1 %v1866_v21 }
 0x66b   : > { %3316 = vmatprep.subr.bf16.mxu1 %v4428_v36 }
 0x66c   : > { %v1856_v22 = vpop.permute.xlu1 %1855 }
 0x670   : > { %v1984_v24 = vpop.permute.xlu1 %1983 }
 0x671   : > { %3307 = vmatmul.mubr.msk.bf16.vlgmr.msra.gmra.mrb[4].mxu1 %vm1742_vm9, %v1856_v22 }
 0x672   : > { %3317 = vmatpush3.bf16.xpose.msra.mxu1 %v1994_v25  ;;  %3318 = vmatprep.mubr.msk.bf16.mxu1 %vm4429_vm7, %v4428_v36 }
 0x673   : > { %3328 = vmatprep.subr.bf16.mxu1 %v4428_v36 }
 0x674   : > { %v2117_v26 = vpop.permute.xlu1 %2116 }
 0x675   : > { %v2122_v27 = vsel %vm1742_vm9, %v2117_v26, 0 }
 0x678   : > { %v2112_v29 = vpop.permute.xlu1 %2111 }
 0x679   : > { %3319 = vmatmul.mubr.msk.bf16.vlgmr.msra.gmra.mrb[8].mxu1 %vm1742_vm9, %v1984_v24 }
 0x67a   : > { %3329 = vmatpush3.bf16.xpose.msra.mxu1 %v2122_v27  ;;  %3330 = vmatprep.mubr.msk.bf16.mxu1 %vm4429_vm7, %v4428_v36 }
 0x67b   : > { %3340 = vmatprep.subr.bf16.mxu1 %v4428_v36 }
 0x681   : > { %3331 = vmatmul.mubr.msk.bf16.vlgmr.msra.gmra.mrb[12].mxu1 %vm1742_vm9, %v2112_v29 }
 0x682   : > { %3344 = vmatprep.mubr.msk.bf16.mxu1 %vm4429_vm7, %v4428_v36 }
 0x6cf   : > { %v1783_v30 = vpop.f32.mrb[0].mxu1 }
 0x6d0   : > { %v3296_v31 = vpop.f32.mrb[1].mxu1  ;;  %v1789_v32 = vsel %vm1742_vm9, %v1783_v30, -inf }
 0x6d1   : > { %1790 = vmax.xlane.f32.xlu1 %v1789_v32  ;;  %v1786_v33 = vpop.f32.mrb[2].mxu1 }
 0x6d2   : > { %v3297_v34 = vpop.f32.mrb[3].mxu1 }
 0x744   : > { %v1902_v35 = vpop.f32.mrb[4].mxu1 }
 0x745   : > { %v3308_v37 = vpop.f32.mrb[5].mxu1  ;;  %v1908_v38 = vsel %vm1742_vm9, %v1902_v35, -inf }
 0x746   : > { %1909 = vmax.xlane.f32.xlu0 %v1908_v38  ;;  %v1905_v39 = vpop.f32.mrb[6].mxu1 }
 0x747   : > { %v3309_v40 = vpop.f32.mrb[7].mxu1 }
 0x74c   : > { %v2030_v41 = vpop.f32.mrb[8].mxu1 }
 0x74d   : > { %v3320_v42 = vpop.f32.mrb[9].mxu1  ;;  %v2036_v43 = vsel %vm1742_vm9, %v2030_v41, -inf }
 0x74e   : > { %2037 = vmax.xlane.f32.xlu1 %v2036_v43  ;;  %v2033_v44 = vpop.f32.mrb[10].mxu1 }
 0x74f   : > { %v3321_v45 = vpop.f32.mrb[11].mxu1 }
 0x754   : > { %v2158_v46 = vpop.f32.mrb[12].mxu1 }
 0x755   : > { %v3332_v47 = vpop.f32.mrb[13].mxu1  ;;  %v2164_v48 = vsel %vm1742_vm9, %v2158_v46, -inf }
 0x756   : > { %2165 = vmax.xlane.f32.xlu1 %v2164_v48  ;;  %v2161_v49 = vpop.f32.mrb[14].mxu1  ;;  %v3584_v47 = vld [vmem:[%s5848_s26 + $0x8] sm:$0xff]  }
 0x757   : > { %v3333_v50 = vpop.f32.mrb[15].mxu1 }
 0x75e   : > { %v1791_v51 = vpop.xlane.xlu1 %1790 }
 0x75f   : > { %v1792_v52 = vsub.f32 %v1783_v30, %v1791_v51 }
 0x761   : > { %v1793_v53 = vmul.f32 1.442695, %v1792_v52 }
 0x763   : > { %3597 = vpow2.f32 %v1793_v53 }
 0x76d   : > { %v3598_v54 = vpop.eup %3597 }
 0x76e   : > { %v1795_v55 = vsel %vm1742_vm9, %v3598_v54, 0.0 }
 0x76f   : > { %1796 = vadd.xlane.f32.xlu0 %v1795_v55 }
 0x7d3   : > { %v1910_v56 = vpop.xlane.xlu0 %1909 }
 0x7d4   : > { %v1911_v57 = vsub.f32 %v1902_v35, %v1910_v56 }
 0x7d6   : > { %v1912_v58 = vmul.f32 1.442695, %v1911_v57 }
 0x7d8   : > { %3599 = vpow2.f32 %v1912_v58 }
 0x7db   : > { %v2038_v59 = vpop.xlane.xlu1 %2037 }
 0x7dc   : > { %v2039_v60 = vsub.f32 %v2030_v41, %v2038_v59 }
 0x7de   : > { %v2040_v61 = vmul.f32 1.442695, %v2039_v60 }
 0x7e0   : > { %3601 = vpow2.f32 %v2040_v61 }
 0x7e2   : > { %v3600_v62 = vpop.eup %3599 }
 0x7e3   : > { %v1914_v63 = vsel %vm1742_vm9, %v3600_v62, 0.0  ;;  %v2166_v4 = vpop.xlane.xlu1 %2165 }
 0x7e4   : > { %1915 = vadd.xlane.f32.xlu1 %v1914_v63  ;;  %v2167_v6 = vsub.f32 %v2158_v46, %v2166_v4  ;;  %v3583_v46 = vld [vmem:[%s5847_s23] sm:$0xff]  }
 0x7e5   : > { %3341 = vmatpush3.bf16.msra.mxu1 %v3583_v46 }
 0x7e6   : > { %v2168_v8 = vmul.f32 1.442695, %v2167_v6  ;;  %3342 = vmatprep.subr.bf16.mxu1 %v4428_v36 }
 0x7e9   : > { %3343 = vmatpush3.bf16.msra.mxu1 %v3584_v47 }
 0x7ea   : > { %v3602_v0 = vpop.eup %3601  ;;  %3356 = vmatprep.subr.bf16.mxu1 %v4428_v36 }
 0x7eb   : > { %v2042_v1 = vsel %vm1742_vm9, %v3602_v0, 0.0 }
 0x7ec   : > { %2043 = vadd.xlane.f32.xlu0 %v2042_v1 }
 0x7f5   : > { %2051 = vrot.lane.b32.xlu1 %v3580_v2, %s4430_s3  ;;  %s5849_s3 = scalar_lea.vmem [#allocation30], %s5335_s18 }
 0x7f6   : > { %v3171_v57 = vld [vmem:[%s5849_s3] ss:$0 sm:$0xff] }
 0x7fc   : > { %v1797_v3 = vpop.xlane.xlu0 %1796 }
 0x7fd   : > { %3603 = vrcp.f32 %v1797_v3 }
 0x7fe   : > { %3605 = vpow2.f32 %v2168_v8  ;;  %v3588_v8 = vld [vmem:[%s5391_s14 + $0x8] sm:$0xff]  }
 0x802   : > { %1923 = vrot.lane.b32.xlu0 %v3581_v5, %s4431_s11  ;;  %s5850_s11 = scalar_lea.vmem [#allocation34], %s5344_s9  ;;  %s5852_s9 = scalar_lea.vmem [#allocation31], %s5335_s18 }
 0x803   : > { %v3585_v6 = vld [vmem:[%s5850_s11] sm:$0xff]  }
 0x807   : > { %v3604_v7 = vpop.eup %3603 }
 0x808   : > { %v1799_v9 = vmul.f32 %v3604_v7, %v3598_v54  ;;  %v3606_v11 = vpop.eup %3605  ;;  %v3587_v7 = vld [vmem:[%s5391_s14] sm:$0xff]  }
 0x809   : > { %v2170_v12 = vsel %vm1742_vm9, %v3606_v11, 0.0 }
 0x80a   : > { %v1800_v10 = vpack.c.bf16 %v1799_v9, %v1799_v9  ;;  %v3589_v9 = vld [vmem:[%s5391_s14 + $0x10] sm:$0xff]  }
 0x80c   : > { %3301 = vmatmul.mubr.msk.bf16.vlgmr.msra.gmra.mrb[12].mxu0 %vm1742_vm9, %v1800_v10  ;;  %v3590_v10 = vld [vmem:[%s5391_s14 + $0x18] sm:$0xff]  }
 0x80d   : > { %3312 = vmatprep.mubr.msk.bf16.mxu0 %vm4429_vm7, %v4428_v36 }
 0x819   : > { %2171 = vadd.xlane.f32.xlu1 %v2170_v12  ;;  %v3592_v12 = vld [vmem:[%s5391_s14 + $0x28] sm:$0xff]  }
 0x82a   : > { %2179 = vrot.lane.b32.xlu1 %v3582_v13, %s4432_s7  ;;  %s5851_s7 = smov %s5850_s11 }
 0x871   : > { %v1916_v14 = vpop.xlane.xlu1 %1915 }
 0x872   : > { %3607 = vrcp.f32 %v1916_v14 }
 0x875   : > { %v2052_v20 = vpop.permute.xlu1 %2051 }
 0x876   : > { %v2057_v22 = vsel %vm1804_vm10, %v2052_v20, 0 }
 0x879   : > { %v2044_v15 = vpop.xlane.xlu0 %2043 }
 0x87a   : > { %3609 = vrcp.f32 %v2044_v15 }
 0x87c   : > { %v3608_v16 = vpop.eup %3607 }
 0x87d   : > { %v1918_v17 = vmul.f32 %v3608_v16, %v3600_v62  ;;  %v1924_v18 = vpop.permute.xlu0 %1923 }
 0x87e   : > { %v1929_v19 = vsel %vm1804_vm10, %v1924_v18, 0 }
 0x87f   : > { %3311 = vmatpush3.bf16.msra.mxu0 %v1929_v19  ;;  %v1919_v21 = vpack.c.bf16 %v1918_v17, %v1918_v17  ;;  %v3175_v17 = vld [vmem:[%s5852_s9] ss:$0 sm:$0xff] }
 0x880   : > { %3322 = vmatprep.subr.bf16.mxu0 %v4428_v36 }
 0x882   : > { %3313 = vmatmul.mubr.msk.bf16.vlgmr.msra.gmra.mrb[16].mxu0 %vm1742_vm9, %v1919_v21 }
 0x883   : > { %3323 = vmatpush3.bf16.msra.mxu0 %v2057_v22  ;;  %3324 = vmatprep.mubr.msk.bf16.mxu0 %vm4429_vm7, %v4428_v36 }
 0x884   : > { %v3610_v23 = vpop.eup %3609  ;;  %3334 = vmatprep.subr.bf16.mxu0 %v4428_v36 }
 0x885   : > { %v2046_v24 = vmul.f32 %v3610_v23, %v3602_v0  ;;  %v3593_v23 = vld [vmem:[%s5391_s14 + $0x30] sm:$0xff]  }
 0x887   : > { %v2047_v25 = vpack.c.bf16 %v2046_v24, %v2046_v24  ;;  %v3594_v24 = vld [vmem:[%s5391_s14 + $0x38] sm:$0xff]  }
 0x88a   : > { %3325 = vmatmul.mubr.msk.bf16.vlgmr.msra.gmra.mrb[20].mxu0 %vm1742_vm9, %v2047_v25  ;;  %v3177_v25 = vld [vmem:[%s1177_s28] ss:$0 sm:$0xff]  ;;  %s5854_s28 = sld [smem:[#allocation59_spill]] }
 0x88b   : > { %3336 = vmatprep.mubr.msk.bf16.mxu0 %vm4429_vm7, %v4428_v36 }
 0x890   : > { %p3190_p13 = scmp.ne.s32.totalorder %s5854_s28, 1 }
 0x891   : > { %vm2546_vm14 = vcmask (!%p3190_p13), 254976   ;;  %vm2554_vm15 = vcmask (!%p3190_p13), 257026   ;;  %vm2563_vm0 = vcmask (!%p3190_p13), 259076   ;;  %vm2572_vm1 = vcmask (!%p3190_p13), 261126  }
 0x892   : > { %vm2581_vm2 = vcmask (!%p3190_p13), 1040384   ;;  %vm2583_vm3 = vcmask (!%p3190_p13), 1041408   ;;  %vm2585_vm4 = vcmask (!%p3190_p13), 1042432   ;;  %vm2588_vm5 = vcmask (!%p3190_p13), 253952  }
 0x8a6   : > { %v2172_v26 = vpop.xlane.xlu1 %2171 }
 0x8a7   : > { %3611 = vrcp.f32 %v2172_v26 }
 0x8aa   : > { %v2180_v27 = vpop.permute.xlu1 %2179 }
 0x8ab   : > { %v2185_v29 = vsel %vm1804_vm10, %v2180_v27, 0 }
 0x8ac   : > { %3335 = vmatpush3.bf16.msra.mxu0 %v2185_v29 }
 0x8ad   : > { %3348 = vmatprep.subr.bf16.mxu0 %v4428_v36 }
 0x8b1   : > { %v3612_v30 = vpop.eup %3611 }
 0x8b2   : > { %v2174_v31 = vmul.f32 %v3612_v30, %v3606_v11  ;;  %v3591_v11 = vld [vmem:[%s5391_s14 + $0x20] sm:$0xff]  }
 0x8b4   : > { %v2175_v32 = vpack.c.bf16 %v2174_v31, %v2174_v31 }
 0x8b6   : > { %3337 = vmatmul.mubr.msk.bf16.vlgmr.msra.gmra.mrb[24].mxu0 %vm1742_vm9, %v2175_v32 }
 0x8b7   : > { %3352 = vmatprep.mubr.msk.bf16.mxu0 %vm4429_vm7, %v4428_v36  ;;  %3349 = vmatpush3.bf16.msra.mxu0 %v3585_v6 }
 0x8b8   : > { %3350 = vmatprep.subr.bf16.mxu0 %v4428_v36 }
 0x8df   : > { %v1842_v33 = vpop.f32.mrb[12].mxu0 }
 0x8e0   : > { %1848 = vst.msk [vmem:[#allocation6] sm:$0xff] %vm1742_vm9, %v1842_v33  ;;  %v3302_v34 = vpop.f32.mrb[13].mxu0 }
 0x8e1   : > { %v1845_v35 = vpop.f32.mrb[14].mxu0  ;;  %v3181_v34 = vld [vmem:[%s1194_s4] ss:$0 sm:$0xff] }
 0x8e2   : > { %v3303_v37 = vpop.f32.mrb[15].mxu0 }
 0x955   : > { %v1965_v38 = vpop.f32.mrb[16].mxu0 }
 0x956   : > { %1972 = vrot.lane.b32.xlu0 %v1965_v38, %s4433_s10  ;;  %v3314_v39 = vpop.f32.mrb[17].mxu0  ;;  %s5853_s10 = scalar_lea.vmem [#allocation33], %s5335_s18 }
 0x957   : > { %v1968_v40 = vpop.f32.mrb[18].mxu0  ;;  %v3176_v19 = vld [vmem:[%s5853_s10] ss:$0 sm:$0xff] }
 0x958   : > { %v3315_v41 = vpop.f32.mrb[19].mxu0 }
 0x95d   : > { %v2093_v42 = vpop.f32.mrb[20].mxu0 }
 0x95e   : > { %2100 = vrot.lane.b32.xlu1 %v2093_v42, %s4434_s30  ;;  %v3326_v43 = vpop.f32.mrb[21].mxu0 }
 0x95f   : > { %v2096_v44 = vpop.f32.mrb[22].mxu0 }
 0x960   : > { %v3327_v45 = vpop.f32.mrb[23].mxu0 }
 0x989   : > { %v2221_v48 = vpop.f32.mrb[24].mxu0 }
 0x98a   : > { %2228 = vrot.lane.b32.xlu0 %v2221_v48, %s4435_s16  ;;  %v3338_v49 = vpop.f32.mrb[25].mxu0 }
 0x98b   : > { %v2224_v50 = vpop.f32.mrb[26].mxu0 }
 0x98c   : > { %v3339_v51 = vpop.f32.mrb[27].mxu0 }
 0x98d   : > { %v3191_v51 = vld [vmem:[#allocation13] ss:$0 sm:$0xff] (!%p3190_p13) }
 0x9c8   : > { %v1973_v52 = vpop.permute.xlu0 %1972 }
 0x9c9   : > { %1976 = vst.msk [vmem:[#allocation6] sm:$0xff] %vm1975_vm11, %v1973_v52 }
 0x9d0   : > { %v2101_v53 = vpop.permute.xlu1 %2100 }
 0x9d1   : > { %2104 = vst.msk [vmem:[#allocation6] sm:$0xff] %vm2103_vm12, %v2101_v53  ;;  %v3192_v53 = vld [vmem:[#allocation15] ss:$0 sm:$0xff] (!%p3190_p13) }
 0x9fc   : > { %v2229_v54 = vpop.permute.xlu0 %2228 }
 0x9fd   : > { %2232 = vst.msk [vmem:[#allocation6] sm:$0xff] %vm2231_vm13, %v2229_v54 }
 0xa04   : > { %v2233_v55 = vld [vmem:[#allocation6] sm:$0xff] }
 0xa05   : > { %v2234_v56 = vpack.c.bf16 %v2233_v55, %v2233_v55 }
 0xa07   : > { %3345 = vmatmul.mubr.msk.bf16.vlgmr.msra.gmra.mrb[16].mxu1 %vm1510_vm6, %v2234_v56 }
 0xa08   : > { %3372 = vmatprep.mubr.msk.bf16.mxu1 %vm4429_vm7, %v4428_v36  ;;  %3357 = vmatpush3.bf16.msra.mxu1 %v3587_v7 }
 0xa09   : > { %3358 = vmatprep.subr.bf16.mxu1 %v4428_v36 }
 0xa0c   : > { %3359 = vmatpush3.bf16.msra.mxu1 %v3588_v8 }
 0xa0d   : > { %3360 = vmatprep.subr.bf16.mxu1 %v4428_v36 }
 0xa10   : > { %3361 = vmatpush3.bf16.msra.mxu1 %v3589_v9 }
 0xa11   : > { %3362 = vmatprep.subr.bf16.mxu1 %v4428_v36 }
 0xa14   : > { %3363 = vmatpush3.bf16.msra.mxu1 %v3590_v10 }
 0xa15   : > { %3364 = vmatprep.subr.bf16.mxu1 %v4428_v36 }
 0xa18   : > { %3365 = vmatpush3.bf16.msra.mxu1 %v3591_v11 }
 0xa19   : > { %3366 = vmatprep.subr.bf16.mxu1 %v4428_v36 }
 0xa1c   : > { %3367 = vmatpush3.bf16.msra.mxu1 %v3592_v12 }
 0xa1d   : > { %3368 = vmatprep.subr.bf16.mxu1 %v4428_v36 }
 0xa20   : > { %3369 = vmatpush3.bf16.msra.mxu1 %v3593_v23 }
 0xa21   : > { %3370 = vmatprep.subr.bf16.mxu1 %v4428_v36 }
 0xa24   : > { %3371 = vmatpush3.bf16.msra.mxu1 %v3594_v24 }
 0xada   : > { %v2295_v58 = vpop.f32.mrb[16].mxu1 }
 0xadb   : > { %v2296_v59 = vadd.f32 %v3171_v57, %v2295_v58  ;;  %v3346_v60 = vpop.f32.mrb[17].mxu1 }
 0xadc   : > { %v2298_v61 = vpop.f32.mrb[18].mxu1 }
 0xadd   : > { %v5530_v62 = vadd.f32 %v2296_v59, %v5408_v28  ;;  %v3347_v63 = vpop.f32.mrb[19].mxu1  ;;  %v3586_v28 = vld [vmem:[%s5851_s7 + $0x8] sm:$0xff]  }
 0xade   : > { %3351 = vmatpush3.bf16.msra.mxu0 %v3586_v28 }
 0xadf   : > { %v2304_v0 = vsel %vm1510_vm6, %v5530_v62, 0.0 }
 0xae0   : > { %2305 = vadd.xlane.f32.xlu1 %v2304_v0 }
 0xb6d   : > { %v2306_v1 = vpop.xlane.xlu1 %2305 }
 0xb6e   : > { %v2307_v2 = vmul.f32 0.03125, %v2306_v1 }
 0xb70   : > { %v2308_v3 = vsub.f32 %v5530_v62, %v2307_v2 }
 0xb72   : > { %v2309_v4 = vmul.f32 %v2308_v3, %v2308_v3 }
 0xb74   : > { %v2310_v5 = vsel %vm1510_vm6, %v2309_v4, 0.0 }
 0xb75   : > { %2311 = vadd.xlane.f32.xlu0 %v2310_v5 }
 0xc02   : > { %v2312_v13 = vpop.xlane.xlu0 %2311 }
 0xc03   : > { %v2313_v14 = vmul.f32 0.03125, %v2312_v13 }
 0xc05   : > { %v2314_v15 = vadd.f32 1e-05, %v2313_v14 }
 0xc07   : > { %3613 = vrsqrt.f32 %v2314_v15 }
 0xc11   : > { %v3614_v16 = vpop.eup %3613 }
 0xc12   : > { %v2316_v18 = vmul.f32 %v3614_v16, %v2308_v3 }
 0xc14   : > { %v2323_v20 = vmul.f32 %v3175_v17, %v2316_v18 }
 0xc16   : > { %v2330_v21 = vadd.f32 %v3176_v19, %v2323_v20 }
 0xc18   : > { %v2331_v22 = vpack.c.bf16 %v2330_v21, %v2330_v21 }
 0xc1a   : > { %3353 = vmatmul.mubr.msk.bf16.vlgmr.msra.gmra.mrb[28].mxu0 %vm1510_vm6, %v2331_v22 }
 0xced   : > { %v2392_v26 = vpop.f32.mrb[28].mxu0 }
 0xcee   : > { %v2393_v27 = vadd.f32 %v3177_v25, %v2392_v26  ;;  %v3354_v29 = vpop.f32.mrb[29].mxu0 }
 0xcef   : > { %v2395_v30 = vpop.f32.mrb[30].mxu0 }
 0xcf0   : > { %v2398_v31 = vmax.f32 %v2393_v27, 0.0  ;;  %v3355_v32 = vpop.f32.mrb[31].mxu0 }
 0xcf2   : > { %v2399_v33 = vpack.c.bf16 %v2398_v31, %v2398_v31 }
 0xcf4   : > { %3373 = vmatmul.mubr.bf16.vlgmr.msra.gmra.mrb[20].mxu1 %v2399_v33 }
 0xdc6   : > { %2516 = sbr.rel (%p3190_p13) target bundleno = 3865 (0xf19), region = 196 }
 0xdc7   : > { %v2505_v35 = vpop.f32.mrb[20].mxu1 }
 0xdc8   : > { %v2506_v37 = vadd.f32 %v3181_v34, %v2505_v35  ;;  %v3374_v38 = vpop.f32.mrb[21].mxu1 }
 0xdc9   : > { %v2508_v39 = vpop.f32.mrb[22].mxu1 }
 0xdca   : > { %v2511_v36 = vadd.f32 %v2506_v37, %v5530_v62  ;;  %v3375_v40 = vpop.f32.mrb[23].mxu1 }
 0xdcc   : > { %2512 = vst.msk [vmem:[#allocation2] sm:$0xff] %vm1510_vm6, %v2511_v36  ;;  %v2519_v41 = vsel (!%p3190_p13), %vm1510_vm6, %v2511_v36, 0.0 }
 0xdcd   : > { %2520 = vadd.xlane.f32.xlu0 %v2519_v41 }
 0xe5a   : > { %v2521_v42 = vpop.xlane.xlu0 %2520 }
 0xe5b   : > { %v2522_v43 = vmul.f32 0.03125, %v2521_v42 }
 0xe5d   : > { %v2523_v44 = vsub.f32 %v2511_v36, %v2522_v43 }
 0xe5f   : > { %v2524_v45 = vmul.f32 %v2523_v44, %v2523_v44 }
 0xe61   : > { %v2525_v46 = vsel %vm1510_vm6, %v2524_v45, 0.0 }
 0xe62   : > { %2526 = vadd.xlane.f32.xlu0 %v2525_v46 }
 0xeef   : > { %v2527_v47 = vpop.xlane.xlu0 %2526 }
 0xef0   : > { %v2528_v48 = vmul.f32 0.03125, %v2527_v47 }
 0xef2   : > { %v2529_v49 = vadd.f32 1e-05, %v2528_v48 }
 0xef4   : > { %3615 = vrsqrt.f32 %v2529_v49 }
 0xefe   : > { %v3616_v50 = vpop.eup %3615 }
 0xeff   : > { %v2531_v52 = vmul.f32 %v3616_v50, %v2523_v44 }
 0xf01   : > { %v2538_v54 = vmul.f32 %v3191_v51, %v2531_v52 }
 0xf03   : > { %v2545_v55 = vadd.f32 %v3192_v53, %v2538_v54 }
 0xf05   : > { %v2547_v56 = vsel %vm2546_vm14, %v2545_v55, -inf  ;;  %v2555_v57 = vsel %vm2554_vm15, %v2545_v55, -inf  ;;  %v2564_v58 = vsel %vm2563_vm0, %v2545_v55, -inf  ;;  %v2573_v59 = vsel %vm2572_vm1, %v2545_v55, -inf }
 0xf06   : > { %v2548_v60 = vrot.slane %v2547_v56, 4  ;;  %v2556_v61 = vrot.slane %v2555_v57, 4  ;;  %v2565_v62 = vrot.slane %v2564_v58, 4  ;;  %v2574_v63 = vrot.slane %v2573_v59, 4 }
 0xf08   : > { %v2549_v0 = vmax.f32 %v2547_v56, %v2548_v60  ;;  %v2557_v1 = vmax.f32 %v2555_v57, %v2556_v61  ;;  %v2566_v2 = vmax.f32 %v2564_v58, %v2565_v62  ;;  %v2575_v3 = vmax.f32 %v2573_v59, %v2574_v63 }
 0xf0a   : > { %v2550_v4 = vrot.slane %v2549_v0, 2  ;;  %v2558_v5 = vrot.slane %v2557_v1, 2  ;;  %v2567_v6 = vrot.slane %v2566_v2, 2  ;;  %v2576_v28 = vrot.slane %v2575_v3, 2 }
 0xf0c   : > { %v2551_v7 = vmax.f32 %v2549_v0, %v2550_v4  ;;  %v2559_v8 = vmax.f32 %v2557_v1, %v2558_v5  ;;  %v2568_v9 = vmax.f32 %v2566_v2, %v2567_v6  ;;  %v2577_v10 = vmax.f32 %v2575_v3, %v2576_v28 }
 0xf0e   : > { %v2552_v11 = vrot.slane %v2551_v7, 1  ;;  %v2560_v12 = vrot.slane %v2559_v8, 1  ;;  %v2569_v13 = vrot.slane %v2568_v9, 1  ;;  %v2578_v14 = vrot.slane %v2577_v10, 1 }
 0xf10   : > { %v2553_v15 = vmax.f32 %v2551_v7, %v2552_v11  ;;  %v2561_v16 = vmax.f32 %v2559_v8, %v2560_v12  ;;  %v2570_v17 = vmax.f32 %v2568_v9, %v2569_v13  ;;  %v2579_v19 = vmax.f32 %v2577_v10, %v2578_v14 }
 0xf12   : > { %v2562_v18 = vmax.f32 %v2553_v15, %v2561_v16  ;;  %v2582_v20 = vsel %vm2581_vm2, %v2553_v15, %v2561_v16 }
 0xf13   : > { %v2584_v21 = vsel %vm2583_vm3, %v2582_v20, %v2570_v17 }
 0xf14   : > { %v2571_v22 = vmax.f32 %v2562_v18, %v2570_v17  ;;  %v2586_v23 = vsel %vm2585_vm4, %v2584_v21, %v2579_v19 }
 0xf15   : > { %2587 = vst.msk [vmem:[%s5402_s1] sm:$0xf] %vm1733_vm8, %v2586_v23 }
 0xf16   : > { %v2580_v24 = vmax.f32 %v2571_v22, %v2579_v19 }
 0xf18   : > { %2589 = vst.msk [vmem:[%s5400_s22] sm:$0x1] %vm2588_vm5, %v2580_v24 }
 0xf19 PF: > { %s5855_s18 = sld [smem:[#allocation60_spill]]  ;;  %s5856_s4 = sld [smem:[#allocation68_spill]] }
 0xf1a   : > { %s5857_s26 = sld [smem:[#allocation89_spill]]  ;;  %s2608_s3 = sshll.u32 %s5400_s22, 4  ;;  %s2609_s3 = int_to_ptr.vmem [resolvable:$true] %s2608_s3 }
 0xf1b   : > { %s2591_s11 = scalar_lea.sflag [#allocation9], %s5313_s2  ;;  %s4205_s7 = scalar_lea.vmem %s2609_s3, 16 }
 0xf1c   : > { %p4206_p5 = scmp.ne.s32.totalorder %s2609_s3, %s4205_s7  ;;  %s4436_s9 = smov [#allocation40]  }
 0xf1d   : > { %s4209_s10 = sshll.u32 %s4436_s9, 4  ;;  %s4210_s10 = int_to_ptr.vmem [resolvable:$false] %s4209_s10 }
 0xf1e   : > { %s4211_s28 = scalar_lea.vmem %s4210_s10, 32  ;;  %p4212_p3 = scmp.lt.s32.totalorder %s2609_s3, %s4210_s10 }
 0xf1f   : > { %s3194_s14 = sshll.u32 %s5855_s18, 4  ;;  %p5858_p0 = scmp.ne.s32.totalorder %s5856_s4, 0 }
 0xf20   : > { %s5577_s16 = scalar_lea.hbm %s5857_s26, %s3194_s14  ;;  %p4213_p8 = scmp.lt.s32.totalorder %s4211_s28, %s4205_s7 }
 0xf21   : > { %p4207_p11 = pnand %p4206_p5, %p5858_p0 }
 0xf22   : > { %p4214_p7 = por %p4213_p8, %p4212_p3 }
 0xf23   : > { %p4208_p6 = pneg %p4207_p11 }
 0xf25   : > { %p4215_p10 = pnand %p4214_p7, %p4208_p6 }
 0xf27   : > { %4218 = shalt.err (!%p4215_p10)
}
 0xf28   : > { %s4219_s22 = scalar_lea.hbm %s5577_s16, 16  ;;  %s4223_s23 = scalar_lea.hbm %s5857_s26, 32 }
 0xf29   : > { %p4220_p4 = scmp.ne.s32.totalorder %s5577_s16, %s4219_s22  ;;  %p4224_p9 = scmp.lt.u32.totalorder %s5577_s16, %s5857_s26 }
 0xf2a   : > { %p4225_p2 = scmp.lt.u32.totalorder %s4223_s23, %s4219_s22  ;;  %p4227_p5 = scmp.lt.u32.totalorder %s4219_s22, %s5577_s16 }
 0xf2b   : > { %p4221_p1 = pnand %p4220_p4, %p5858_p0 }
 0xf2c   : > { %p4226_p13 = por %p4225_p2, %p4224_p9 }
 0xf2d   : > { %p4222_p12 = pneg %p4221_p1 }
 0xf2e   : > { %p4228_p11 = por %p4227_p5, %p4226_p13 }
 0xf30   : > { %p4229_p6 = pnand %p4228_p11, %p4222_p12 }
 0xf32   : > { %4232 = shalt.err (!%p4229_p6)
}
 0xf33   : > { %3426 = dma.vmem_to_hbm [thread:$0]  (%p5858_p0), %s2609_s3, 16, %s5577_s16, %s2591_s11  }
 0xf34   : > { %s3195_s7 = sshll.u32 %s5855_s18, 6  ;;  %s2621_s28 = sshll.u32 %s5402_s1, 4  ;;  %s2622_s28 = int_to_ptr.vmem [resolvable:$true] %s2621_s28 }
 0xf35   : > { %s5859_s9 = sld [smem:[#allocation90_spill]]  ;;  %s2595_s22 = scalar_lea.sflag [#allocation42], %s5313_s2 }
 0xf36   : > { %s4233_s23 = scalar_lea.vmem %s2622_s28, 64  ;;  %s4437_s8 = smov [#allocation41]  }
 0xf37   : > { %p4234_p3 = scmp.ne.s32.totalorder %s2622_s28, %s4233_s23  ;;  %s4237_s12 = sshll.u32 %s4437_s8, 4  ;;  %s4238_s12 = int_to_ptr.vmem [resolvable:$false] %s4237_s12 }
 0xf38   : > { %s4239_s13 = scalar_lea.vmem %s4238_s12, 128  ;;  %p4240_p10 = scmp.lt.s32.totalorder %s2622_s28, %s4238_s12 }
 0xf39   : > { %p4235_p8 = pnand %p4234_p3, %p5858_p0  ;;  %p4241_p4 = scmp.lt.s32.totalorder %s4239_s13, %s4233_s23 }
 0xf3b   : > { %s5603_s10 = scalar_lea.hbm %s5859_s9, %s3195_s7  ;;  %p4236_p7 = pneg %p4235_p8 }
 0xf3c   : > { %p4242_p1 = por %p4241_p4, %p4240_p10 }
 0xf3e   : > { %p4243_p12 = pnand %p4242_p1, %p4236_p7 }
 0xf40   : > { %4246 = shalt.err (!%p4243_p12)
}
 0xf41   : > { %s4247_s2 = scalar_lea.hbm %s5603_s10, 64  ;;  %s4251_s8 = scalar_lea.hbm %s5859_s9, 128 }
 0xf42   : > { %p4248_p9 = scmp.ne.s32.totalorder %s5603_s10, %s4247_s2  ;;  %p4252_p5 = scmp.lt.u32.totalorder %s5603_s10, %s5859_s9 }
 0xf43   : > { %p4253_p11 = scmp.lt.u32.totalorder %s4251_s8, %s4247_s2  ;;  %p4255_p3 = scmp.lt.u32.totalorder %s4247_s2, %s5603_s10 }
 0xf44   : > { %p4249_p2 = pnand %p4248_p9, %p5858_p0 }
 0xf45   : > { %p4254_p6 = por %p4253_p11, %p4252_p5 }
 0xf46   : > { %p4250_p13 = pneg %p4249_p2 }
 0xf47   : > { %p4256_p8 = por %p4255_p3, %p4254_p6 }
 0xf49   : > { %p4257_p7 = pnand %p4256_p8, %p4250_p13 }
 0xf4b   : > { %4260 = shalt.err (!%p4257_p7)
}
 0xf4c   : > { %3427 = dma.vmem_to_hbm [thread:$0]  (%p5858_p0), %s2622_s28, 64, %s5603_s10, %s2595_s22  }
 0xf4d PF: > { %s5860_s13 = sld [smem:[#allocation57_spill]]  ;;  %s5861_s3 = sld [smem:[#allocation69_spill]] }
 0xf4e   : > { %p3458_p10 = scmp.ge.s32.totalorder %s4399_s6, 2 }
 0xf53   : > { %s2633_s11 = sand.u32 1, %s5860_s13   ;;  %p5862_p4 = scmp.ne.s32.totalorder %s5861_s3, 0 }
 0xf54   : > { %s2634_s7 = scalar_lea.sflag [#allocation9], %s2633_s11 }
 0xf55   : > { %p3444_p1 = pnand %p3458_p10, %p5862_p4 }
 0xf57   : > { %4350 = dma.done.wait (!%p3444_p1), %s2634_s7, 16  }
 0xf58   : > { %4352 = vsyncadd (!%p3444_p1), %s2634_s7, 4294967280  ;;  %s2642_s14 = scalar_lea.sflag [#allocation42], %s2633_s11 }
 0xf59   : > { %4354 = dma.done.wait (!%p3444_p1), %s2642_s14, 64  }
 0xf5a   : > { %4356 = vsyncadd (!%p3444_p1), %s2642_s14, 4294967232  ;;  %s68_s6 = sadd.s32 1, %s4399_s6   ;;  %s5863_s3 = sld [smem:[#allocation56_spill]] }
 0xf5b   : > { %p65_p12 = scmp.ge.s32.totalorder %s68_s6, 6   ;;  %s5864_s4 = sld [smem:[#allocation65_spill]] }
 0xf5c   : > { %s5865_s30 = sld [smem:[#allocation58_spill]]  ;;  %s5866_s10 = sld [smem:[#allocation66_spill]] }
 0xf5d   : > { %s5867_s22 = sld [smem:[#allocation62_spill]]  ;;  %s5868_s2 = sld [smem:[#allocation63_spill]] }
 0xf5e   : > { %s5869_s28 = smov %s4367_s29  ;;  %s5873_s23 = smov %s4391_s5 }
 0xf5f   : > { %s5874_s1 = smov %s4395_s24  ;;  %67 = sbr.rel (!%p65_p12) target bundleno = 50 (0x32), region = 384 }
 0xf61   : > { %s5870_s29 = smov %s5864_s4  ;;  %s5871_s4 = smov %s4379_s0 }
 0xf62   : > { %s5872_s0 = smov %s5866_s10 }
 0xf63   : > { %s5875_s5 = smov %s5867_s22  ;;  %s5876_s24 = smov %s5868_s2 }
 0xf66   :  { %2647 = vsyncpa [#allocation8], 1 }
 0xf67   :  { %2649 = vsyncpa [#allocation8 + $0x1], 1 }
 0xf68   :  { %2650 = vsyncpa [#allocation11], 1 }
 0xf69   :  { %2651 = vsyncpa [#allocation14], 1 }
 0xf6a   :  { %2652 = vsyncpa [#allocation17], 1 }
 0xf6b   :  { %2654 = vsyncpa [#allocation17 + $0x1], 1 }
 0xf6c   :  { %2655 = vsyncpa [#allocation20], 1 }
 0xf6d   :  { %2657 = vsyncpa [#allocation20 + $0x1], 1 }
 0xf6e   :  { %2658 = vsyncpa [#allocation23], 1 }
 0xf6f   :  { %2660 = vsyncpa [#allocation23 + $0x1], 1 }
 0xf70   :  { %2661 = vsyncpa [#allocation26], 1 }
 0xf71   :  { %2663 = vsyncpa [#allocation26 + $0x1], 1 }
 0xf72   :  { %2664 = vsyncpa [#allocation29], 1 }
 0xf73   :  { %2666 = vsyncpa [#allocation29 + $0x1], 1 }
 0xf74   :  { %2667 = vsyncpa [#allocation32], 1 }
 0xf75   :  { %2669 = vsyncpa [#allocation32 + $0x1], 1 }
 0xf76   :  { %2670 = vsyncpa [#allocation35], 1 }
 0xf77   :  { %2672 = vsyncpa [#allocation35 + $0x1], 1 }
 0xf78   :  { %2673 = vsyncpa [#allocation38], 1 }
 0xf79   :  { %2675 = vsyncpa [#allocation38 + $0x1], 1 }
 0xf7a   :  { %2676 = vsyncpa [#allocation9], 1 }
 0xf7b   :  { %2678 = vsyncpa [#allocation9 + $0x1], 1 }
 0xf7c   :  { %2679 = vsyncpa [#allocation42], 1 }
 0xf7d   :  { %2681 = vsyncpa [#allocation42 + $0x1], 1 }

</bundles_post_ra>
